<compile_context>
chip_gen: v7x
topology: tpu7x:2x2x1
jax: 0.10.0
libtpu: 0.0.40
codegen_flags: <defaults>
</compile_context>

<pallas_src>
import jax
import jax.numpy as jnp
from jax.experimental import pallas as pl
from jax.experimental.pallas import tpu as pltpu

# Default TPU matmul precision for f32 inputs may use bf16 passes; the kernel's
# MXU math is full f32, so pin the wrapper/reference matmuls to f32 as well so
# the 1e-3 comparison is meaningful.
jax.config.update("jax_default_matmul_precision", "highest")


def _round_up(x, m):
    return (x + m - 1) // m * m


def _const_weight_spec(shape, index_map):
    """Loop-invariant operand: request single buffering (halves weight VMEM).

    Falls back to the default (double-buffered) BlockSpec on JAX versions that
    do not support pipeline_mode / pl.Buffered.
    """
    try:
        return pl.BlockSpec(shape, index_map, pipeline_mode=pl.Buffered(1))
    except (TypeError, AttributeError):
        return pl.BlockSpec(shape, index_map)


def _cfc_kernel(x_ref, w_ref, b_ref, m_ref, c_ref, out_ref, g_scratch, xp_scratch):
    """Grid = (batch_chunks, time_chunks); time is the inner, sequential axis.

    x_ref:      (TS, TB, DP)     time-major input block
    w_ref:      (DP, 2*UP)       fused projection weight [W_lin | S]     (invariant)
    b_ref:      (1, 2*UP)        fused bias [b_lin + c | 0], c = b_out@A (invariant)
    m_ref:      (UP, UP)         folded recurrent matrix M = W_out @ A   (invariant)
    c_ref:      (1, UP)          c = b_out @ A (undo the fold at global t == 0)
    out_ref:    (TS, TB, UP)     time-major pre-output-projection state g_t
    g_scratch:  (TB, UP)         recurrent carry, persists across time chunks
    xp_scratch: (TS*TB, 2*UP)    staged input projections for this block
    """
    t_chunk = pl.program_id(1)
    f32 = jnp.float32

    @pl.when(t_chunk == 0)
    def _():
        g_scratch[...] = jnp.zeros_like(g_scratch)

    ts_steps, tb, dp = x_ref.shape
    up = m_ref.shape[0]

    # One big (TS*TB, DP) @ (DP, 2*UP) MXU matmul per grid step; it does not
    # depend on the recurrent carry, so it stays off the serial critical path.
    x2d = x_ref[...].reshape(ts_steps * tb, dp)
    xp_scratch[...] = (
        jnp.dot(x2d.astype(w_ref.dtype), w_ref[...], preferred_element_type=f32)
        + b_ref[...])

    # Hoisted loads (no per-step broadcasts inside the unrolled loop).
    m = m_ref[...]
    c = c_ref[...]
    g = g_scratch[...]
    first_gate = (t_chunk == 0).astype(f32)   # 1.0 only on the first time chunk

    # Statically unrolled serial recurrence: ONE matmul per timestep.
    for s in range(ts_steps):
        xw = xp_scratch[s * tb:(s + 1) * tb, :up]     # x@W_lin + b_lin + c
        xs = xp_scratch[s * tb:(s + 1) * tb, up:]     # x@S
        pre = xw + jnp.dot(g.astype(m.dtype), m, preferred_element_type=f32)
        if s == 0:
            # Global t == 0 has h_{-1} == 0, so the folded bias c = b_out @ A
            # (pre-added into b_ref) must be removed on the first time chunk.
            pre = pre - first_gate * c
        g = jnp.maximum(jnp.maximum(pre, 0.0) + xs, 0.0)
        out_ref[s] = g.astype(out_ref.dtype)          # dense (TB, UP) unmasked store

    g_scratch[...] = g


def cfc_forward(x, params, *, ts_block=16, batch_chunks=1,
                weights_dtype=jnp.float32):
    """x: (B, T, D) float32. Returns (readout (B, T, U), h_state (B, U)).

    batch_chunks=2 shards the leading 'parallel' grid axis across v7x's two
    TensorCores (keep 1 on v5e/v6e).  weights_dtype=jnp.bfloat16 halves weight
    VMEM / bandwidth for large U (matmul inputs only; f32 accumulate).
    """
    f32 = jnp.float32
    x = x.astype(f32)
    B, T, D = x.shape
    U = params["adj"].shape[0]

    UP = _round_up(U, 128)                  # lane-dense hidden width
    DP = _round_up(D, 8)                    # sublane-aligned input width
    TS = int(ts_block)
    BP = _round_up(B, 8 * batch_chunks)     # sublane-aligned batch per chunk
    TB = BP // batch_chunks
    Tpad = _round_up(T, TS)

    # Zero padding is exact: padded hidden columns of every operand are zero,
    # so they stay zero through the recurrence; padded batch/time are sliced off.
    def pad2(a, shape):
        return jnp.zeros(shape, f32).at[: a.shape[0], : a.shape[1]].set(a.astype(f32))

    w_lin_p = pad2(params["w_lin"], (DP, UP))
    sens_p = pad2(params["sens"], (DP, UP))
    b_lin_p = pad2(params["b_lin"], (1, UP))
    adj_p = pad2(params["adj"], (UP, UP))
    w_out_p = pad2(params["w_out"], (UP, UP))
    b_out_p = pad2(params["b_out"], (1, UP))

    # Algebraic fold: h_{t-1} @ A = g_{t-1} @ (W_out @ A) + b_out @ A.
    m_fold = jnp.dot(w_out_p, adj_p)                                  # (UP, UP)
    c_fold = jnp.dot(b_out_p, adj_p)                                  # (1, UP)

    # Fused input-projection weight/bias (c folded into the xw-branch bias).
    w_cat = jnp.concatenate([w_lin_p, sens_p], axis=1).astype(weights_dtype)
    b_cat = jnp.concatenate([b_lin_p + c_fold, jnp.zeros((1, UP), f32)], axis=1)

    # Time-major, zero-padded input slab (only B*T*D elements — small).
    x_tm = jnp.zeros((Tpad, BP, DP), f32).at[:T, :B, :D].set(
        jnp.transpose(x, (1, 0, 2)))

    grid = (batch_chunks, Tpad // TS)
    const_map = lambda b, t: (0, 0)

    cost = pl.CostEstimate(
        flops=2 * Tpad * BP * UP * UP + 4 * Tpad * BP * DP * UP,
        transcendentals=0,
        bytes_accessed=4 * (x_tm.size + Tpad * BP * UP
                            + DP * 2 * UP + UP * UP + 4 * UP),
    )

    g_seq = pl.pallas_call(
        _cfc_kernel,
        out_shape=jax.ShapeDtypeStruct((Tpad, BP, UP), f32),
        grid_spec=pltpu.PrefetchScalarGridSpec(
            num_scalar_prefetch=0,
            grid=grid,
            in_specs=[
                pl.BlockSpec((TS, TB, DP), lambda b, t: (t, b, 0)),     # x chunk
                _const_weight_spec((DP, 2 * UP), const_map),            # [W_lin|S]
                _const_weight_spec((1, 2 * UP), const_map),             # fused bias
                _const_weight_spec((UP, UP), const_map),                # M = W_out@A
                _const_weight_spec((1, UP), const_map),                 # c = b_out@A
            ],
            out_specs=pl.BlockSpec((TS, TB, UP), lambda b, t: (t, b, 0)),
            scratch_shapes=[
                pltpu.VMEM((TB, UP), f32),               # recurrent carry g
                pltpu.VMEM((TS * TB, 2 * UP), f32),      # staged projections
            ],
        ),
        compiler_params=pltpu.CompilerParams(
            dimension_semantics=("parallel", "arbitrary"),
            vmem_limit_bytes=32 * 1024 * 1024,
        ),
        cost_estimate=cost,
    )(x_tm, w_cat, b_cat, m_fold.astype(weights_dtype), c_fold)

    # Epilogue: output projection applied once over the whole (T, B) slab; the
    # einsum also folds the time-major -> batch-first layout change.
    g_valid = g_seq[:T, :B, :U]
    readout = jnp.einsum("tbu,uv->btv", g_valid,
                         params["w_out"].astype(f32)) + params["b_out"].astype(f32)
    # WiredCfCCell returns (h, h): the final hidden state equals the last output.
    h_state = readout[:, -1, :]
    return readout, h_state


def cfc_reference(x, params):
    """Pure-JAX reference mirroring the PyTorch loop."""
    B, T, D = x.shape
    U = params["adj"].shape[0]
    h_state = jnp.zeros((B, U), jnp.float32)
    outs = []
    for t in range(T):
        x_t = x[:, t]
        h = jax.nn.relu(x_t @ params["w_lin"] + params["b_lin"]
                        + h_state @ params["adj"])
        h = jax.nn.relu(h + x_t @ params["sens"])
        h = h @ params["w_out"] + params["b_out"]
        outs.append(h)
        h_state = h
    return jnp.stack(outs, axis=1), h_state


def init_params(key, input_size, units):
    ks = jax.random.split(key, 6)
    scale_lin = 1.0 / jnp.sqrt(input_size)
    scale_out = 1.0 / jnp.sqrt(units)
    return {
        # nn.Linear(input_size, units) weight stored pre-transposed (D, U)
        "w_lin": jax.random.uniform(ks[0], (input_size, units), jnp.float32,
                                    -scale_lin, scale_lin),
        "b_lin": jax.random.uniform(ks[1], (1, units), jnp.float32,
                                    -scale_lin, scale_lin),
        # wiring matrices (scaled so the recurrence stays well-conditioned)
        "adj": jax.random.normal(ks[2], (units, units), jnp.float32) * 0.05,
        "sens": jax.random.normal(ks[3], (input_size, units), jnp.float32) * 0.1,
        # nn.Linear(units, units) (output_dim == units) pre-transposed (U, U)
        "w_out": jax.random.uniform(ks[4], (units, units), jnp.float32,
                                    -scale_out, scale_out),
        "b_out": jax.random.uniform(ks[5], (1, units), jnp.float32,
                                    -scale_out, scale_out),
    }


if __name__ == "__main__":
    # batch, seq, input_size, units.  T=24 with TS=16 -> two time chunks, so the
    # cross-chunk hidden-state carry (and the t=0 fold correction) is exercised,
    # plus time padding (24 -> 32).
    B, T, D, U = 2, 24, 16, 32
    key = jax.random.PRNGKey(0)
    k_x, k_p = jax.random.split(key)
    x = jax.random.normal(k_x, (B, T, D), jnp.float32)
    params = init_params(k_p, D, U)

    fwd = jax.jit(cfc_forward,
                  static_argnames=("ts_block", "batch_chunks", "weights_dtype"))

    readout, h_state = jax.block_until_ready(fwd(x, params))
    ref_out, ref_h = cfc_reference(x, params)

    assert readout.shape == (B, T, U) and h_state.shape == (B, U)
    assert jnp.allclose(readout, ref_out, atol=1e-3, rtol=1e-3)
    assert jnp.allclose(h_state, ref_h, atol=1e-3, rtol=1e-3)

    # Megacore (v7x) path: grid[0] == 2, per-chunk recurrent carry.
    readout2, h_state2 = jax.block_until_ready(fwd(x, params, batch_chunks=2))
    assert jnp.allclose(readout2, ref_out, atol=1e-3, rtol=1e-3)
    assert jnp.allclose(h_state2, ref_h, atol=1e-3, rtol=1e-3)

    print("KERNEL_OK")
</pallas_src>

<mosaic_0001>
module attributes {stable_mosaic.version = 11 : i64} {
  func.func @_cfc_kernel(%arg0: i32, %arg1: i32, %arg2: memref<16x8x16xf32, #tpu.memory_space<vmem>>, %arg3: memref<16x256xf32, #tpu.memory_space<vmem>>, %arg4: memref<1x256xf32, #tpu.memory_space<vmem>>, %arg5: memref<128x128xf32, #tpu.memory_space<vmem>>, %arg6: memref<1x128xf32, #tpu.memory_space<vmem>>, %arg7: memref<16x8x128xf32, #tpu.memory_space<vmem>>, %arg8: memref<8x128xf32, #tpu.memory_space<vmem>>, %arg9: memref<128x256xf32, #tpu.memory_space<vmem>>) attributes {dimension_semantics = [#tpu.dimension_semantics<parallel>, #tpu.dimension_semantics<arbitrary>], iteration_bounds = array<i64: 1, 2>, scalar_prefetch = 0 : i64, scratch_operands = 2 : i64, tpu.core_type = #tpu.core_type<tc>, window_params = [{transform_indices = @transform_0, window_bounds = array<i64: 16, 8, 16>}, {pipeline_mode = #tpu.pipeline_mode<synchronous>, transform_indices = @transform_1, window_bounds = array<i64: 16, 256>}, {pipeline_mode = #tpu.pipeline_mode<synchronous>, transform_indices = @transform_2, window_bounds = array<i64: 1, 256>}, {pipeline_mode = #tpu.pipeline_mode<synchronous>, transform_indices = @transform_3, window_bounds = array<i64: 128, 128>}, {pipeline_mode = #tpu.pipeline_mode<synchronous>, transform_indices = @transform_4, window_bounds = array<i64: 1, 128>}, {transform_indices = @transform_5, window_bounds = array<i64: 16, 8, 128>}]} {
    %c0_i32 = arith.constant 0 : i32
    %0 = arith.cmpi eq, %arg1, %c0_i32 : i32
    %1 = arith.extui %0 : i1 to i32
    %c0_i32_0 = arith.constant 0 : i32
    %2 = arith.cmpi ne, %1, %c0_i32_0 : i32
    scf.if %2 {
      %cst_148 = arith.constant 0.000000e+00 : f32
      %214 = vector.broadcast %cst_148 : f32 to vector<8x128xf32>
      %c0_149 = arith.constant 0 : index
      %c0_150 = arith.constant 0 : index
      %215 = vector.load %arg8[%c0_149, %c0_150] : memref<8x128xf32, #tpu.memory_space<vmem>>, vector<8x128xf32>
      tpu.vector_store %arg8[%c0_149, %c0_150], %214 {strides = array<i32>} : memref<8x128xf32, #tpu.memory_space<vmem>>, vector<8x128xf32>,
    } else {
    }
    %c0 = arith.constant 0 : index
    %c0_1 = arith.constant 0 : index
    %c0_2 = arith.constant 0 : index
    %3 = vector.load %arg2[%c0, %c0_1, %c0_2] : memref<16x8x16xf32, #tpu.memory_space<vmem>>, vector<16x8x16xf32>
    %4 = vector.shape_cast %3 : vector<16x8x16xf32> to vector<128x16xf32>
    %c0_3 = arith.constant 0 : index
    %c0_4 = arith.constant 0 : index
    %5 = vector.load %arg3[%c0_3, %c0_4] : memref<16x256xf32, #tpu.memory_space<vmem>>, vector<16x256xf32>
    %cst = arith.constant dense<0.000000e+00> : vector<128x256xf32>
    %6 = tpu.matmul %4, %5, %cst {dimension_numbers = #tpu.dot_dimension_numbers<[1], [0], [0], [1], [0, 0, 1, 1], [], []>, precision = #tpu.contract_precision<fp32>} : vector<128x16xf32>, vector<16x256xf32>, vector<128x256xf32> -> vector<128x256xf32>
    %c0_5 = arith.constant 0 : index
    %c0_6 = arith.constant 0 : index
    %7 = vector.load %arg4[%c0_5, %c0_6] : memref<1x256xf32, #tpu.memory_space<vmem>>, vector<1x256xf32>
    %8 = vector.broadcast %7 : vector<1x256xf32> to vector<128x256xf32>
    %9 = arith.addf %6, %8 : vector<128x256xf32>
    %c0_7 = arith.constant 0 : index
    %c0_8 = arith.constant 0 : index
    %10 = vector.load %arg9[%c0_7, %c0_8] : memref<128x256xf32, #tpu.memory_space<vmem>>, vector<128x256xf32>
    tpu.vector_store %arg9[%c0_7, %c0_8], %9 {strides = array<i32>} : memref<128x256xf32, #tpu.memory_space<vmem>>, vector<128x256xf32>,
    %c0_9 = arith.constant 0 : index
    %c0_10 = arith.constant 0 : index
    %11 = vector.load %arg5[%c0_9, %c0_10] : memref<128x128xf32, #tpu.memory_space<vmem>>, vector<128x128xf32>
    %c0_11 = arith.constant 0 : index
    %c0_12 = arith.constant 0 : index
    %12 = vector.load %arg6[%c0_11, %c0_12] : memref<1x128xf32, #tpu.memory_space<vmem>>, vector<1x128xf32>
    %c0_13 = arith.constant 0 : index
    %c0_14 = arith.constant 0 : index
    %13 = vector.load %arg8[%c0_13, %c0_14] : memref<8x128xf32, #tpu.memory_space<vmem>>, vector<8x128xf32>
    %c0_i32_15 = arith.constant 0 : i32
    %14 = arith.cmpi eq, %arg1, %c0_i32_15 : i32
    %15 = arith.extui %14 : i1 to i32
    %16 = arith.sitofp %15 : i32 to f32
    %c0_16 = arith.constant 0 : index
    %c0_17 = arith.constant 0 : index
    %17 = vector.load %arg9[%c0_16, %c0_17] : memref<128x256xf32, #tpu.memory_space<vmem>>, vector<8x128xf32>
    %c0_18 = arith.constant 0 : index
    %c128 = arith.constant 128 : index
    %18 = vector.load %arg9[%c0_18, %c128] : memref<128x256xf32, #tpu.memory_space<vmem>>, vector<8x128xf32>
    %cst_19 = arith.constant dense<0.000000e+00> : vector<8x128xf32>
    %19 = tpu.matmul %13, %11, %cst_19 {dimension_numbers = #tpu.dot_dimension_numbers<[1], [0], [0], [1], [0, 0, 1, 1], [], []>, precision = #tpu.contract_precision<fp32>} : vector<8x128xf32>, vector<128x128xf32>, vector<8x128xf32> -> vector<8x128xf32>
    %20 = arith.addf %17, %19 : vector<8x128xf32>
    %21 = vector.broadcast %16 : f32 to vector<1x128xf32>
    %22 = arith.mulf %21, %12 : vector<1x128xf32>
    %23 = vector.broadcast %22 : vector<1x128xf32> to vector<8x128xf32>
    %24 = arith.subf %20, %23 : vector<8x128xf32>
    %cst_20 = arith.constant 0.000000e+00 : f32
    %25 = vector.broadcast %cst_20 : f32 to vector<8x128xf32>
    %26 = arith.maximumf %24, %25 : vector<8x128xf32>
    %27 = arith.addf %26, %18 : vector<8x128xf32>
    %cst_21 = arith.constant 0.000000e+00 : f32
    %28 = vector.broadcast %cst_21 : f32 to vector<8x128xf32>
    %29 = arith.maximumf %27, %28 : vector<8x128xf32>
    %c0_22 = arith.constant 0 : index
    %c0_23 = arith.constant 0 : index
    %c0_24 = arith.constant 0 : index
    %30 = vector.load %arg7[%c0_22, %c0_23, %c0_24] : memref<16x8x128xf32, #tpu.memory_space<vmem>>, vector<1x8x128xf32>
    %31 = vector.shape_cast %30 : vector<1x8x128xf32> to vector<8x128xf32>
    %32 = vector.shape_cast %29 : vector<8x128xf32> to vector<1x8x128xf32>
    tpu.vector_store %arg7[%c0_22, %c0_23, %c0_24], %32 {strides = array<i32>} : memref<16x8x128xf32, #tpu.memory_space<vmem>>, vector<1x8x128xf32>,
    %c8 = arith.constant 8 : index
    %c0_25 = arith.constant 0 : index
    %33 = vector.load %arg9[%c8, %c0_25] : memref<128x256xf32, #tpu.memory_space<vmem>>, vector<8x128xf32>
    %c8_26 = arith.constant 8 : index
    %c128_27 = arith.constant 128 : index
    %34 = vector.load %arg9[%c8_26, %c128_27] : memref<128x256xf32, #tpu.memory_space<vmem>>, vector<8x128xf32>
    %cst_28 = arith.constant dense<0.000000e+00> : vector<8x128xf32>
    %35 = tpu.matmul %29, %11, %cst_28 {dimension_numbers = #tpu.dot_dimension_numbers<[1], [0], [0], [1], [0, 0, 1, 1], [], []>, precision = #tpu.contract_precision<fp32>} : vector<8x128xf32>, vector<128x128xf32>, vector<8x128xf32> -> vector<8x128xf32>
    %36 = arith.addf %33, %35 : vector<8x128xf32>
    %cst_29 = arith.constant 0.000000e+00 : f32
    %37 = vector.broadcast %cst_29 : f32 to vector<8x128xf32>
    %38 = arith.maximumf %36, %37 : vector<8x128xf32>
    %39 = arith.addf %38, %34 : vector<8x128xf32>
    %cst_30 = arith.constant 0.000000e+00 : f32
    %40 = vector.broadcast %cst_30 : f32 to vector<8x128xf32>
    %41 = arith.maximumf %39, %40 : vector<8x128xf32>
    %c1 = arith.constant 1 : index
    %c0_31 = arith.constant 0 : index
    %c0_32 = arith.constant 0 : index
    %42 = vector.load %arg7[%c1, %c0_31, %c0_32] : memref<16x8x128xf32, #tpu.memory_space<vmem>>, vector<1x8x128xf32>
    %43 = vector.shape_cast %42 : vector<1x8x128xf32> to vector<8x128xf32>
    %44 = vector.shape_cast %41 : vector<8x128xf32> to vector<1x8x128xf32>
    tpu.vector_store %arg7[%c1, %c0_31, %c0_32], %44 {strides = array<i32>} : memref<16x8x128xf32, #tpu.memory_space<vmem>>, vector<1x8x128xf32>,
    %c16 = arith.constant 16 : index
    %c0_33 = arith.constant 0 : index
    %45 = vector.load %arg9[%c16, %c0_33] : memref<128x256xf32, #tpu.memory_space<vmem>>, vector<8x128xf32>
    %c16_34 = arith.constant 16 : index
    %c128_35 = arith.constant 128 : index
    %46 = vector.load %arg9[%c16_34, %c128_35] : memref<128x256xf32, #tpu.memory_space<vmem>>, vector<8x128xf32>
    %cst_36 = arith.constant dense<0.000000e+00> : vector<8x128xf32>
    %47 = tpu.matmul %41, %11, %cst_36 {dimension_numbers = #tpu.dot_dimension_numbers<[1], [0], [0], [1], [0, 0, 1, 1], [], []>, precision = #tpu.contract_precision<fp32>} : vector<8x128xf32>, vector<128x128xf32>, vector<8x128xf32> -> vector<8x128xf32>
    %48 = arith.addf %45, %47 : vector<8x128xf32>
    %cst_37 = arith.constant 0.000000e+00 : f32
    %49 = vector.broadcast %cst_37 : f32 to vector<8x128xf32>
    %50 = arith.maximumf %48, %49 : vector<8x128xf32>
    %51 = arith.addf %50, %46 : vector<8x128xf32>
    %cst_38 = arith.constant 0.000000e+00 : f32
    %52 = vector.broadcast %cst_38 : f32 to vector<8x128xf32>
    %53 = arith.maximumf %51, %52 : vector<8x128xf32>
    %c2 = arith.constant 2 : index
    %c0_39 = arith.constant 0 : index
    %c0_40 = arith.constant 0 : index
    %54 = vector.load %arg7[%c2, %c0_39, %c0_40] : memref<16x8x128xf32, #tpu.memory_space<vmem>>, vector<1x8x128xf32>
    %55 = vector.shape_cast %54 : vector<1x8x128xf32> to vector<8x128xf32>
    %56 = vector.shape_cast %53 : vector<8x128xf32> to vector<1x8x128xf32>
    tpu.vector_store %arg7[%c2, %c0_39, %c0_40], %56 {strides = array<i32>} : memref<16x8x128xf32, #tpu.memory_space<vmem>>, vector<1x8x128xf32>,
    %c24 = arith.constant 24 : index
    %c0_41 = arith.constant 0 : index
    %57 = vector.load %arg9[%c24, %c0_41] : memref<128x256xf32, #tpu.memory_space<vmem>>, vector<8x128xf32>
    %c24_42 = arith.constant 24 : index
    %c128_43 = arith.constant 128 : index
    %58 = vector.load %arg9[%c24_42, %c128_43] : memref<128x256xf32, #tpu.memory_space<vmem>>, vector<8x128xf32>
    %cst_44 = arith.constant dense<0.000000e+00> : vector<8x128xf32>
    %59 = tpu.matmul %53, %11, %cst_44 {dimension_numbers = #tpu.dot_dimension_numbers<[1], [0], [0], [1], [0, 0, 1, 1], [], []>, precision = #tpu.contract_precision<fp32>} : vector<8x128xf32>, vector<128x128xf32>, vector<8x128xf32> -> vector<8x128xf32>
    %60 = arith.addf %57, %59 : vector<8x128xf32>
    %cst_45 = arith.constant 0.000000e+00 : f32
    %61 = vector.broadcast %cst_45 : f32 to vector<8x128xf32>
    %62 = arith.maximumf %60, %61 : vector<8x128xf32>
    %63 = arith.addf %62, %58 : vector<8x128xf32>
    %cst_46 = arith.constant 0.000000e+00 : f32
    %64 = vector.broadcast %cst_46 : f32 to vector<8x128xf32>
    %65 = arith.maximumf %63, %64 : vector<8x128xf32>
    %c3 = arith.constant 3 : index
    %c0_47 = arith.constant 0 : index
    %c0_48 = arith.constant 0 : index
    %66 = vector.load %arg7[%c3, %c0_47, %c0_48] : memref<16x8x128xf32, #tpu.memory_space<vmem>>, vector<1x8x128xf32>
    %67 = vector.shape_cast %66 : vector<1x8x128xf32> to vector<8x128xf32>
    %68 = vector.shape_cast %65 : vector<8x128xf32> to vector<1x8x128xf32>
    tpu.vector_store %arg7[%c3, %c0_47, %c0_48], %68 {strides = array<i32>} : memref<16x8x128xf32, #tpu.memory_space<vmem>>, vector<1x8x128xf32>,
    %c32 = arith.constant 32 : index
    %c0_49 = arith.constant 0 : index
    %69 = vector.load %arg9[%c32, %c0_49] : memref<128x256xf32, #tpu.memory_space<vmem>>, vector<8x128xf32>
    %c32_50 = arith.constant 32 : index
    %c128_51 = arith.constant 128 : index
    %70 = vector.load %arg9[%c32_50, %c128_51] : memref<128x256xf32, #tpu.memory_space<vmem>>, vector<8x128xf32>
    %cst_52 = arith.constant dense<0.000000e+00> : vector<8x128xf32>
    %71 = tpu.matmul %65, %11, %cst_52 {dimension_numbers = #tpu.dot_dimension_numbers<[1], [0], [0], [1], [0, 0, 1, 1], [], []>, precision = #tpu.contract_precision<fp32>} : vector<8x128xf32>, vector<128x128xf32>, vector<8x128xf32> -> vector<8x128xf32>
    %72 = arith.addf %69, %71 : vector<8x128xf32>
    %cst_53 = arith.constant 0.000000e+00 : f32
    %73 = vector.broadcast %cst_53 : f32 to vector<8x128xf32>
    %74 = arith.maximumf %72, %73 : vector<8x128xf32>
    %75 = arith.addf %74, %70 : vector<8x128xf32>
    %cst_54 = arith.constant 0.000000e+00 : f32
    %76 = vector.broadcast %cst_54 : f32 to vector<8x128xf32>
    %77 = arith.maximumf %75, %76 : vector<8x128xf32>
    %c4 = arith.constant 4 : index
    %c0_55 = arith.constant 0 : index
    %c0_56 = arith.constant 0 : index
    %78 = vector.load %arg7[%c4, %c0_55, %c0_56] : memref<16x8x128xf32, #tpu.memory_space<vmem>>, vector<1x8x128xf32>
    %79 = vector.shape_cast %78 : vector<1x8x128xf32> to vector<8x128xf32>
    %80 = vector.shape_cast %77 : vector<8x128xf32> to vector<1x8x128xf32>
    tpu.vector_store %arg7[%c4, %c0_55, %c0_56], %80 {strides = array<i32>} : memref<16x8x128xf32, #tpu.memory_space<vmem>>, vector<1x8x128xf32>,
    %c40 = arith.constant 40 : index
    %c0_57 = arith.constant 0 : index
    %81 = vector.load %arg9[%c40, %c0_57] : memref<128x256xf32, #tpu.memory_space<vmem>>, vector<8x128xf32>
    %c40_58 = arith.constant 40 : index
    %c128_59 = arith.constant 128 : index
    %82 = vector.load %arg9[%c40_58, %c128_59] : memref<128x256xf32, #tpu.memory_space<vmem>>, vector<8x128xf32>
    %cst_60 = arith.constant dense<0.000000e+00> : vector<8x128xf32>
    %83 = tpu.matmul %77, %11, %cst_60 {dimension_numbers = #tpu.dot_dimension_numbers<[1], [0], [0], [1], [0, 0, 1, 1], [], []>, precision = #tpu.contract_precision<fp32>} : vector<8x128xf32>, vector<128x128xf32>, vector<8x128xf32> -> vector<8x128xf32>
    %84 = arith.addf %81, %83 : vector<8x128xf32>
    %cst_61 = arith.constant 0.000000e+00 : f32
    %85 = vector.broadcast %cst_61 : f32 to vector<8x128xf32>
    %86 = arith.maximumf %84, %85 : vector<8x128xf32>
    %87 = arith.addf %86, %82 : vector<8x128xf32>
    %cst_62 = arith.constant 0.000000e+00 : f32
    %88 = vector.broadcast %cst_62 : f32 to vector<8x128xf32>
    %89 = arith.maximumf %87, %88 : vector<8x128xf32>
    %c5 = arith.constant 5 : index
    %c0_63 = arith.constant 0 : index
    %c0_64 = arith.constant 0 : index
    %90 = vector.load %arg7[%c5, %c0_63, %c0_64] : memref<16x8x128xf32, #tpu.memory_space<vmem>>, vector<1x8x128xf32>
    %91 = vector.shape_cast %90 : vector<1x8x128xf32> to vector<8x128xf32>
    %92 = vector.shape_cast %89 : vector<8x128xf32> to vector<1x8x128xf32>
    tpu.vector_store %arg7[%c5, %c0_63, %c0_64], %92 {strides = array<i32>} : memref<16x8x128xf32, #tpu.memory_space<vmem>>, vector<1x8x128xf32>,
    %c48 = arith.constant 48 : index
    %c0_65 = arith.constant 0 : index
    %93 = vector.load %arg9[%c48, %c0_65] : memref<128x256xf32, #tpu.memory_space<vmem>>, vector<8x128xf32>
    %c48_66 = arith.constant 48 : index
    %c128_67 = arith.constant 128 : index
    %94 = vector.load %arg9[%c48_66, %c128_67] : memref<128x256xf32, #tpu.memory_space<vmem>>, vector<8x128xf32>
    %cst_68 = arith.constant dense<0.000000e+00> : vector<8x128xf32>
    %95 = tpu.matmul %89, %11, %cst_68 {dimension_numbers = #tpu.dot_dimension_numbers<[1], [0], [0], [1], [0, 0, 1, 1], [], []>, precision = #tpu.contract_precision<fp32>} : vector<8x128xf32>, vector<128x128xf32>, vector<8x128xf32> -> vector<8x128xf32>
    %96 = arith.addf %93, %95 : vector<8x128xf32>
    %cst_69 = arith.constant 0.000000e+00 : f32
    %97 = vector.broadcast %cst_69 : f32 to vector<8x128xf32>
    %98 = arith.maximumf %96, %97 : vector<8x128xf32>
    %99 = arith.addf %98, %94 : vector<8x128xf32>
    %cst_70 = arith.constant 0.000000e+00 : f32
    %100 = vector.broadcast %cst_70 : f32 to vector<8x128xf32>
    %101 = arith.maximumf %99, %100 : vector<8x128xf32>
    %c6 = arith.constant 6 : index
    %c0_71 = arith.constant 0 : index
    %c0_72 = arith.constant 0 : index
    %102 = vector.load %arg7[%c6, %c0_71, %c0_72] : memref<16x8x128xf32, #tpu.memory_space<vmem>>, vector<1x8x128xf32>
    %103 = vector.shape_cast %102 : vector<1x8x128xf32> to vector<8x128xf32>
    %104 = vector.shape_cast %101 : vector<8x128xf32> to vector<1x8x128xf32>
    tpu.vector_store %arg7[%c6, %c0_71, %c0_72], %104 {strides = array<i32>} : memref<16x8x128xf32, #tpu.memory_space<vmem>>, vector<1x8x128xf32>,
    %c56 = arith.constant 56 : index
    %c0_73 = arith.constant 0 : index
    %105 = vector.load %arg9[%c56, %c0_73] : memref<128x256xf32, #tpu.memory_space<vmem>>, vector<8x128xf32>
    %c56_74 = arith.constant 56 : index
    %c128_75 = arith.constant 128 : index
    %106 = vector.load %arg9[%c56_74, %c128_75] : memref<128x256xf32, #tpu.memory_space<vmem>>, vector<8x128xf32>
    %cst_76 = arith.constant dense<0.000000e+00> : vector<8x128xf32>
    %107 = tpu.matmul %101, %11, %cst_76 {dimension_numbers = #tpu.dot_dimension_numbers<[1], [0], [0], [1], [0, 0, 1, 1], [], []>, precision = #tpu.contract_precision<fp32>} : vector<8x128xf32>, vector<128x128xf32>, vector<8x128xf32> -> vector<8x128xf32>
    %108 = arith.addf %105, %107 : vector<8x128xf32>
    %cst_77 = arith.constant 0.000000e+00 : f32
    %109 = vector.broadcast %cst_77 : f32 to vector<8x128xf32>
    %110 = arith.maximumf %108, %109 : vector<8x128xf32>
    %111 = arith.addf %110, %106 : vector<8x128xf32>
    %cst_78 = arith.constant 0.000000e+00 : f32
    %112 = vector.broadcast %cst_78 : f32 to vector<8x128xf32>
    %113 = arith.maximumf %111, %112 : vector<8x128xf32>
    %c7 = arith.constant 7 : index
    %c0_79 = arith.constant 0 : index
    %c0_80 = arith.constant 0 : index
    %114 = vector.load %arg7[%c7, %c0_79, %c0_80] : memref<16x8x128xf32, #tpu.memory_space<vmem>>, vector<1x8x128xf32>
    %115 = vector.shape_cast %114 : vector<1x8x128xf32> to vector<8x128xf32>
    %116 = vector.shape_cast %113 : vector<8x128xf32> to vector<1x8x128xf32>
    tpu.vector_store %arg7[%c7, %c0_79, %c0_80], %116 {strides = array<i32>} : memref<16x8x128xf32, #tpu.memory_space<vmem>>, vector<1x8x128xf32>,
    %c64 = arith.constant 64 : index
    %c0_81 = arith.constant 0 : index
    %117 = vector.load %arg9[%c64, %c0_81] : memref<128x256xf32, #tpu.memory_space<vmem>>, vector<8x128xf32>
    %c64_82 = arith.constant 64 : index
    %c128_83 = arith.constant 128 : index
    %118 = vector.load %arg9[%c64_82, %c128_83] : memref<128x256xf32, #tpu.memory_space<vmem>>, vector<8x128xf32>
    %cst_84 = arith.constant dense<0.000000e+00> : vector<8x128xf32>
    %119 = tpu.matmul %113, %11, %cst_84 {dimension_numbers = #tpu.dot_dimension_numbers<[1], [0], [0], [1], [0, 0, 1, 1], [], []>, precision = #tpu.contract_precision<fp32>} : vector<8x128xf32>, vector<128x128xf32>, vector<8x128xf32> -> vector<8x128xf32>
    %120 = arith.addf %117, %119 : vector<8x128xf32>
    %cst_85 = arith.constant 0.000000e+00 : f32
    %121 = vector.broadcast %cst_85 : f32 to vector<8x128xf32>
    %122 = arith.maximumf %120, %121 : vector<8x128xf32>
    %123 = arith.addf %122, %118 : vector<8x128xf32>
    %cst_86 = arith.constant 0.000000e+00 : f32
    %124 = vector.broadcast %cst_86 : f32 to vector<8x128xf32>
    %125 = arith.maximumf %123, %124 : vector<8x128xf32>
    %c8_87 = arith.constant 8 : index
    %c0_88 = arith.constant 0 : index
    %c0_89 = arith.constant 0 : index
    %126 = vector.load %arg7[%c8_87, %c0_88, %c0_89] : memref<16x8x128xf32, #tpu.memory_space<vmem>>, vector<1x8x128xf32>
    %127 = vector.shape_cast %126 : vector<1x8x128xf32> to vector<8x128xf32>
    %128 = vector.shape_cast %125 : vector<8x128xf32> to vector<1x8x128xf32>
    tpu.vector_store %arg7[%c8_87, %c0_88, %c0_89], %128 {strides = array<i32>} : memref<16x8x128xf32, #tpu.memory_space<vmem>>, vector<1x8x128xf32>,
    %c72 = arith.constant 72 : index
    %c0_90 = arith.constant 0 : index
    %129 = vector.load %arg9[%c72, %c0_90] : memref<128x256xf32, #tpu.memory_space<vmem>>, vector<8x128xf32>
    %c72_91 = arith.constant 72 : index
    %c128_92 = arith.constant 128 : index
    %130 = vector.load %arg9[%c72_91, %c128_92] : memref<128x256xf32, #tpu.memory_space<vmem>>, vector<8x128xf32>
    %cst_93 = arith.constant dense<0.000000e+00> : vector<8x128xf32>
    %131 = tpu.matmul %125, %11, %cst_93 {dimension_numbers = #tpu.dot_dimension_numbers<[1], [0], [0], [1], [0, 0, 1, 1], [], []>, precision = #tpu.contract_precision<fp32>} : vector<8x128xf32>, vector<128x128xf32>, vector<8x128xf32> -> vector<8x128xf32>
    %132 = arith.addf %129, %131 : vector<8x128xf32>
    %cst_94 = arith.constant 0.000000e+00 : f32
    %133 = vector.broadcast %cst_94 : f32 to vector<8x128xf32>
    %134 = arith.maximumf %132, %133 : vector<8x128xf32>
    %135 = arith.addf %134, %130 : vector<8x128xf32>
    %cst_95 = arith.constant 0.000000e+00 : f32
    %136 = vector.broadcast %cst_95 : f32 to vector<8x128xf32>
    %137 = arith.maximumf %135, %136 : vector<8x128xf32>
    %c9 = arith.constant 9 : index
    %c0_96 = arith.constant 0 : index
    %c0_97 = arith.constant 0 : index
    %138 = vector.load %arg7[%c9, %c0_96, %c0_97] : memref<16x8x128xf32, #tpu.memory_space<vmem>>, vector<1x8x128xf32>
    %139 = vector.shape_cast %138 : vector<1x8x128xf32> to vector<8x128xf32>
    %140 = vector.shape_cast %137 : vector<8x128xf32> to vector<1x8x128xf32>
    tpu.vector_store %arg7[%c9, %c0_96, %c0_97], %140 {strides = array<i32>} : memref<16x8x128xf32, #tpu.memory_space<vmem>>, vector<1x8x128xf32>,
    %c80 = arith.constant 80 : index
    %c0_98 = arith.constant 0 : index
    %141 = vector.load %arg9[%c80, %c0_98] : memref<128x256xf32, #tpu.memory_space<vmem>>, vector<8x128xf32>
    %c80_99 = arith.constant 80 : index
    %c128_100 = arith.constant 128 : index
    %142 = vector.load %arg9[%c80_99, %c128_100] : memref<128x256xf32, #tpu.memory_space<vmem>>, vector<8x128xf32>
    %cst_101 = arith.constant dense<0.000000e+00> : vector<8x128xf32>
    %143 = tpu.matmul %137, %11, %cst_101 {dimension_numbers = #tpu.dot_dimension_numbers<[1], [0], [0], [1], [0, 0, 1, 1], [], []>, precision = #tpu.contract_precision<fp32>} : vector<8x128xf32>, vector<128x128xf32>, vector<8x128xf32> -> vector<8x128xf32>
    %144 = arith.addf %141, %143 : vector<8x128xf32>
    %cst_102 = arith.constant 0.000000e+00 : f32
    %145 = vector.broadcast %cst_102 : f32 to vector<8x128xf32>
    %146 = arith.maximumf %144, %145 : vector<8x128xf32>
    %147 = arith.addf %146, %142 : vector<8x128xf32>
    %cst_103 = arith.constant 0.000000e+00 : f32
    %148 = vector.broadcast %cst_103 : f32 to vector<8x128xf32>
    %149 = arith.maximumf %147, %148 : vector<8x128xf32>
    %c10 = arith.constant 10 : index
    %c0_104 = arith.constant 0 : index
    %c0_105 = arith.constant 0 : index
    %150 = vector.load %arg7[%c10, %c0_104, %c0_105] : memref<16x8x128xf32, #tpu.memory_space<vmem>>, vector<1x8x128xf32>
    %151 = vector.shape_cast %150 : vector<1x8x128xf32> to vector<8x128xf32>
    %152 = vector.shape_cast %149 : vector<8x128xf32> to vector<1x8x128xf32>
    tpu.vector_store %arg7[%c10, %c0_104, %c0_105], %152 {strides = array<i32>} : memref<16x8x128xf32, #tpu.memory_space<vmem>>, vector<1x8x128xf32>,
    %c88 = arith.constant 88 : index
    %c0_106 = arith.constant 0 : index
    %153 = vector.load %arg9[%c88, %c0_106] : memref<128x256xf32, #tpu.memory_space<vmem>>, vector<8x128xf32>
    %c88_107 = arith.constant 88 : index
    %c128_108 = arith.constant 128 : index
    %154 = vector.load %arg9[%c88_107, %c128_108] : memref<128x256xf32, #tpu.memory_space<vmem>>, vector<8x128xf32>
    %cst_109 = arith.constant dense<0.000000e+00> : vector<8x128xf32>
    %155 = tpu.matmul %149, %11, %cst_109 {dimension_numbers = #tpu.dot_dimension_numbers<[1], [0], [0], [1], [0, 0, 1, 1], [], []>, precision = #tpu.contract_precision<fp32>} : vector<8x128xf32>, vector<128x128xf32>, vector<8x128xf32> -> vector<8x128xf32>
    %156 = arith.addf %153, %155 : vector<8x128xf32>
    %cst_110 = arith.constant 0.000000e+00 : f32
    %157 = vector.broadcast %cst_110 : f32 to vector<8x128xf32>
    %158 = arith.maximumf %156, %157 : vector<8x128xf32>
    %159 = arith.addf %158, %154 : vector<8x128xf32>
    %cst_111 = arith.constant 0.000000e+00 : f32
    %160 = vector.broadcast %cst_111 : f32 to vector<8x128xf32>
    %161 = arith.maximumf %159, %160 : vector<8x128xf32>
    %c11 = arith.constant 11 : index
    %c0_112 = arith.constant 0 : index
    %c0_113 = arith.constant 0 : index
    %162 = vector.load %arg7[%c11, %c0_112, %c0_113] : memref<16x8x128xf32, #tpu.memory_space<vmem>>, vector<1x8x128xf32>
    %163 = vector.shape_cast %162 : vector<1x8x128xf32> to vector<8x128xf32>
    %164 = vector.shape_cast %161 : vector<8x128xf32> to vector<1x8x128xf32>
    tpu.vector_store %arg7[%c11, %c0_112, %c0_113], %164 {strides = array<i32>} : memref<16x8x128xf32, #tpu.memory_space<vmem>>, vector<1x8x128xf32>,
    %c96 = arith.constant 96 : index
    %c0_114 = arith.constant 0 : index
    %165 = vector.load %arg9[%c96, %c0_114] : memref<128x256xf32, #tpu.memory_space<vmem>>, vector<8x128xf32>
    %c96_115 = arith.constant 96 : index
    %c128_116 = arith.constant 128 : index
    %166 = vector.load %arg9[%c96_115, %c128_116] : memref<128x256xf32, #tpu.memory_space<vmem>>, vector<8x128xf32>
    %cst_117 = arith.constant dense<0.000000e+00> : vector<8x128xf32>
    %167 = tpu.matmul %161, %11, %cst_117 {dimension_numbers = #tpu.dot_dimension_numbers<[1], [0], [0], [1], [0, 0, 1, 1], [], []>, precision = #tpu.contract_precision<fp32>} : vector<8x128xf32>, vector<128x128xf32>, vector<8x128xf32> -> vector<8x128xf32>
    %168 = arith.addf %165, %167 : vector<8x128xf32>
    %cst_118 = arith.constant 0.000000e+00 : f32
    %169 = vector.broadcast %cst_118 : f32 to vector<8x128xf32>
    %170 = arith.maximumf %168, %169 : vector<8x128xf32>
    %171 = arith.addf %170, %166 : vector<8x128xf32>
    %cst_119 = arith.constant 0.000000e+00 : f32
    %172 = vector.broadcast %cst_119 : f32 to vector<8x128xf32>
    %173 = arith.maximumf %171, %172 : vector<8x128xf32>
    %c12 = arith.constant 12 : index
    %c0_120 = arith.constant 0 : index
    %c0_121 = arith.constant 0 : index
    %174 = vector.load %arg7[%c12, %c0_120, %c0_121] : memref<16x8x128xf32, #tpu.memory_space<vmem>>, vector<1x8x128xf32>
    %175 = vector.shape_cast %174 : vector<1x8x128xf32> to vector<8x128xf32>
    %176 = vector.shape_cast %173 : vector<8x128xf32> to vector<1x8x128xf32>
    tpu.vector_store %arg7[%c12, %c0_120, %c0_121], %176 {strides = array<i32>} : memref<16x8x128xf32, #tpu.memory_space<vmem>>, vector<1x8x128xf32>,
    %c104 = arith.constant 104 : index
    %c0_122 = arith.constant 0 : index
    %177 = vector.load %arg9[%c104, %c0_122] : memref<128x256xf32, #tpu.memory_space<vmem>>, vector<8x128xf32>
    %c104_123 = arith.constant 104 : index
    %c128_124 = arith.constant 128 : index
    %178 = vector.load %arg9[%c104_123, %c128_124] : memref<128x256xf32, #tpu.memory_space<vmem>>, vector<8x128xf32>
    %cst_125 = arith.constant dense<0.000000e+00> : vector<8x128xf32>
    %179 = tpu.matmul %173, %11, %cst_125 {dimension_numbers = #tpu.dot_dimension_numbers<[1], [0], [0], [1], [0, 0, 1, 1], [], []>, precision = #tpu.contract_precision<fp32>} : vector<8x128xf32>, vector<128x128xf32>, vector<8x128xf32> -> vector<8x128xf32>
    %180 = arith.addf %177, %179 : vector<8x128xf32>
    %cst_126 = arith.constant 0.000000e+00 : f32
    %181 = vector.broadcast %cst_126 : f32 to vector<8x128xf32>
    %182 = arith.maximumf %180, %181 : vector<8x128xf32>
    %183 = arith.addf %182, %178 : vector<8x128xf32>
    %cst_127 = arith.constant 0.000000e+00 : f32
    %184 = vector.broadcast %cst_127 : f32 to vector<8x128xf32>
    %185 = arith.maximumf %183, %184 : vector<8x128xf32>
    %c13 = arith.constant 13 : index
    %c0_128 = arith.constant 0 : index
    %c0_129 = arith.constant 0 : index
    %186 = vector.load %arg7[%c13, %c0_128, %c0_129] : memref<16x8x128xf32, #tpu.memory_space<vmem>>, vector<1x8x128xf32>
    %187 = vector.shape_cast %186 : vector<1x8x128xf32> to vector<8x128xf32>
    %188 = vector.shape_cast %185 : vector<8x128xf32> to vector<1x8x128xf32>
    tpu.vector_store %arg7[%c13, %c0_128, %c0_129], %188 {strides = array<i32>} : memref<16x8x128xf32, #tpu.memory_space<vmem>>, vector<1x8x128xf32>,
    %c112 = arith.constant 112 : index
    %c0_130 = arith.constant 0 : index
    %189 = vector.load %arg9[%c112, %c0_130] : memref<128x256xf32, #tpu.memory_space<vmem>>, vector<8x128xf32>
    %c112_131 = arith.constant 112 : index
    %c128_132 = arith.constant 128 : index
    %190 = vector.load %arg9[%c112_131, %c128_132] : memref<128x256xf32, #tpu.memory_space<vmem>>, vector<8x128xf32>
    %cst_133 = arith.constant dense<0.000000e+00> : vector<8x128xf32>
    %191 = tpu.matmul %185, %11, %cst_133 {dimension_numbers = #tpu.dot_dimension_numbers<[1], [0], [0], [1], [0, 0, 1, 1], [], []>, precision = #tpu.contract_precision<fp32>} : vector<8x128xf32>, vector<128x128xf32>, vector<8x128xf32> -> vector<8x128xf32>
    %192 = arith.addf %189, %191 : vector<8x128xf32>
    %cst_134 = arith.constant 0.000000e+00 : f32
    %193 = vector.broadcast %cst_134 : f32 to vector<8x128xf32>
    %194 = arith.maximumf %192, %193 : vector<8x128xf32>
    %195 = arith.addf %194, %190 : vector<8x128xf32>
    %cst_135 = arith.constant 0.000000e+00 : f32
    %196 = vector.broadcast %cst_135 : f32 to vector<8x128xf32>
    %197 = arith.maximumf %195, %196 : vector<8x128xf32>
    %c14 = arith.constant 14 : index
    %c0_136 = arith.constant 0 : index
    %c0_137 = arith.constant 0 : index
    %198 = vector.load %arg7[%c14, %c0_136, %c0_137] : memref<16x8x128xf32, #tpu.memory_space<vmem>>, vector<1x8x128xf32>
    %199 = vector.shape_cast %198 : vector<1x8x128xf32> to vector<8x128xf32>
    %200 = vector.shape_cast %197 : vector<8x128xf32> to vector<1x8x128xf32>
    tpu.vector_store %arg7[%c14, %c0_136, %c0_137], %200 {strides = array<i32>} : memref<16x8x128xf32, #tpu.memory_space<vmem>>, vector<1x8x128xf32>,
    %c120 = arith.constant 120 : index
    %c0_138 = arith.constant 0 : index
    %201 = vector.load %arg9[%c120, %c0_138] : memref<128x256xf32, #tpu.memory_space<vmem>>, vector<8x128xf32>
    %c120_139 = arith.constant 120 : index
    %c128_140 = arith.constant 128 : index
    %202 = vector.load %arg9[%c120_139, %c128_140] : memref<128x256xf32, #tpu.memory_space<vmem>>, vector<8x128xf32>
    %cst_141 = arith.constant dense<0.000000e+00> : vector<8x128xf32>
    %203 = tpu.matmul %197, %11, %cst_141 {dimension_numbers = #tpu.dot_dimension_numbers<[1], [0], [0], [1], [0, 0, 1, 1], [], []>, precision = #tpu.contract_precision<fp32>} : vector<8x128xf32>, vector<128x128xf32>, vector<8x128xf32> -> vector<8x128xf32>
    %204 = arith.addf %201, %203 : vector<8x128xf32>
    %cst_142 = arith.constant 0.000000e+00 : f32
    %205 = vector.broadcast %cst_142 : f32 to vector<8x128xf32>
    %206 = arith.maximumf %204, %205 : vector<8x128xf32>
    %207 = arith.addf %206, %202 : vector<8x128xf32>
    %cst_143 = arith.constant 0.000000e+00 : f32
    %208 = vector.broadcast %cst_143 : f32 to vector<8x128xf32>
    %209 = arith.maximumf %207, %208 : vector<8x128xf32>
    %c15 = arith.constant 15 : index
    %c0_144 = arith.constant 0 : index
    %c0_145 = arith.constant 0 : index
    %210 = vector.load %arg7[%c15, %c0_144, %c0_145] : memref<16x8x128xf32, #tpu.memory_space<vmem>>, vector<1x8x128xf32>
    %211 = vector.shape_cast %210 : vector<1x8x128xf32> to vector<8x128xf32>
    %212 = vector.shape_cast %209 : vector<8x128xf32> to vector<1x8x128xf32>
    tpu.vector_store %arg7[%c15, %c0_144, %c0_145], %212 {strides = array<i32>} : memref<16x8x128xf32, #tpu.memory_space<vmem>>, vector<1x8x128xf32>,
    %c0_146 = arith.constant 0 : index
    %c0_147 = arith.constant 0 : index
    %213 = vector.load %arg8[%c0_146, %c0_147] : memref<8x128xf32, #tpu.memory_space<vmem>>, vector<8x128xf32>
    tpu.vector_store %arg8[%c0_146, %c0_147], %209 {strides = array<i32>} : memref<8x128xf32, #tpu.memory_space<vmem>>, vector<8x128xf32>,
    return
  }
  func.func @transform_0(%arg0: i32, %arg1: i32) -> (i32, i32, i32) {
    %c0_i32 = arith.constant 0 : i32
    %c0_i32_0 = arith.constant 0 : i32
    return %arg1, %arg0, %c0_i32 : i32, i32, i32
  }
  func.func @transform_1(%arg0: i32, %arg1: i32) -> (i32, i32) {
    %c0_i32 = arith.constant 0 : i32
    %c0_i32_0 = arith.constant 0 : i32
    %c0_i32_1 = arith.constant 0 : i32
    return %c0_i32, %c0_i32_0 : i32, i32
  }
  func.func @transform_2(%arg0: i32, %arg1: i32) -> (i32, i32) {
    %c0_i32 = arith.constant 0 : i32
    %c0_i32_0 = arith.constant 0 : i32
    %c0_i32_1 = arith.constant 0 : i32
    return %c0_i32, %c0_i32_0 : i32, i32
  }
  func.func @transform_3(%arg0: i32, %arg1: i32) -> (i32, i32) {
    %c0_i32 = arith.constant 0 : i32
    %c0_i32_0 = arith.constant 0 : i32
    %c0_i32_1 = arith.constant 0 : i32
    return %c0_i32, %c0_i32_0 : i32, i32
  }
  func.func @transform_4(%arg0: i32, %arg1: i32) -> (i32, i32) {
    %c0_i32 = arith.constant 0 : i32
    %c0_i32_0 = arith.constant 0 : i32
    %c0_i32_1 = arith.constant 0 : i32
    return %c0_i32, %c0_i32_0 : i32, i32
  }
  func.func @transform_5(%arg0: i32, %arg1: i32) -> (i32, i32, i32) {
    %c0_i32 = arith.constant 0 : i32
    %c0_i32_0 = arith.constant 0 : i32
    return %arg1, %arg0, %c0_i32 : i32, i32, i32
  }
}

</mosaic_0001>

<bundles_post_ra>
// kernel: cfc_forward.1
= control target key start
LH: loop header
LB: loop body
LE: loop exit
PB: predicated region body
PF: predicated region fallthrough
CT: control target
= control target key end

     0   :  { %s19879_s18 = smov 0   ;;  %s19881_s19 = smov 0   ;;  %s22714_s0 = inlined_call_operand.vmem [shape: f32[32,8,16], index: 0, kind: input, shape index: {}]   ;;  %s22715_s1 = inlined_call_operand.vmem [shape: f32[16,256], index: 1, kind: input, shape index: {}]   ;;  %s22716_s2 = inlined_call_operand.vmem [shape: f32[1,256], index: 2, kind: input, shape index: {}]   ;;  %s22717_s3 = inlined_call_operand.vmem [shape: f32[128,128], index: 3, kind: input, shape index: {}]   ;;  %s22718_s4 = inlined_call_operand.vmem [shape: f32[1,128], index: 4, kind: input, shape index: {}]   ;;  %s22719_s5 = inlined_call_operand.vmem [shape: f32[32,8,128], index: 5, kind: output, shape index: {}]  }
   0x1   :  { %s19883_s20 = smov 0  }
   0x2 LB: > { %s24_s21 = sadd.s32 1, %s19839_s19  ;;  %p12098_p0 = scmp.ge.s32.totalorder %s19843_s20, 1  ;;  %s19843_s20 = sphi %s19883_s20, %s15_s20   ;;  %s19839_s19 = sphi %s19881_s19, %s22984_s19   ;;  %s19835_s18 = sphi %s19879_s18, %s22983_s18  }
   0x3   : > { %p25_p1 = scmp.ge.s32.totalorder %s24_s21, 2  ;;  %p207_p2 = scmp.lt.s32.totalorder %s19843_s20, 3 }
   0x5   : > { %s22986_s21 = smov (%p25_p1, %s24_s21), 0  ;;  %p208_p3 = pnand %p12098_p0, %p207_p2 }
   0x7   : > { %211 = sbr.rel (%p208_p3) target bundleno = 6436 (0x1924), region = 40 }
   0xe   : > { %s12099_s22 = sshll.u32 %s19835_s18, 4  ;;  %p259_p4 = scmp.eq.s32.totalorder %s19835_s18, 0 }
   0xf   : > { %p242_p5 = scmp.lt.s32.totalorder %s12099_s22, 31  ;;  %p12103_p6 = scmp.ne.s32.totalorder %s19835_s18, 0 }
  0x10   : > { %v19845_v0 = vmov (!%p12103_p6), 0.0  }
  0x11   : > { %s22988_s22 = smov (!%p242_p5, %s12099_s22), 31  ;;  %262 = sbr.rel (%p12103_p6) target bundleno = 24 (0x18), region = 44 }
  0x12   : > { %s12100_s23 = sshll.u32 %s22988_s22, 3  ;;  %263 = vst [vmem:[#allocation2] sm:$0xff] (!%p12103_p6), %v19845_v0 }
  0x13   : > { %s19904_s26 = scalar_lea.vmem %s22714_s0, %s12100_s23  ;;  %s19909_s29 = scalar_lea.vmem %s22719_s5, %s12100_s23 }
  0x18 PF: > { %v19915_v1 = vld [vmem:[%s22717_s3] sm:$0xff]  ;;  %v19920_v2 = vld [vmem:[%s22717_s3 + $0x8] sm:$0xff]  ;;  %vm296_vm0 = vcmask 130048   ;;  %v22736_v4 = vmov 0.0|0.0   ;;  %v283_v7 = vld [vmem:[%s22715_s1 + $0x18] sm:$0xff]  ;;  %v22744_v11 = vmov 0.0  }
  0x19   : > { %v281_v3 = vld [vmem:[%s22715_s1 + $0x8] sm:$0xff]  ;;  %17137 = vmatprep.subr.bf16.mxu1 %v22736_v4  ;;  %v1626_v5 = vand.u32 4294901760, %v19915_v1  ;;  %v1629_v6 = vand.u32 4294901760, %v19920_v2  ;;  %v280_v9 = vld [vmem:[%s22715_s1] sm:$0xff]  ;;  %v282_v10 = vld [vmem:[%s22715_s1 + $0x10] sm:$0xff]  ;;  %413 = vmatprep.mubr.f32.mxu0 %v22744_v11  ;;  %v349_v12 = vand.u32 4294901760, %v283_v7 }
  0x1a   : > { %v345_v8 = vand.u32 4294901760, %v281_v3  ;;  %v347_v13 = vand.u32 4294901760, %v280_v9  ;;  %v351_v14 = vand.u32 4294901760, %v282_v10  ;;  %v19941_v15 = vld [vmem:[%s22717_s3 + $0x10] sm:$0xff]  ;;  %v19946_v16 = vld [vmem:[%s22717_s3 + $0x18] sm:$0xff]  ;;  %v264_v17 = vld [vmem:[%s19904_s26] sm:$0xff] }
  0x1b   : > { %v19953_v18 = vpack.c.bf16 %v1629_v6, %v1626_v5  ;;  %v1632_v20 = vand.u32 4294901760, %v19941_v15  ;;  %v1635_v21 = vand.u32 4294901760, %v19946_v16  ;;  %v19962_v22 = vld [vmem:[%s22717_s3 + $0x20] sm:$0xff]  ;;  %v19967_v23 = vld [vmem:[%s22717_s3 + $0x28] sm:$0xff]  ;;  %v19971_v25 = vsub.f32 %v283_v7, %v349_v12  ;;  %v19999_v37 = vld [vmem:[%s22717_s3 + $0x30] sm:$0xff] }
  0x1c   : > { %v19955_v19 = vsub.f32 %v281_v3, %v345_v8  ;;  %v19969_v24 = vpack.c.bf16 %v349_v12, %v345_v8  ;;  %v19973_v26 = vpack.c.bf16 %v351_v14, %v347_v13  ;;  %v19975_v27 = vsub.f32 %v280_v9, %v347_v13  ;;  %v265_v28 = vld [vmem:[%s19904_s26 + $0x8] sm:$0xff]  ;;  %v20011_v42 = vld [vmem:[%s22717_s3 + $0x38] sm:$0xff]  ;;  %v266_v47 = vld [vmem:[%s19904_s26 + $0x10] sm:$0xff] }
  0x1d   : > { %22828 = vst [vmem:[#allocation4_spill] sm:$0xff] %v19971_v25  ;;  %17139 = vmatpush3.bf16.msra.mxu1 %v19953_v18  ;;  %v19979_v29 = vsub.f32 %v282_v10, %v351_v14  ;;  %v19985_v30 = vpack.c.bf16 %v1635_v21, %v1632_v20  ;;  %v298_v31 = vsel %vm296_vm0, %v264_v17, 0  ;;  %v22724_v34 = vand.u32 4294901760, %v19971_v25  ;;  %v20039_v52 = vld [vmem:[%s22717_s3 + $0x40] sm:$0xff]  ;;  %v20050_v57 = vld [vmem:[%s22717_s3 + $0x48] sm:$0xff]  ;;  %v267_v58 = vld [vmem:[%s19904_s26 + $0x18] sm:$0xff] }
  0x1e   : > { %22829 = vst [vmem:[#allocation5_spill] sm:$0xff] %v19973_v26  ;;  %22830 = vst [vmem:[#allocation6_spill] sm:$0xff] %v19975_v27  ;;  %v22726_v32 = vand.u32 4294901760, %v19955_v19  ;;  %17114 = vmatprep.subr.bf16.mxu0 %v19969_v24  ;;  %17140 = vmatprep.subr.bf16.mxu1 %v22736_v4  ;;  %v19991_v33 = vand.u32 4294901760, %v298_v31  ;;  %v22735_v35 = vand.u32 4294901760, %v19962_v22  ;;  %v22734_v36 = vand.u32 4294901760, %v19967_v23 }
  0x1f   : > { %22831 = vst [vmem:[#allocation7_spill] sm:$0xff] %v19979_v29  ;;  %17116 = vmatpush1.bf16.msra.mxu0 %v19973_v26  ;;  %v22723_v39 = vand.u32 4294901760, %v19975_v27  ;;  %v22722_v40 = vand.u32 4294901760, %v19979_v29  ;;  %v301_v41 = vsel %vm296_vm0, %v265_v28, 0  ;;  %v605_v44 = vsub.f32 %v19971_v25, %v22724_v34  ;;  %v20062_v7 = vld [vmem:[%s22717_s3 + $0x50] sm:$0xff]  ;;  %v20067_v8 = vld [vmem:[%s22717_s3 + $0x58] sm:$0xff] }
  0x20   : > { %v593_v38 = vsub.f32 %v19955_v19, %v22726_v32  ;;  %v20014_v43 = vsub.f32 %v298_v31, %v19991_v33  ;;  %v20023_v45 = vpack.c.bf16 %v22734_v36, %v22735_v35  ;;  %v20025_v46 = vand.u32 4294901760, %v301_v41  ;;  %v268_v9 = vld [vmem:[%s19904_s26 + $0x20] sm:$0xff] }
  0x21   : > { %17142 = vmatpush3.bf16.msra.mxu1 %v19985_v30  ;;  %v599_v49 = vsub.f32 %v19975_v27, %v22723_v39  ;;  %v611_v50 = vsub.f32 %v19979_v29, %v22722_v40  ;;  %v22732_v51 = vand.u32 4294901760, %v19999_v37  ;;  %v606_v54 = vand.u32 4294901760, %v605_v44  ;;  %v20146_v39 = vld [vmem:[%s22717_s3 + $0x78] sm:$0xff] }
  0x22   : > { %22832 = vst [vmem:[#allocation8_spill] sm:$0xff] %v20014_v43  ;;  %v594_v48 = vand.u32 4294901760, %v593_v38  ;;  %v22721_v53 = vand.u32 4294901760, %v20014_v43  ;;  %17143 = vmatprep.subr.bf16.mxu1 %v22736_v4  ;;  %v20044_v55 = vsub.f32 %v301_v41, %v20025_v46  ;;  %v22731_v56 = vand.u32 4294901760, %v20011_v42  ;;  %v269_v41 = vld [vmem:[%s19904_s26 + $0x28] sm:$0xff] }
  0x23   : > { %v600_v59 = vand.u32 4294901760, %v599_v49  ;;  %v612_v60 = vand.u32 4294901760, %v611_v50  ;;  %v304_v61 = vsel %vm296_vm0, %v266_v47, 0  ;;  %v22730_v3 = vand.u32 4294901760, %v20039_v52  ;;  %v20097_v50 = vld [vmem:[%s22717_s3 + $0x60] sm:$0xff] }
  0x24   : > { %22833 = vst [vmem:[#allocation9_spill] sm:$0xff] %v20044_v55  ;;  %v417_v62 = vsub.f32 %v20014_v43, %v22721_v53  ;;  %v17117_v63 = vpack.c.bf16 %v606_v54, %v594_v48  ;;  %v22720_v0 = vand.u32 4294901760, %v20044_v55  ;;  %v20071_v12 = vand.u32 4294901760, %v304_v61  ;;  %v1620_v53 = vld [vmem:[#allocation2] sm:$0xff] }
  0x25   : > { %17145 = vmatpush3.bf16.msra.mxu1 %v20023_v45  ;;  %v17119_v10 = vpack.c.bf16 %v612_v60, %v600_v59  ;;  %v22727_v13 = vand.u32 4294901760, %v20050_v57  ;;  %v307_v14 = vsel %vm296_vm0, %v267_v58, 0  ;;  %v20083_v31 = vpack.c.bf16 %v22731_v56, %v22732_v51  ;;  %v20107_v60 = vld [vmem:[%s22717_s3 + $0x68] sm:$0xff] }
  0x26   : > { %v418_v17 = vand.u32 4294901760, %v417_v62  ;;  %17118 = vmatprep.subr.bf16.mxu0 %v17117_v63  ;;  %v428_v28 = vsub.f32 %v20044_v55, %v22720_v0  ;;  %17146 = vmatprep.subr.bf16.mxu1 %v22736_v4  ;;  %v20085_v38 = vand.u32 4294901760, %v307_v14  ;;  %v20089_v44 = vsub.f32 %v304_v61, %v20071_v12  ;;  %v270_v61 = vld [vmem:[%s19904_s26 + $0x30] sm:$0xff] }
  0x27   : > { %v22729_v47 = vand.u32 4294901760, %v20062_v7  ;;  %v22728_v48 = vand.u32 4294901760, %v20067_v8  ;;  %v310_v49 = vsel %vm296_vm0, %v268_v9, 0  ;;  %v20116_v63 = vpack.c.bf16 %v22727_v13, %v22730_v3  ;;  %v20130_v0 = vld [vmem:[%s22717_s3 + $0x70] sm:$0xff] }
  0x28   : > { %22834 = vst [vmem:[#allocation10_spill] sm:$0xff] %v20089_v44  ;;  %419 = vmatmul.mubr.f32.vlgmr.msra.gmra.mrb[0].mxu0 %v418_v17  ;;  %v429_v54 = vand.u32 4294901760, %v428_v28  ;;  %v20100_v58 = vsub.f32 %v307_v14, %v20085_v38  ;;  %v20102_v59 = vand.u32 4294901760, %v310_v49  ;;  %v22725_v62 = vand.u32 4294901760, %v20089_v44  ;;  %v274_v55 = vld [vmem:[%s19904_s26 + $0x50] sm:$0xff] }
  0x29   : > { %17120 = vmatpush1.bf16.msra.mxu0 %v17119_v10  ;;  %424 = vmatprep.mubr.f32.mxu0 %v22744_v11  ;;  %22836 = vst [vmem:[#allocation12_spill] sm:$0xff] %v20116_v63  ;;  %v313_v9 = vsel %vm296_vm0, %v269_v41, 0  ;;  %v22741_v10 = vand.u32 4294901760, %v20097_v50  ;;  %v22740_v40 = vand.u32 4294901760, %v20107_v60  ;;  %v316_v34 = vsel %vm296_vm0, %v270_v61, 0 }
  0x2a   : > { %22835 = vst [vmem:[#allocation11_spill] sm:$0xff] %v20100_v58  ;;  %17148 = vmatpush3.bf16.msra.mxu1 %v20083_v31  ;;  %v22733_v14 = vand.u32 4294901760, %v20100_v58  ;;  %v20122_v17 = vsub.f32 %v310_v49, %v20102_v59  ;;  %v20125_v28 = vand.u32 4294901760, %v313_v9  ;;  %v439_v41 = vsub.f32 %v20089_v44, %v22725_v62 }
  0x2b   : > { %17149 = vmatprep.subr.bf16.mxu1 %v22736_v4  ;;  %v20140_v49 = vpack.c.bf16 %v22728_v48, %v22729_v47  ;;  %v20156_v48 = vand.u32 4294901760, %v316_v34  ;;  %v271_v47 = vld [vmem:[%s19904_s26 + $0x38] sm:$0xff]  ;;  %v22743_v56 = vand.u32 4294901760, %v20130_v0  ;;  %v20161_v51 = vand.u32 4294901760, %v1620_v53 }
  0x2c   : > { %22837 = vst [vmem:[#allocation13_spill] sm:$0xff] %v20122_v17  ;;  %430 = vmatmul.mubr.f32.gmra.mrb[2].mxu0 %v429_v54  ;;  %v450_v62 = vsub.f32 %v20100_v58, %v22733_v14  ;;  %v22739_v32 = vand.u32 4294901760, %v20122_v17  ;;  %v20154_v13 = vsub.f32 %v313_v9, %v20125_v28  ;;  %v440_v3 = vand.u32 4294901760, %v439_v41 }
  0x2d   : > { %22838 = vst [vmem:[#allocation14_spill] sm:$0xff] %v20140_v49  ;;  %435 = vmatprep.mubr.f32.mxu0 %v22744_v11  ;;  %v22742_v14 = vand.u32 4294901760, %v20146_v39  ;;  %v20167_v9 = vsub.f32 %v316_v34, %v20156_v48  ;;  %vm19848_vm1 = vmmov 0   ;;  %v20173_v41 = vsub.f32 %v1620_v53, %v20161_v51 }
  0x2e   : > { %22839 = vst [vmem:[#allocation15_spill] sm:$0xff] %v20154_v13  ;;  %17151 = vmatpush3.bf16.msra.mxu1 %v20116_v63  ;;  %v451_v54 = vand.u32 4294901760, %v450_v62  ;;  %v22738_v61 = vand.u32 4294901760, %v20154_v13  ;;  %13785 = vmatprep.mubr.msk.f32.mxu1 %vm19848_vm1, %v22744_v11  ;;  %v20178_v62 = vsub.f32 %v19915_v1, %v1626_v5  ;;  %v20183_v34 = vsub.f32 %v19920_v2, %v1629_v6 }
  0x2f   : > { %22840 = vst [vmem:[#allocation16_spill] sm:$0xff] %v20167_v9  ;;  %17152 = vmatprep.subr.bf16.mxu1 %v22736_v4  ;;  %v319_v36 = vsel %vm296_vm0, %v271_v47, 0  ;;  %v461_v35 = vsub.f32 %v20122_v17, %v22739_v32  ;;  %v22748_v2 = vand.u32 4294901760, %v20173_v41  ;;  %v272_v47 = vld [vmem:[%s19904_s26 + $0x40] sm:$0xff]  ;;  %v20216_v32 = vpack.c.bf16 %v22742_v14, %v22743_v56 }
  0x30   : > { %441 = vmatmul.mubr.f32.gmra.mrb[4].mxu0 %v440_v3  ;;  %v472_v53 = vsub.f32 %v20154_v13, %v22738_v61  ;;  %v20193_v1 = vand.u32 4294901760, %v319_v36  ;;  %v22751_v5 = vand.u32 4294901760, %v20178_v62  ;;  %v22754_v6 = vand.u32 4294901760, %v20183_v34  ;;  %v273_v13 = vld [vmem:[%s19904_s26 + $0x48] sm:$0xff] }
  0x31   : > { %446 = vmatprep.mubr.f32.mxu0 %v22744_v11  ;;  %v20202_v3 = vsub.f32 %v19941_v15, %v1632_v20  ;;  %v20210_v61 = vpack.c.bf16 %v22740_v40, %v22741_v10  ;;  %22842 = vst [vmem:[#allocation18_spill] sm:$0xff] %v20216_v32  ;;  %v20224_v15 = vsub.f32 %v19946_v16, %v1635_v21  ;;  %v22844_v20 = vmov 0.0|0.0  }
  0x32   : > { %17154 = vmatpush3.bf16.msra.mxu1 %v20140_v49  ;;  %v20219_v4 = vsub.f32 %v319_v36, %v20193_v1  ;;  %v1709_v40 = vsub.f32 %v20173_v41, %v22748_v2  ;;  %v1720_v10 = vsub.f32 %v20178_v62, %v22751_v5  ;;  %v1727_v36 = vsub.f32 %v20183_v34, %v22754_v6 }
  0x33   : > { %22841 = vst [vmem:[#allocation17_spill] sm:$0xff] %v20210_v61  ;;  %17155 = vmatprep.subr.bf16.mxu1 %v22844_v20  ;;  %v22757_v14 = vand.u32 4294901760, %v20202_v3  ;;  %v462_v56 = vand.u32 4294901760, %v461_v35  ;;  %v22760_v21 = vand.u32 4294901760, %v20224_v15  ;;  %v322_v11 = vsel %vm296_vm0, %v272_v47, 0 }
  0x34   : > { %22843 = vst [vmem:[#allocation19_spill] sm:$0xff] %v20219_v4  ;;  %452 = vmatmul.mubr.f32.gmra.mrb[6].mxu0 %v451_v54  ;;  %v22845_v2 = vmov 0.0   ;;  %v473_v17 = vand.u32 4294901760, %v472_v53  ;;  %v22846_v5 = vand.u32 4294901760, %v20167_v9  ;;  %v1721_v6 = vand.u32 4294901760, %v1720_v10 }
  0x35   : > { %457 = vmatprep.mubr.f32.mxu0 %v22845_v2  ;;  %v1734_v35 = vsub.f32 %v20202_v3, %v22757_v14  ;;  %v1728_v54 = vand.u32 4294901760, %v1727_v36  ;;  %v1741_v47 = vsub.f32 %v20224_v15, %v22760_v21  ;;  %v20252_v16 = vand.u32 4294901760, %v322_v11 }
  0x36   : > { %v483_v58 = vsub.f32 %v20167_v9, %v22846_v5  ;;  %17157 = vmatpush3.bf16.msra.mxu1 %v20210_v61  ;;  %v22847_v53 = vand.u32 4294901760, %v19962_v22  ;;  %v1710_v10 = vand.u32 4294901760, %v1709_v40  ;;  %v22848_v5 = vand.u32 4294901760, %v20219_v4 }
  0x37   : > { %17158 = vmatprep.subr.bf16.mxu1 %v22844_v20  ;;  %v22849_v36 = vand.u32 4294901760, %v19967_v23  ;;  %v325_v21 = vsel %vm296_vm0, %v273_v13, 0  ;;  %v1735_v26 = vand.u32 4294901760, %v1734_v35 }
  0x38   : > { %v20257_v44 = vsub.f32 %v19962_v22, %v22847_v53  ;;  %v20263_v14 = vsub.f32 %v20219_v4, %v22848_v5  ;;  %463 = vmatmul.mubr.f32.gmra.mrb[8].mxu0 %v462_v56  ;;  %v1742_v22 = vand.u32 4294901760, %v1741_v47  ;;  %v20273_v53 = vsub.f32 %v322_v11, %v20252_v16 }
  0x39   : > { %v20268_v9 = vsub.f32 %v19967_v23, %v22849_v36  ;;  %468 = vmatprep.mubr.f32.mxu0 %v22845_v2  ;;  %v20278_v4 = vand.u32 4294901760, %v325_v21  ;;  %v22851_v23 = vand.u32 4294901760, %v19999_v37  ;;  %v22852_v56 = vand.u32 4294901760, %v20011_v42 }
  0x3a   : > { %22850 = vst [vmem:[#allocation20_spill] sm:$0xff] %v20273_v53  ;;  %v22767_v40 = vand.u32 4294901760, %v20257_v44  ;;  %17160 = vmatpush3.bf16.msra.mxu1 %v20216_v32  ;;  %v20291_v11 = vpack.c.bf16 %v1728_v54, %v1721_v6  ;;  %v328_v5 = vsel %vm296_vm0, %v274_v55, 0  ;;  %v20307_v35 = vpack.c.bf16 %v1742_v22, %v1735_v26  ;;  %v275_v22 = vld [vmem:[%s19904_s26 + $0x58] sm:$0xff] }
  0x3b   : > { %v20283_v36 = vsub.f32 %v19999_v37, %v22851_v23  ;;  %v20288_v13 = vsub.f32 %v20011_v42, %v22852_v56  ;;  %17161 = vmatprep.subr.bf16.mxu1 %v22844_v20  ;;  %v22854_v37 = vand.u32 4294901760, %v20268_v9  ;;  %v20303_v23 = vsub.f32 %v325_v21, %v20278_v4 }
  0x3c   : > { %22853 = vst [vmem:[#allocation21_spill] sm:$0xff] %v20291_v11  ;;  %v1748_v47 = vsub.f32 %v20257_v44, %v22767_v40  ;;  %474 = vmatmul.mubr.f32.gmra.mrb[10].mxu0 %v473_v17  ;;  %v484_v56 = vand.u32 4294901760, %v483_v58  ;;  %22856 = vst [vmem:[#allocation23_spill] sm:$0xff] %v20307_v35  ;;  %v20309_v40 = vand.u32 4294901760, %v328_v5  ;;  %v22858_v55 = vand.u32 4294901760, %v20039_v52 }
  0x3d   : > { %v1755_v42 = vsub.f32 %v20268_v9, %v22854_v37  ;;  %22855 = vst [vmem:[#allocation22_spill] sm:$0xff] %v20303_v23  ;;  %v22770_v54 = vand.u32 4294901760, %v20288_v13  ;;  %479 = vmatprep.mubr.f32.mxu0 %v22845_v2  ;;  %13786 = vmatmul.mubr.f32.vlgmr.msra.gmra.mrb[0].mxu1 %v1710_v10  ;;  %v22859_v21 = vand.u32 4294901760, %v20273_v53  ;;  %v22860_v17 = vand.u32 4294901760, %v20283_v36 }
  0x3e   : > { %22857 = vst [vmem:[#allocation24_spill] sm:$0xff] %v20309_v40  ;;  %v20314_v43 = vsub.f32 %v20039_v52, %v22858_v55  ;;  %v1749_v6 = vand.u32 4294901760, %v1748_v47  ;;  %17163 = vmatpush3.bf16.msra.mxu1 %v20291_v11  ;;  %13820 = vmatprep.mubr.msk.f32.mxu1 %vm19848_vm1, %v22845_v2  ;;  %v331_v11 = vsel %vm296_vm0, %v275_v22, 0 }
  0x3f   : > { %v505_v37 = vsub.f32 %v20273_v53, %v22859_v21  ;;  %v1762_v26 = vsub.f32 %v20283_v36, %v22860_v17  ;;  %v1769_v58 = vsub.f32 %v20288_v13, %v22770_v54  ;;  %v1756_v52 = vand.u32 4294901760, %v1755_v42  ;;  %17164 = vmatprep.subr.bf16.mxu1 %v22844_v20  ;;  %v276_v53 = vld [vmem:[%s19904_s26 + $0x60] sm:$0xff] }
  0x40   : > { %v22861_v21 = vand.u32 4294901760, %v20050_v57  ;;  %v495_v17 = vand.u32 4294901760, %v20263_v14  ;;  %v20340_v54 = vsub.f32 %v328_v5, %v20309_v40  ;;  %485 = vmatmul.mubr.f32.gmra.mrb[12].mxu0 %v484_v56  ;;  %v20349_v32 = vand.u32 4294901760, %v331_v11 }
  0x41   : > { %v1763_v42 = vand.u32 4294901760, %v1762_v26  ;;  %v1770_v10 = vand.u32 4294901760, %v1769_v58  ;;  %490 = vmatprep.mubr.f32.mxu0 %v22845_v2  ;;  %v22865_v5 = vand.u32 4294901760, %v20062_v7  ;;  %v20357_v26 = vpack.c.bf16 %v1756_v52, %v1749_v6 }
  0x42   : > { %v20333_v47 = vsub.f32 %v20050_v57, %v22861_v21  ;;  %22862 = vst [vmem:[#allocation25_spill] sm:$0xff] %v20340_v54  ;;  %v506_v57 = vand.u32 4294901760, %v505_v37  ;;  %v22863_v21 = vand.u32 4294901760, %v20314_v43  ;;  %22864 = vst [vmem:[#allocation26_spill] sm:$0xff] %v20349_v32  ;;  %17166 = vmatpush3.bf16.msra.mxu1 %v20307_v35  ;;  %v22867_v58 = vand.u32 4294901760, %v20303_v23  ;;  %v277_v35 = vld [vmem:[%s19904_s26 + $0x68] sm:$0xff] }
  0x43   : > { %v20354_v56 = vsub.f32 %v20062_v7, %v22865_v5  ;;  %22866 = vst [vmem:[#allocation27_spill] sm:$0xff] %v20357_v26  ;;  %17167 = vmatprep.subr.bf16.mxu1 %v22844_v20  ;;  %v334_v52 = vsel %vm296_vm0, %v276_v53, 0  ;;  %v22869_v5 = vand.u32 4294901760, %v20097_v50 }
  0x44   : > { %v22781_v55 = vand.u32 4294901760, %v20333_v47  ;;  %v1776_v14 = vsub.f32 %v20314_v43, %v22863_v21  ;;  %v516_v22 = vsub.f32 %v20303_v23, %v22867_v58  ;;  %v22868_v21 = vand.u32 4294901760, %v20067_v8  ;;  %496 = vmatmul.mubr.f32.gmra.mrb[14].mxu0 %v495_v17 }
  0x45   : > { %v22784_v6 = vand.u32 4294901760, %v20354_v56  ;;  %v20377_v58 = vsub.f32 %v20097_v50, %v22869_v5  ;;  %v20386_v23 = vand.u32 4294901760, %v334_v52  ;;  %501 = vmatprep.mubr.f32.mxu0 %v22845_v2  ;;  %v22873_v17 = vand.u32 4294901760, %v20107_v60 }
  0x46   : > { %v1783_v37 = vsub.f32 %v20333_v47, %v22781_v55  ;;  %v20368_v61 = vsub.f32 %v20067_v8, %v22868_v21  ;;  %v20380_v55 = vpack.c.bf16 %v1770_v10, %v1763_v42  ;;  %v20383_v8 = vsub.f32 %v331_v11, %v20349_v32  ;;  %17169 = vmatpush3.bf16.msra.mxu1 %v20357_v26 }
  0x47   : > { %22872 = vst [vmem:[#allocation30_spill] sm:$0xff] %v20386_v23  ;;  %v1777_v7 = vand.u32 4294901760, %v1776_v14  ;;  %v1790_v53 = vsub.f32 %v20354_v56, %v22784_v6  ;;  %v20396_v10 = vsub.f32 %v20107_v60, %v22873_v17  ;;  %v20403_v14 = vsub.f32 %v334_v52, %v20386_v23  ;;  %17170 = vmatprep.subr.bf16.mxu1 %v22844_v20 }
  0x48   : > { %22870 = vst [vmem:[#allocation28_spill] sm:$0xff] %v20380_v55  ;;  %22871 = vst [vmem:[#allocation29_spill] sm:$0xff] %v20383_v8  ;;  %v22787_v21 = vand.u32 4294901760, %v20368_v61  ;;  %v1784_v11 = vand.u32 4294901760, %v1783_v37  ;;  %v337_v5 = vsel %vm296_vm0, %v277_v35, 0  ;;  %v517_v6 = vand.u32 4294901760, %v516_v22  ;;  %507 = vmatmul.mubr.f32.gmra.mrb[16].mxu0 %v506_v57 }
  0x49   : > { %22874 = vst [vmem:[#allocation31_spill] sm:$0xff] %v20403_v14  ;;  %v22875_v50 = vand.u32 4294901760, %v20340_v54  ;;  %v1810_v17 = vand.u32 4294901760, %v20396_v10  ;;  %v1791_v26 = vand.u32 4294901760, %v1790_v53  ;;  %v22877_v52 = vand.u32 4294901760, %v20130_v0  ;;  %v278_v22 = vld [vmem:[%s19904_s26 + $0x70] sm:$0xff]  ;;  %512 = vmatprep.mubr.f32.mxu0 %v22845_v2 }
  0x4a   : > { %v1797_v42 = vsub.f32 %v20368_v61, %v22787_v21  ;;  %v20412_v21 = vand.u32 4294901760, %v337_v5  ;;  %v22879_v37 = vand.u32 4294901760, %v20146_v39  ;;  %17172 = vmatpush3.bf16.msra.mxu1 %v20380_v55  ;;  %v20431_v32 = vpack.c.bf16 %v1784_v11, %v1777_v7 }
  0x4b   : > { %v527_v60 = vsub.f32 %v20340_v54, %v22875_v50  ;;  %v20417_v35 = vsub.f32 %v20130_v0, %v22877_v52  ;;  %v22878_v54 = vand.u32 4294901760, %v20377_v58  ;;  %v1811_v0 = vsub.f32 %v20396_v10, %v1810_v17  ;;  %v279_v50 = vld [vmem:[%s19904_s26 + $0x78] sm:$0xff]  ;;  %17173 = vmatprep.subr.bf16.mxu1 %v22844_v20  ;;  %s1621_s26 = scalar_select %p259_p4, 1, 0 }
  0x4c   : > { %22876 = vst [vmem:[#allocation32_spill] sm:$0xff] %v20412_v21  ;;  %v1798_v23 = vand.u32 4294901760, %v1797_v42  ;;  %v20428_v53 = vsub.f32 %v20146_v39, %v22879_v37  ;;  %22880 = vst [vmem:[#allocation33_spill] sm:$0xff] %v20431_v32  ;;  %v20435_v52 = vsub.f32 %v337_v5, %v20412_v21  ;;  %v340_v49 = vsel %vm296_vm0, %v278_v22, 0  ;;  %518 = vmatmul.mubr.f32.gmra.mrb[18].mxu0 %v517_v6 }
  0x4d   : > { %v1804_v57 = vsub.f32 %v20377_v58, %v22878_v54  ;;  %v1817_v42 = vand.u32 4294901760, %v20417_v35  ;;  %v528_v39 = vand.u32 4294901760, %v527_v60  ;;  %v22882_v37 = vand.u32 4294901760, %v20383_v8  ;;  %523 = vmatprep.mubr.f32.mxu0 %v22845_v2  ;;  %s1622_s7 = scvt.s32.f32 %s1621_s26 }
  0x4e   : > { %22881 = vst [vmem:[#allocation34_spill] sm:$0xff] %v20435_v52  ;;  %v1824_v54 = vand.u32 4294901760, %v20428_v53  ;;  %v20445_v11 = vand.u32 4294901760, %v340_v49  ;;  %v20448_v5 = vpack.c.bf16 %v1798_v23, %v1791_v26  ;;  %v22884_v55 = vand.u32 4294901760, %v20403_v14  ;;  %17175 = vmatpush3.bf16.msra.mxu1 %v20431_v32 }
  0x4f   : > { %v538_v7 = vsub.f32 %v20383_v8, %v22882_v37  ;;  %v1805_v40 = vand.u32 4294901760, %v1804_v57  ;;  %v343_v63 = vsel %vm296_vm0, %v279_v50, 0  ;;  %v1812_v6 = vand.u32 4294901760, %v1811_v0  ;;  %17176 = vmatprep.subr.bf16.mxu1 %v22844_v20 }
  0x50   : > { %22883 = vst [vmem:[#allocation35_spill] sm:$0xff] %v20448_v5  ;;  %v549_v21 = vsub.f32 %v20403_v14, %v22884_v55  ;;  %v1818_v22 = vsub.f32 %v20417_v35, %v1817_v42  ;;  %v1825_v37 = vsub.f32 %v20428_v53, %v1824_v54  ;;  %v17121_v23 = vpack.c.bf16 %v19971_v25, %v19955_v19 }
  0x51   : > { %v17123_v55 = vpack.c.bf16 %v19979_v29, %v19975_v27  ;;  %529 = vmatmul.mubr.f32.gmra.mrb[20].mxu0 %v528_v39  ;;  %v539_v26 = vand.u32 4294901760, %v538_v7  ;;  %v20464_v50 = vsub.f32 %v340_v49, %v20445_v11  ;;  %v20466_v57 = vand.u32 4294901760, %v343_v63 }
  0x52   : > { %534 = vmatprep.mubr.f32.mxu0 %v22845_v2  ;;  %v550_v0 = vand.u32 4294901760, %v549_v21  ;;  %17122 = vmatprep.subr.bf16.mxu0 %v17121_v23  ;;  %v20470_v60 = vpack.c.bf16 %v1812_v6, %v1805_v40  ;;  %v22885_v32 = vand.u32 4294901760, %v20435_v52  ;;  %v1819_v29 = vand.u32 4294901760, %v1818_v22 }
  0x53   : > { %17178 = vmatpush3.bf16.msra.mxu1 %v20448_v5  ;;  %v1826_v39 = vand.u32 4294901760, %v1825_v37  ;;  %v22886_v49 = vand.u32 4294901760, %v20178_v62  ;;  %v22887_v7 = vand.u32 4294901760, %v20183_v34  ;;  %v22888_v21 = vand.u32 4294901760, %v20202_v3 }
  0x54   : > { %v560_v14 = vsub.f32 %v20435_v52, %v22885_v32  ;;  %17179 = vmatprep.subr.bf16.mxu1 %v22844_v20  ;;  %v22889_v23 = vand.u32 4294901760, %v20224_v15  ;;  %v22890_v6 = vand.u32 4294901760, %v20257_v44  ;;  %v22891_v32 = vand.u32 4294901760, %v20268_v9 }
  0x55   : > { %v20480_v27 = vpack.c.bf16 %v22887_v7, %v22886_v49  ;;  %v22892_v37 = vand.u32 4294901760, %v20283_v36  ;;  %v22893_v5 = vand.u32 4294901760, %v20288_v13  ;;  %540 = vmatmul.mubr.f32.gmra.mrb[22].mxu0 %v539_v26  ;;  %v22818_v49 = vand.u32 4294901760, %v20464_v50 }
  0x56   : > { %v20486_v40 = vpack.c.bf16 %v22889_v23, %v22888_v21  ;;  %v20492_v22 = vpack.c.bf16 %v22891_v32, %v22890_v6  ;;  %v20502_v7 = vsub.f32 %v343_v63, %v20466_v57  ;;  %v22894_v21 = vand.u32 4294901760, %v20314_v43  ;;  %545 = vmatprep.mubr.f32.mxu0 %v22845_v2 }
  0x57   : > { %v20498_v52 = vpack.c.bf16 %v22893_v5, %v22892_v37  ;;  %v22895_v23 = vand.u32 4294901760, %v20333_v47  ;;  %v22897_v6 = vand.u32 4294901760, %v20354_v56  ;;  %v22898_v32 = vand.u32 4294901760, %v20368_v61  ;;  %17181 = vmatpush3.bf16.msra.mxu1 %v20470_v60 }
  0x58   : > { %v22900_v5 = vand.u32 4294901760, %v20377_v58  ;;  %v20521_v63 = vpack.c.bf16 %v1824_v54, %v1817_v42  ;;  %v20524_v37 = vpack.c.bf16 %v1826_v39, %v1819_v29  ;;  %17182 = vmatprep.subr.bf16.mxu1 %v22844_v20  ;;  %v20546_v42 = vpack.c.bf16 %v20224_v15, %v20202_v3  ;;  %v22903_v15 = vld [vmem:[#allocation12_spill] sm:$0xff] }
  0x59   : > { %v20508_v8 = vpack.c.bf16 %v22895_v23, %v22894_v21  ;;  %v20514_v25 = vpack.c.bf16 %v22898_v32, %v22897_v6  ;;  %551 = vmatmul.mubr.f32.gmra.mrb[24].mxu0 %v550_v0  ;;  %v561_v21 = vand.u32 4294901760, %v560_v14  ;;  %v571_v23 = vsub.f32 %v20464_v50, %v22818_v49  ;;  %v22913_v54 = vld [vmem:[#allocation4_spill] sm:$0xff]  ;;  %v22916_v32 = vld [vmem:[#allocation5_spill] sm:$0xff] }
  0x5a   : > { %v20519_v26 = vpack.c.bf16 %v1810_v17, %v22900_v5  ;;  %22902 = vst [vmem:[#allocation39_spill] sm:$0xff] %v20521_v63  ;;  %v22817_v6 = vand.u32 4294901760, %v20502_v7  ;;  %556 = vmatprep.mubr.f32.mxu0 %v22845_v2  ;;  %v20535_v17 = vpack.c.bf16 %v20183_v34, %v20178_v62  ;;  %v20555_v34 = vpack.c.bf16 %v20268_v9, %v20257_v44  ;;  %v22915_v39 = vld [vmem:[#allocation8_spill] sm:$0xff]  ;;  %v22917_v5 = vld [vmem:[#allocation9_spill] sm:$0xff] }
  0x5b   : > { %22896 = vst [vmem:[#allocation36_spill] sm:$0xff] %v20508_v8  ;;  %22899 = vst [vmem:[#allocation37_spill] sm:$0xff] %v20514_v25  ;;  %17184 = vmatpush3.bf16.msra.mxu1 %v20524_v37  ;;  %v572_v29 = vand.u32 4294901760, %v571_v23  ;;  %v20562_v3 = vpack.c.bf16 %v20288_v13, %v20283_v36  ;;  %v20570_v44 = vpack.c.bf16 %v20333_v47, %v20314_v43  ;;  %v22904_v36 = vld [vmem:[#allocation24_spill] sm:$0xff]  ;;  %v22905_v13 = vld [vmem:[#allocation14_spill] sm:$0xff] }
  0x5c   : > { %22901 = vst [vmem:[#allocation38_spill] sm:$0xff] %v20519_v26  ;;  %17185 = vmatprep.subr.bf16.mxu1 %v22844_v20  ;;  %v582_v14 = vsub.f32 %v20502_v7, %v22817_v6  ;;  %v20579_v9 = vpack.c.bf16 %v20368_v61, %v20354_v56  ;;  %v20587_v43 = vpack.c.bf16 %v20396_v10, %v20377_v58  ;;  %v22906_v47 = vld [vmem:[#allocation26_spill] sm:$0xff]  ;;  %v22907_v56 = vld [vmem:[#allocation17_spill] sm:$0xff] }
  0x5d   : > { %562 = vmatmul.mubr.f32.gmra.mrb[26].mxu0 %v561_v21  ;;  %v20595_v61 = vpack.c.bf16 %v20428_v53, %v20417_v35  ;;  %v22908_v58 = vld [vmem:[#allocation30_spill] sm:$0xff]  ;;  %v22910_v35 = vld [vmem:[#allocation32_spill] sm:$0xff]  ;;  %v22911_v53 = vand.u32 4294901760, %v20173_v41  ;;  %v22919_v21 = vld [vmem:[#allocation11_spill] sm:$0xff] }
  0x5e   : > { %567 = vmatprep.mubr.f32.mxu0 %v22845_v2  ;;  %13821 = vmatmul.mubr.f32.vlgmr.msra.gmra.mrb[0].mxu1 %v20161_v51  ;;  %v583_v62 = vand.u32 4294901760, %v582_v14  ;;  %v22909_v10 = vld [vmem:[#allocation18_spill] sm:$0xff]  ;;  %v22920_v23 = vld [vmem:[#allocation13_spill] sm:$0xff]  ;;  %v22922_v14 = vld [vmem:[#allocation16_spill] sm:$0xff] }
  0x5f   : > { %17187 = vmatpush3.bf16.msra.mxu1 %v20535_v17  ;;  %13855 = vmatprep.mubr.msk.f32.mxu1 %vm19848_vm1, %v22845_v2  ;;  %v22929_v6 = vld [vmem:[#allocation34_spill] sm:$0xff] }
  0x60   : > { %17188 = vmatprep.subr.bf16.mxu1 %v22844_v20 }
  0x61   : > { %573 = vmatmul.mubr.f32.gmra.mrb[28].mxu0 %v572_v29  ;;  %v22921_v29 = vld [vmem:[#allocation15_spill] sm:$0xff] }
  0x62   : > { %578 = vmatprep.mubr.f32.mxu0 %v22845_v2 }
  0x63   : > { %17190 = vmatpush3.bf16.msra.mxu1 %v20546_v42 }
  0x64   : > { %17191 = vmatprep.subr.bf16.mxu1 %v22844_v20 }
  0x65   : > { %584 = vmatmul.mubr.f32.gmra.mrb[30].mxu0 %v583_v62  ;;  %v22923_v62 = vld [vmem:[#allocation19_spill] sm:$0xff] }
  0x66   : > { %674 = vmatprep.mubr.f32.mxu0 %v22845_v2 }
  0x67   : > { %17193 = vmatpush3.bf16.msra.mxu1 %v20555_v34 }
  0x68   : > { %17194 = vmatprep.subr.bf16.mxu1 %v22844_v20 }
  0x69   : > { %676 = vmatmul.mubr.f32.vlgmr.msra.gmra.mrb[0].mxu0 %v19991_v33 }
  0x6a   : > { %17124 = vmatpush1.bf16.msra.mxu0 %v17123_v55  ;;  %681 = vmatprep.mubr.f32.mxu0 %v22845_v2  ;;  %v22914_v55 = vand.u32 4294901760, %v22913_v54  ;;  %v22926_v54 = vld [vmem:[#allocation25_spill] sm:$0xff] }
  0x6b   : > { %17196 = vmatpush3.bf16.msra.mxu1 %v20562_v3  ;;  %17126 = vmatprep.subr.bf16.mxu0 %v19969_v24 }
  0x6c   : > { %17197 = vmatprep.subr.bf16.mxu1 %v22844_v20 }
  0x6d   : > { %683 = vmatmul.mubr.f32.gmra.mrb[2].mxu0 %v20025_v46 }
  0x6e   : > { %688 = vmatprep.mubr.f32.mxu0 %v22845_v2 }
  0x6f   : > { %17199 = vmatpush3.bf16.msra.mxu1 %v20570_v44 }
  0x70   : > { %17200 = vmatprep.subr.bf16.mxu1 %v22844_v20 }
  0x71   : > { %690 = vmatmul.mubr.f32.gmra.mrb[4].mxu0 %v20071_v12 }
  0x72   : > { %695 = vmatprep.mubr.f32.mxu0 %v22845_v2 }
  0x73   : > { %17202 = vmatpush3.bf16.msra.mxu1 %v20579_v9 }
  0x74   : > { %17203 = vmatprep.subr.bf16.mxu1 %v22844_v20 }
  0x75   : > { %697 = vmatmul.mubr.f32.gmra.mrb[6].mxu0 %v20085_v38 }
  0x76   : > { %702 = vmatprep.mubr.f32.mxu0 %v22845_v2 }
  0x77   : > { %17205 = vmatpush3.bf16.msra.mxu1 %v20587_v43 }
  0x78   : > { %17206 = vmatprep.subr.bf16.mxu1 %v22844_v20 }
  0x79   : > { %704 = vmatmul.mubr.f32.gmra.mrb[8].mxu0 %v20102_v59 }
  0x7a   : > { %709 = vmatprep.mubr.f32.mxu0 %v22845_v2 }
  0x7b   : > { %17208 = vmatpush3.bf16.msra.mxu1 %v20595_v61 }
  0x7c   : > { %17209 = vmatprep.subr.bf16.mxu1 %v22844_v20 }
  0x7d   : > { %711 = vmatmul.mubr.f32.gmra.mrb[10].mxu0 %v20125_v28 }
  0x7e   : > { %716 = vmatprep.mubr.f32.mxu0 %v22845_v2  ;;  %13856 = vmatmul.mubr.f32.vlgmr.msra.gmra.mrb[0].mxu1 %v20173_v41  ;;  %v22912_v41 = vand.u32 4294901760, %v19955_v19  ;;  %v22918_v19 = vld [vmem:[#allocation10_spill] sm:$0xff] }
  0x7f   : > { %17211 = vmatpush3.bf16.msra.mxu1 %v19953_v18  ;;  %13890 = vmatprep.mubr.msk.f32.mxu1 %vm19848_vm1, %v22845_v2 }
  0x80   : > { %17212 = vmatprep.subr.bf16.mxu1 %v22844_v20  ;;  %v17129_v0 = vpack.c.bf16 %v22914_v55, %v22912_v41  ;;  %v22925_v41 = vld [vmem:[#allocation22_spill] sm:$0xff]  ;;  %v22927_v55 = vld [vmem:[#allocation29_spill] sm:$0xff] }
  0x81   : > { %718 = vmatmul.mubr.f32.gmra.mrb[12].mxu0 %v20156_v48 }
  0x82   : > { %723 = vmatprep.mubr.f32.mxu0 %v22845_v2 }
  0x83   : > { %17214 = vmatpush3.bf16.msra.mxu1 %v19985_v30 }
  0x84   : > { %17215 = vmatprep.subr.bf16.mxu1 %v22844_v20 }
  0x85   : > { %725 = vmatmul.mubr.f32.gmra.mrb[14].mxu0 %v20193_v1 }
  0x86   : > { %730 = vmatprep.mubr.f32.mxu0 %v22845_v2 }
  0x87   : > { %17217 = vmatpush3.bf16.msra.mxu1 %v20023_v45 }
  0x88   : > { %17218 = vmatprep.subr.bf16.mxu1 %v22844_v20 }
  0x89   : > { %732 = vmatmul.mubr.f32.gmra.mrb[16].mxu0 %v20252_v16 }
  0x8a   : > { %737 = vmatprep.mubr.f32.mxu0 %v22845_v2 }
  0x8b   : > { %17220 = vmatpush3.bf16.msra.mxu1 %v20083_v31 }
  0x8c   : > { %17221 = vmatprep.subr.bf16.mxu1 %v22844_v20 }
  0x8d   : > { %739 = vmatmul.mubr.f32.gmra.mrb[18].mxu0 %v20278_v4 }
  0x8e   : > { %744 = vmatprep.mubr.f32.mxu0 %v22845_v2 }
  0x8f   : > { %17223 = vmatpush3.bf16.msra.mxu1 %v22903_v15 }
  0x90   : > { %17224 = vmatprep.subr.bf16.mxu1 %v22844_v20 }
  0x91   : > { %746 = vmatmul.mubr.f32.gmra.mrb[20].mxu0 %v22904_v36 }
  0x92   : > { %751 = vmatprep.mubr.f32.mxu0 %v22845_v2 }
  0x93   : > { %17226 = vmatpush3.bf16.msra.mxu1 %v22905_v13 }
  0x94   : > { %17227 = vmatprep.subr.bf16.mxu1 %v22844_v20 }
  0x95   : > { %753 = vmatmul.mubr.f32.gmra.mrb[22].mxu0 %v22906_v47 }
  0x96   : > { %758 = vmatprep.mubr.f32.mxu0 %v22845_v2 }
  0x97   : > { %17229 = vmatpush3.bf16.msra.mxu1 %v22907_v56 }
  0x98   : > { %17230 = vmatprep.subr.bf16.mxu1 %v22844_v20 }
  0x99   : > { %760 = vmatmul.mubr.f32.gmra.mrb[24].mxu0 %v22908_v58 }
  0x9a   : > { %765 = vmatprep.mubr.f32.mxu0 %v22845_v2 }
  0x9b   : > { %17232 = vmatpush3.bf16.msra.mxu1 %v22909_v10 }
  0x9c   : > { %17233 = vmatprep.subr.bf16.mxu1 %v22844_v20 }
  0x9d   : > { %767 = vmatmul.mubr.f32.gmra.mrb[26].mxu0 %v22910_v35 }
  0x9e   : > { %772 = vmatprep.mubr.f32.mxu0 %v22845_v2  ;;  %13891 = vmatmul.mubr.f32.vlgmr.msra.gmra.mrb[0].mxu1 %v22911_v53  ;;  %v22924_v53 = vld [vmem:[#allocation20_spill] sm:$0xff] }
  0x9f   : > { %17235 = vmatpush3.bf16.msra.mxu1 %v20480_v27  ;;  %13925 = vmatprep.mubr.msk.f32.mxu1 %vm19848_vm1, %v22845_v2 }
  0xa0   : > { %17236 = vmatprep.subr.bf16.mxu1 %v22844_v20 }
  0xa1   : > { %774 = vmatmul.mubr.f32.gmra.mrb[28].mxu0 %v20445_v11 }
  0xa2   : > { %779 = vmatprep.mubr.f32.mxu0 %v22845_v2 }
  0xa3   : > { %17238 = vmatpush3.bf16.msra.mxu1 %v20486_v40 }
  0xa4   : > { %17239 = vmatprep.subr.bf16.mxu1 %v22844_v20 }
  0xa5   : > { %781 = vmatmul.mubr.f32.gmra.mrb[30].mxu0 %v20466_v57 }
  0xa6   : > { %859 = vmatprep.mubr.f32.mxu0 %v22845_v2 }
  0xa7   : > { %17241 = vmatpush3.bf16.msra.mxu1 %v20492_v22 }
  0xa8   : > { %17242 = vmatprep.subr.bf16.mxu1 %v22844_v20 }
  0xa9   : > { %862 = vmatmul.mubr.f32.vlgmr.msra.gmra.mrb[0].mxu0 %v22915_v39 }
  0xaa   : > { %17128 = vmatpush1.bf16.msra.mxu0 %v22916_v32  ;;  %867 = vmatprep.mubr.f32.mxu0 %v22845_v2 }
  0xab   : > { %17244 = vmatpush3.bf16.msra.mxu1 %v20498_v52  ;;  %17130 = vmatprep.subr.bf16.mxu0 %v17129_v0  ;;  %v22928_v0 = vld [vmem:[#allocation31_spill] sm:$0xff] }
  0xac   : > { %17245 = vmatprep.subr.bf16.mxu1 %v22844_v20 }
  0xad   : > { %870 = vmatmul.mubr.f32.gmra.mrb[2].mxu0 %v22917_v5 }
  0xae   : > { %875 = vmatprep.mubr.f32.mxu0 %v22845_v2 }
  0xaf   : > { %17247 = vmatpush3.bf16.msra.mxu1 %v20508_v8  ;;  %v22934_v8 = vand.u32 4294901760, %v22915_v39  ;;  %v22942_v39 = vand.u32 4294901760, %v22924_v53 }
  0xb0   : > { %17248 = vmatprep.subr.bf16.mxu1 %v22844_v20 }
  0xb1   : > { %878 = vmatmul.mubr.f32.gmra.mrb[4].mxu0 %v22918_v19 }
  0xb2   : > { %883 = vmatprep.mubr.f32.mxu0 %v22845_v2 }
  0xb3   : > { %17250 = vmatpush3.bf16.msra.mxu1 %v20514_v25 }
  0xb4   : > { %17251 = vmatprep.subr.bf16.mxu1 %v22844_v20 }
  0xb5   : > { %886 = vmatmul.mubr.f32.gmra.mrb[6].mxu0 %v22919_v21 }
  0xb6   : > { %891 = vmatprep.mubr.f32.mxu0 %v22845_v2 }
  0xb7   : > { %17253 = vmatpush3.bf16.msra.mxu1 %v20519_v26 }
  0xb8   : > { %17254 = vmatprep.subr.bf16.mxu1 %v22844_v20 }
  0xb9   : > { %894 = vmatmul.mubr.f32.gmra.mrb[8].mxu0 %v22920_v23 }
  0xba   : > { %899 = vmatprep.mubr.f32.mxu0 %v22845_v2 }
  0xbb   : > { %17256 = vmatpush3.bf16.msra.mxu1 %v20521_v63  ;;  %v22932_v63 = vld [vmem:[#allocation7_spill] sm:$0xff] }
  0xbc   : > { %17257 = vmatprep.subr.bf16.mxu1 %v22844_v20  ;;  %v22933_v26 = vand.u32 4294901760, %v22932_v63  ;;  %v22941_v63 = vand.u32 4294901760, %v22923_v62 }
  0xbd   : > { %902 = vmatmul.mubr.f32.gmra.mrb[10].mxu0 %v22921_v29 }
  0xbe   : > { %907 = vmatprep.mubr.f32.mxu0 %v22845_v2  ;;  %13926 = vmatmul.mubr.f32.vlgmr.msra.gmra.mrb[0].mxu1 %v20161_v51 }
  0xbf   : > { %17259 = vmatpush3.bf16.msra.mxu1 %v19953_v18  ;;  %13960 = vmatprep.mubr.msk.f32.mxu1 %vm19848_vm1, %v22845_v2 }
  0xc0   : > { %17260 = vmatprep.subr.bf16.mxu1 %v22844_v20 }
  0xc1   : > { %910 = vmatmul.mubr.f32.gmra.mrb[12].mxu0 %v22922_v14 }
  0xc2   : > { %915 = vmatprep.mubr.f32.mxu0 %v22845_v2 }
  0xc3   : > { %17262 = vmatpush3.bf16.msra.mxu1 %v19985_v30 }
  0xc4   : > { %17263 = vmatprep.subr.bf16.mxu1 %v22844_v20 }
  0xc5   : > { %918 = vmatmul.mubr.f32.gmra.mrb[14].mxu0 %v22923_v62  ;;  %v22949_v62 = vand.u32 4294901760, %v20502_v7 }
  0xc6   : > { %923 = vmatprep.mubr.f32.mxu0 %v22845_v2 }
  0xc7   : > { %17265 = vmatpush3.bf16.msra.mxu1 %v20023_v45 }
  0xc8   : > { %17266 = vmatprep.subr.bf16.mxu1 %v22844_v20 }
  0xc9   : > { %926 = vmatmul.mubr.f32.gmra.mrb[16].mxu0 %v22924_v53 }
  0xca   : > { %931 = vmatprep.mubr.f32.mxu0 %v22845_v2 }
  0xcb   : > { %17268 = vmatpush3.bf16.msra.mxu1 %v20083_v31 }
  0xcc   : > { %17269 = vmatprep.subr.bf16.mxu1 %v22844_v20 }
  0xcd   : > { %934 = vmatmul.mubr.f32.gmra.mrb[18].mxu0 %v22925_v41 }
  0xce   : > { %939 = vmatprep.mubr.f32.mxu0 %v22845_v2 }
  0xcf   : > { %17271 = vmatpush3.bf16.msra.mxu1 %v22903_v15 }
  0xd0   : > { %17272 = vmatprep.subr.bf16.mxu1 %v22844_v20 }
  0xd1   : > { %942 = vmatmul.mubr.f32.gmra.mrb[20].mxu0 %v22926_v54 }
  0xd2   : > { %947 = vmatprep.mubr.f32.mxu0 %v22845_v2 }
  0xd3   : > { %17274 = vmatpush3.bf16.msra.mxu1 %v22905_v13 }
  0xd4   : > { %17275 = vmatprep.subr.bf16.mxu1 %v22844_v20 }
  0xd5   : > { %950 = vmatmul.mubr.f32.gmra.mrb[22].mxu0 %v22927_v55 }
  0xd6   : > { %955 = vmatprep.mubr.f32.mxu0 %v22845_v2 }
  0xd7   : > { %17277 = vmatpush3.bf16.msra.mxu1 %v22907_v56 }
  0xd8   : > { %17278 = vmatprep.subr.bf16.mxu1 %v22844_v20 }
  0xd9   : > { %958 = vmatmul.mubr.f32.gmra.mrb[24].mxu0 %v22928_v0 }
  0xda   : > { %963 = vmatprep.mubr.f32.mxu0 %v22845_v2 }
  0xdb   : > { %17280 = vmatpush3.bf16.msra.mxu1 %v22909_v10 }
  0xdc   : > { %17281 = vmatprep.subr.bf16.mxu1 %v22844_v20 }
  0xdd   : > { %966 = vmatmul.mubr.f32.gmra.mrb[26].mxu0 %v22929_v6 }
  0xde   : > { %971 = vmatprep.mubr.f32.mxu0 %v22845_v2  ;;  %13961 = vmatmul.mubr.f32.vlgmr.msra.gmra.mrb[0].mxu1 %v20161_v51  ;;  %v22930_v51 = vld [vmem:[#allocation6_spill] sm:$0xff] }
  0xdf   : > { %17283 = vmatpush3.bf16.msra.mxu1 %v19953_v18  ;;  %13995 = vmatprep.mubr.msk.f32.mxu1 %vm19848_vm1, %v22845_v2  ;;  %v22931_v49 = vand.u32 4294901760, %v22930_v51  ;;  %v22935_v51 = vand.u32 4294901760, %v22917_v5  ;;  %v22943_v5 = vand.u32 4294901760, %v22925_v41 }
  0xe0   : > { %17284 = vmatprep.subr.bf16.mxu1 %v22844_v20 }
  0xe1   : > { %974 = vmatmul.mubr.f32.gmra.mrb[28].mxu0 %v20464_v50  ;;  %v17131_v25 = vpack.c.bf16 %v22933_v26, %v22931_v49  ;;  %v22939_v49 = vand.u32 4294901760, %v22921_v29  ;;  %v22940_v26 = vand.u32 4294901760, %v22922_v14  ;;  %v22947_v29 = vand.u32 4294901760, %v22929_v6 }
  0xe2   : > { %979 = vmatprep.mubr.f32.mxu0 %v22845_v2  ;;  %v22948_v14 = vand.u32 4294901760, %v20464_v50 }
  0xe3   : > { %17286 = vmatpush3.bf16.msra.mxu1 %v19985_v30 }
  0xe4   : > { %17287 = vmatprep.subr.bf16.mxu1 %v22844_v20 }
  0xe5   : > { %982 = vmatmul.mubr.f32.gmra.mrb[30].mxu0 %v20502_v7 }
  0xe6   : > { %1056 = vmatprep.mubr.f32.mxu0 %v22845_v2 }
  0xe7   : > { %17289 = vmatpush3.bf16.msra.mxu1 %v20023_v45 }
  0xe8   : > { %17290 = vmatprep.subr.bf16.mxu1 %v22844_v20 }
  0xe9   : > { %1060 = vmatmul.mubr.f32.vlgmr.msra.gmra.mrb[0].mxu0 %v22934_v8  ;;  %v22936_v8 = vand.u32 4294901760, %v22918_v19  ;;  %v22944_v19 = vand.u32 4294901760, %v22926_v54 }
  0xea   : > { %17132 = vmatpush1.bf16.msra.mxu0 %v17131_v25  ;;  %1065 = vmatprep.mubr.f32.mxu0 %v22845_v2  ;;  %v22938_v25 = vand.u32 4294901760, %v22920_v23  ;;  %v22946_v23 = vand.u32 4294901760, %v22928_v0 }
  0xeb   : > { %17134 = vmatprep.subr.bf16.mxu0 %v19969_v24  ;;  %17292 = vmatpush3.bf16.msra.mxu1 %v20083_v31  ;;  %v22937_v24 = vand.u32 4294901760, %v22919_v21  ;;  %v22945_v21 = vand.u32 4294901760, %v22927_v55 }
  0xec   : > { %17293 = vmatprep.subr.bf16.mxu1 %v22844_v20 }
  0xed   : > { %1069 = vmatmul.mubr.f32.gmra.mrb[2].mxu0 %v22935_v51 }
  0xee   : > { %1074 = vmatprep.mubr.f32.mxu0 %v22845_v2 }
  0xef   : > { %17295 = vmatpush3.bf16.msra.mxu1 %v22903_v15 }
  0xf0   : > { %17296 = vmatprep.subr.bf16.mxu1 %v22844_v20 }
  0xf1   : > { %1078 = vmatmul.mubr.f32.gmra.mrb[4].mxu0 %v22936_v8 }
  0xf2   : > { %1083 = vmatprep.mubr.f32.mxu0 %v22845_v2 }
  0xf3   : > { %17298 = vmatpush3.bf16.msra.mxu1 %v22905_v13 }
  0xf4   : > { %17299 = vmatprep.subr.bf16.mxu1 %v22844_v20 }
  0xf5   : > { %1087 = vmatmul.mubr.f32.gmra.mrb[6].mxu0 %v22937_v24 }
  0xf6   : > { %1092 = vmatprep.mubr.f32.mxu0 %v22845_v2 }
  0xf7   : > { %17301 = vmatpush3.bf16.msra.mxu1 %v22907_v56 }
  0xf8   : > { %17302 = vmatprep.subr.bf16.mxu1 %v22844_v20 }
  0xf9   : > { %1096 = vmatmul.mubr.f32.gmra.mrb[8].mxu0 %v22938_v25 }
  0xfa   : > { %1101 = vmatprep.mubr.f32.mxu0 %v22845_v2 }
  0xfb   : > { %17304 = vmatpush3.bf16.msra.mxu1 %v22909_v10 }
  0xfc   : > { %17305 = vmatprep.subr.bf16.mxu1 %v22844_v20 }
  0xfd   : > { %1105 = vmatmul.mubr.f32.gmra.mrb[10].mxu0 %v22939_v49 }
  0xfe   : > { %1110 = vmatprep.mubr.f32.mxu0 %v22845_v2 }
 0x101   : > { %1114 = vmatmul.mubr.f32.gmra.mrb[12].mxu0 %v22940_v26 }
 0x102   : > { %1119 = vmatprep.mubr.f32.mxu0 %v22845_v2 }
 0x105   : > { %1123 = vmatmul.mubr.f32.gmra.mrb[14].mxu0 %v22941_v63 }
 0x106   : > { %1128 = vmatprep.mubr.f32.mxu0 %v22845_v2 }
 0x109   : > { %1132 = vmatmul.mubr.f32.gmra.mrb[16].mxu0 %v22942_v39 }
 0x10a   : > { %1137 = vmatprep.mubr.f32.mxu0 %v22845_v2 }
 0x10d   : > { %1141 = vmatmul.mubr.f32.gmra.mrb[18].mxu0 %v22943_v5 }
 0x10e   : > { %1146 = vmatprep.mubr.f32.mxu0 %v22845_v2 }
 0x111   : > { %1150 = vmatmul.mubr.f32.gmra.mrb[20].mxu0 %v22944_v19 }
 0x112   : > { %1155 = vmatprep.mubr.f32.mxu0 %v22845_v2 }
 0x115   : > { %1159 = vmatmul.mubr.f32.gmra.mrb[22].mxu0 %v22945_v21 }
 0x116   : > { %1164 = vmatprep.mubr.f32.mxu0 %v22845_v2 }
 0x119   : > { %1168 = vmatmul.mubr.f32.gmra.mrb[24].mxu0 %v22946_v23 }
 0x11a   : > { %1173 = vmatprep.mubr.f32.mxu0 %v22845_v2 }
 0x11d   : > { %1177 = vmatmul.mubr.f32.gmra.mrb[26].mxu0 %v22947_v29 }
 0x11e   : > { %1182 = vmatprep.mubr.f32.mxu0 %v22845_v2 }
 0x121   : > { %1186 = vmatmul.mubr.f32.gmra.mrb[28].mxu0 %v22948_v14 }
 0x122   : > { %1191 = vmatprep.mubr.f32.mxu0 %v22845_v2 }
 0x125   : > { %1195 = vmatmul.mubr.f32.gmra.mrb[30].mxu0 %v22949_v62 }
 0x126   : > { %1277 = vmatprep.mubr.f32.mxu0 %v22845_v2 }
 0x129   : > { %1279 = vmatmul.mubr.f32.vlgmr.msra.gmra.mrb[0].mxu0 %v19991_v33 }
 0x12a   : > { %17136 = vmatpush1.bf16.msra.mxu0 %v22916_v32  ;;  %1284 = vmatprep.mubr.f32.mxu0 %v22845_v2 }
 0x12b   : > { %17425 = vmatprep.subr.bf16.mxu0 %v22844_v20 }
 0x12d   : > { %1286 = vmatmul.mubr.f32.gmra.mrb[2].mxu0 %v20025_v46 }
 0x12e   : > { %1291 = vmatprep.mubr.f32.mxu0 %v22845_v2 }
 0x131   : > { %1293 = vmatmul.mubr.f32.gmra.mrb[4].mxu0 %v20071_v12 }
 0x132   : > { %1298 = vmatprep.mubr.f32.mxu0 %v22845_v2 }
 0x135   : > { %1300 = vmatmul.mubr.f32.gmra.mrb[6].mxu0 %v20085_v38 }
 0x136   : > { %1305 = vmatprep.mubr.f32.mxu0 %v22845_v2 }
 0x139   : > { %1307 = vmatmul.mubr.f32.gmra.mrb[8].mxu0 %v20102_v59 }
 0x13a   : > { %1312 = vmatprep.mubr.f32.mxu0 %v22845_v2 }
 0x13d   : > { %1314 = vmatmul.mubr.f32.gmra.mrb[10].mxu0 %v20125_v28 }
 0x13e   : > { %1319 = vmatprep.mubr.f32.mxu0 %v22845_v2 }
 0x141   : > { %1321 = vmatmul.mubr.f32.gmra.mrb[12].mxu0 %v20156_v48 }
 0x142   : > { %1326 = vmatprep.mubr.f32.mxu0 %v22845_v2 }
 0x145   : > { %1328 = vmatmul.mubr.f32.gmra.mrb[14].mxu0 %v20193_v1 }
 0x146   : > { %1333 = vmatprep.mubr.f32.mxu0 %v22845_v2 }
 0x149   : > { %1335 = vmatmul.mubr.f32.gmra.mrb[16].mxu0 %v20252_v16 }
 0x14a   : > { %1340 = vmatprep.mubr.f32.mxu0 %v22845_v2 }
 0x14d   : > { %1342 = vmatmul.mubr.f32.gmra.mrb[18].mxu0 %v20278_v4 }
 0x14e   : > { %1347 = vmatprep.mubr.f32.mxu0 %v22845_v2 }
 0x151   : > { %1349 = vmatmul.mubr.f32.gmra.mrb[20].mxu0 %v22904_v36 }
 0x152   : > { %1354 = vmatprep.mubr.f32.mxu0 %v22845_v2 }
 0x155   : > { %1356 = vmatmul.mubr.f32.gmra.mrb[22].mxu0 %v22906_v47 }
 0x156   : > { %1361 = vmatprep.mubr.f32.mxu0 %v22845_v2 }
 0x159   : > { %1363 = vmatmul.mubr.f32.gmra.mrb[24].mxu0 %v22908_v58 }
 0x15a   : > { %1368 = vmatprep.mubr.f32.mxu0 %v22845_v2 }
 0x15d   : > { %1370 = vmatmul.mubr.f32.gmra.mrb[26].mxu0 %v22910_v35 }
 0x15e   : > { %1375 = vmatprep.mubr.f32.mxu0 %v22845_v2 }
 0x161   : > { %1377 = vmatmul.mubr.f32.gmra.mrb[28].mxu0 %v20445_v11 }
 0x162   : > { %1382 = vmatprep.mubr.f32.mxu0 %v22845_v2 }
 0x165   : > { %1384 = vmatmul.mubr.f32.gmra.mrb[30].mxu0 %v20466_v57 }
 0x166   : > { %1458 = vmatprep.mubr.f32.mxu0 %v22845_v2 }
 0x169   : > { %1460 = vmatmul.mubr.f32.vlgmr.msra.gmra.mrb[0].mxu0 %v19991_v33 }
 0x16a   : > { %1465 = vmatprep.mubr.f32.mxu0 %v22845_v2  ;;  %17427 = vmatpush3.bf16.msra.mxu0 %v19953_v18 }
 0x16b   : > { %17428 = vmatprep.subr.bf16.mxu0 %v22844_v20 }
 0x16d   : > { %1467 = vmatmul.mubr.f32.gmra.mrb[2].mxu0 %v20025_v46  ;;  %v286_v46 = vlaneseq }
 0x16e   : > { %1472 = vmatprep.mubr.f32.mxu0 %v22845_v2  ;;  %17430 = vmatpush3.bf16.msra.mxu0 %v19985_v30 }
 0x16f   : > { %17431 = vmatprep.subr.bf16.mxu0 %v22844_v20 }
 0x171   : > { %1474 = vmatmul.mubr.f32.gmra.mrb[4].mxu0 %v20071_v12  ;;  %v287_v12 = vshrl.u32 %v286_v46, 7 }
 0x172   : > { %1479 = vmatprep.mubr.f32.mxu0 %v22845_v2  ;;  %17433 = vmatpush3.bf16.msra.mxu0 %v20023_v45 }
 0x173   : > { %17434 = vmatprep.subr.bf16.mxu0 %v22844_v20 }
 0x175   : > { %1481 = vmatmul.mubr.f32.gmra.mrb[6].mxu0 %v20085_v38  ;;  %v288_v38 = vsub.s32 0, %v287_v12 }
 0x176   : > { %1486 = vmatprep.mubr.f32.mxu0 %v22845_v2  ;;  %17436 = vmatpush3.bf16.msra.mxu0 %v20083_v31 }
 0x177   : > { %17437 = vmatprep.subr.bf16.mxu0 %v22844_v20 }
 0x179   : > { %1488 = vmatmul.mubr.f32.gmra.mrb[8].mxu0 %v20102_v59  ;;  %v1619_v59 = vld [vmem:[%s22718_s4] sm:$0x1] }
 0x17a   : > { %1493 = vmatprep.mubr.f32.mxu0 %v22845_v2  ;;  %17439 = vmatpush3.bf16.msra.mxu0 %v22903_v15 }
 0x17b   : > { %17440 = vmatprep.subr.bf16.mxu0 %v22844_v20 }
 0x17d   : > { %1495 = vmatmul.mubr.f32.gmra.mrb[10].mxu0 %v20125_v28  ;;  %v2267_v28 = vstv %s1622_s7 }
 0x17e   : > { %1500 = vmatprep.mubr.f32.mxu0 %v22845_v2  ;;  %17442 = vmatpush3.bf16.msra.mxu0 %v22905_v13 }
 0x17f   : > { %17443 = vmatprep.subr.bf16.mxu0 %v22844_v20 }
 0x181   : > { %1502 = vmatmul.mubr.f32.gmra.mrb[12].mxu0 %v20156_v48  ;;  %v284_v48 = vld [vmem:[%s22716_s2] sm:$0x3] }
 0x182   : > { %1507 = vmatprep.mubr.f32.mxu0 %v22845_v2  ;;  %17445 = vmatpush3.bf16.msra.mxu0 %v22907_v56 }
 0x183   : > { %17446 = vmatprep.subr.bf16.mxu0 %v22844_v20 }
 0x185   : > { %1509 = vmatmul.mubr.f32.gmra.mrb[14].mxu0 %v20193_v1  ;;  %v20882_v1 = vrot.slane %v284_v48, %v288_v38 }
 0x186   : > { %1514 = vmatprep.mubr.f32.mxu0 %v22845_v2  ;;  %17448 = vmatpush3.bf16.msra.mxu0 %v22909_v10 }
 0x187   : > { %17449 = vmatprep.subr.bf16.mxu0 %v22844_v20 }
 0x189   : > { %1516 = vmatmul.mubr.f32.gmra.mrb[16].mxu0 %v20252_v16  ;;  %v2268_v16 = vmul.f32 %v2267_v28, %v1619_v59  ;;  %v22950_v28 = vld [vmem:[#allocation21_spill] sm:$0xff] }
 0x18a   : > { %1521 = vmatprep.mubr.f32.mxu0 %v22845_v2 }
 0x18b   : > { %v2273_v7 = vrot.slane %v2268_v16, %v288_v38 }
 0x18d   : > { %1523 = vmatmul.mubr.f32.gmra.mrb[18].mxu0 %v20278_v4 }
 0x18e   : > { %1528 = vmatprep.mubr.f32.mxu0 %v22845_v2 }
 0x191   : > { %1530 = vmatmul.mubr.f32.gmra.mrb[20].mxu0 %v22904_v36 }
 0x192   : > { %1535 = vmatprep.mubr.f32.mxu0 %v22845_v2 }
 0x195   : > { %1537 = vmatmul.mubr.f32.gmra.mrb[22].mxu0 %v22906_v47 }
 0x196   : > { %1542 = vmatprep.mubr.f32.mxu0 %v22845_v2 }
 0x199   : > { %1544 = vmatmul.mubr.f32.gmra.mrb[24].mxu0 %v22908_v58 }
 0x19a   : > { %1549 = vmatprep.mubr.f32.mxu0 %v22845_v2 }
 0x19d   : > { %1551 = vmatmul.mubr.f32.gmra.mrb[26].mxu0 %v22910_v35 }
 0x19e   : > { %1556 = vmatprep.mubr.f32.mxu0 %v22845_v2 }
 0x1a1   : > { %1558 = vmatmul.mubr.f32.gmra.mrb[28].mxu0 %v20445_v11  ;;  %v292_v11 = vsub.s32 1, %v287_v12 }
 0x1a2   : > { %1563 = vmatprep.mubr.f32.mxu0 %v22845_v2 }
 0x1a3   : > { %v20885_v36 = vrot.slane %v284_v48, %v292_v11 }
 0x1a5   : > { %1565 = vmatmul.mubr.f32.gmra.mrb[30].mxu0 %v20466_v57 }
 0x1a6   : > { %14205 = vmatprep.mubr.msk.f32.mxu0 %vm19848_vm1, %v22845_v2 }
 0x1b1   : > { %v2262_v4 = vpop.f32.mrb[0].mxu1 }
 0x1b2   : > { %v13962_v33 = vpop.f32.mrb[1].mxu1 }
 0x23c   : > { %v1461_v50 = vpop.f32.mrb[0].mxu0 }
 0x23d   : > { %v19441_v57 = vadd.f32 %v1461_v50, %v20882_v1  ;;  %v1463_v6 = vpop.f32.mrb[1].mxu0 }
 0x23e   : > { %v19442_v54 = vadd.f32 %v1463_v6, %v20885_v36 }
 0x23f   : > { %v2266_v47 = vadd.f32 %v19441_v57, %v2262_v4 }
 0x240   : > { %v1468_v58 = vpop.f32.mrb[2].mxu0 }
 0x241   : > { %v2275_v35 = vsub.f32 %v2266_v47, %v2273_v7  ;;  %v20888_v32 = vadd.f32 %v1468_v58, %v20882_v1  ;;  %v1470_v53 = vpop.f32.mrb[3].mxu0  ;;  %v22951_v7 = vld [vmem:[#allocation23_spill] sm:$0xff] }
 0x242   : > { %v20891_v41 = vadd.f32 %v1470_v53, %v20885_v36  ;;  %v22952_v53 = vld [vmem:[#allocation27_spill] sm:$0xff] }
 0x243   : > { %v2276_v55 = vmax.f32 %v2275_v35, 0.0 }
 0x244   : > { %v1475_v0 = vpop.f32.mrb[4].mxu0 }
 0x245   : > { %v2277_v51 = vadd.f32 %v19442_v54, %v2276_v55  ;;  %v20895_v8 = vadd.f32 %v1475_v0, %v20882_v1  ;;  %v1477_v24 = vpop.f32.mrb[5].mxu0 }
 0x246   : > { %v20898_v25 = vadd.f32 %v1477_v24, %v20885_v36  ;;  %v22953_v24 = vld [vmem:[#allocation28_spill] sm:$0xff] }
 0x247   : > { %v2278_v49 = vmax.f32 %v2277_v51, 0.0 }
 0x248   : > { %v1482_v26 = vpop.f32.mrb[6].mxu0 }
 0x249   : > { %2279 = vst [vmem:[%s19909_s29] sm:$0xff] %v2278_v49  ;;  %v20901_v63 = vand.u32 4294901760, %v2278_v49  ;;  %v20904_v39 = vadd.f32 %v1482_v26, %v20882_v1  ;;  %v1484_v5 = vpop.f32.mrb[7].mxu0 }
 0x24a   : > { %v20907_v19 = vadd.f32 %v1484_v5, %v20885_v36 }
 0x24b   : > { %v20910_v21 = vsub.f32 %v2278_v49, %v20901_v63 }
 0x24c   : > { %v1489_v23 = vpop.f32.mrb[8].mxu0 }
 0x24d   : > { %v20913_v29 = vadd.f32 %v1489_v23, %v20882_v1  ;;  %v1491_v14 = vpop.f32.mrb[9].mxu0  ;;  %v22827_v62 = vand.u32 4294901760, %v20910_v21 }
 0x24e   : > { %v20917_v4 = vadd.f32 %v1491_v14, %v20885_v36  ;;  %v22954_v14 = vld [vmem:[#allocation33_spill] sm:$0xff] }
 0x24f   : > { %v2366_v33 = vsub.f32 %v20910_v21, %v22827_v62 }
 0x250   : > { %v1496_v46 = vpop.f32.mrb[10].mxu0 }
 0x251   : > { %v20923_v12 = vadd.f32 %v1496_v46, %v20882_v1  ;;  %v1498_v38 = vpop.f32.mrb[11].mxu0  ;;  %v2367_v48 = vand.u32 4294901760, %v2366_v33 }
 0x252   : > { %v20926_v59 = vadd.f32 %v1498_v38, %v20885_v36 }
 0x253   : > { %13996 = vmatmul.mubr.f32.vlgmr.msra.gmra.mrb[2].mxu1 %v2367_v48 }
 0x254   : > { %17307 = vmatpush3.bf16.msra.mxu1 %v22950_v28  ;;  %v1503_v16 = vpop.f32.mrb[12].mxu0  ;;  %14030 = vmatprep.mubr.msk.f32.mxu1 %vm19848_vm1, %v22845_v2 }
 0x255   : > { %v20932_v11 = vadd.f32 %v1503_v16, %v20882_v1  ;;  %v1505_v50 = vpop.f32.mrb[13].mxu0  ;;  %17308 = vmatprep.subr.bf16.mxu1 %v22844_v20  ;;  %v22956_v16 = vld [vmem:[#allocation35_spill] sm:$0xff] }
 0x256   : > { %v20936_v57 = vadd.f32 %v1505_v50, %v20885_v36 }
 0x258   : > { %17310 = vmatpush3.bf16.msra.mxu1 %v22951_v7  ;;  %v1510_v6 = vpop.f32.mrb[14].mxu0 }
 0x259   : > { %v20940_v47 = vadd.f32 %v1510_v6, %v20882_v1  ;;  %v1512_v58 = vpop.f32.mrb[15].mxu0  ;;  %17311 = vmatprep.subr.bf16.mxu1 %v22844_v20 }
 0x25a   : > { %v20944_v35 = vadd.f32 %v1512_v58, %v20885_v36 }
 0x25c   : > { %17313 = vmatpush3.bf16.msra.mxu1 %v22952_v53  ;;  %v1517_v54 = vpop.f32.mrb[16].mxu0 }
 0x25d   : > { %v20948_v55 = vadd.f32 %v1517_v54, %v20882_v1  ;;  %v1519_v0 = vpop.f32.mrb[17].mxu0  ;;  %17314 = vmatprep.subr.bf16.mxu1 %v22844_v20 }
 0x25e   : > { %v20952_v51 = vadd.f32 %v1519_v0, %v20885_v36 }
 0x260   : > { %17316 = vmatpush3.bf16.msra.mxu1 %v22953_v24  ;;  %v1524_v49 = vpop.f32.mrb[18].mxu0 }
 0x261   : > { %v20956_v26 = vadd.f32 %v1524_v49, %v20882_v1  ;;  %v1526_v5 = vpop.f32.mrb[19].mxu0  ;;  %17317 = vmatprep.subr.bf16.mxu1 %v22844_v20 }
 0x262   : > { %v20960_v23 = vadd.f32 %v1526_v5, %v20885_v36 }
 0x264   : > { %17319 = vmatpush3.bf16.msra.mxu1 %v22954_v14  ;;  %v1531_v33 = vpop.f32.mrb[20].mxu0 }
 0x265   : > { %v20964_v46 = vadd.f32 %v1531_v33, %v20882_v1  ;;  %v1533_v38 = vpop.f32.mrb[21].mxu0  ;;  %17320 = vmatprep.subr.bf16.mxu1 %v22844_v20 }
 0x266   : > { %v20968_v48 = vadd.f32 %v1533_v38, %v20885_v36 }
 0x268   : > { %22955 = vst [vmem:[#allocation12_spill] sm:$0xff] %v20968_v48  ;;  %17322 = vmatpush3.bf16.msra.mxu1 %v22956_v16  ;;  %v1538_v50 = vpop.f32.mrb[22].mxu0 }
 0x269   : > { %v20972_v6 = vadd.f32 %v1538_v50, %v20882_v1  ;;  %v1540_v58 = vpop.f32.mrb[23].mxu0  ;;  %17323 = vmatprep.subr.bf16.mxu1 %v22844_v20 }
 0x26a   : > { %v20976_v54 = vadd.f32 %v1540_v58, %v20885_v36 }
 0x26b   : > { %22957 = vst [vmem:[#allocation24_spill] sm:$0xff] %v20972_v6 }
 0x26c   : > { %22958 = vst [vmem:[#allocation14_spill] sm:$0xff] %v20976_v54  ;;  %17325 = vmatpush3.bf16.msra.mxu1 %v20470_v60  ;;  %v1545_v0 = vpop.f32.mrb[24].mxu0 }
 0x26d   : > { %v20980_v49 = vadd.f32 %v1545_v0, %v20882_v1  ;;  %v1547_v5 = vpop.f32.mrb[25].mxu0  ;;  %17326 = vmatprep.subr.bf16.mxu1 %v22844_v20 }
 0x26e   : > { %v20984_v33 = vadd.f32 %v1547_v5, %v20885_v36 }
 0x26f   : > { %22959 = vst [vmem:[#allocation26_spill] sm:$0xff] %v20980_v49 }
 0x270   : > { %22960 = vst [vmem:[#allocation17_spill] sm:$0xff] %v20984_v33  ;;  %17328 = vmatpush3.bf16.msra.mxu1 %v20524_v37  ;;  %v1552_v38 = vpop.f32.mrb[26].mxu0 }
 0x271   : > { %v20988_v50 = vadd.f32 %v1552_v38, %v20882_v1  ;;  %v1554_v58 = vpop.f32.mrb[27].mxu0  ;;  %17329 = vmatprep.subr.bf16.mxu1 %v22844_v20 }
 0x272   : > { %v20992_v62 = vadd.f32 %v1554_v58, %v20885_v36 }
 0x273   : > { %22961 = vst [vmem:[#allocation30_spill] sm:$0xff] %v20988_v50  ;;  %14031 = vmatmul.mubr.f32.vlgmr.msra.gmra.mrb[2].mxu1 %v20901_v63 }
 0x274   : > { %22962 = vst [vmem:[#allocation18_spill] sm:$0xff] %v20992_v62  ;;  %17331 = vmatpush3.bf16.msra.mxu1 %v20535_v17  ;;  %v1559_v0 = vpop.f32.mrb[28].mxu0  ;;  %14065 = vmatprep.mubr.msk.f32.mxu1 %vm19848_vm1, %v22845_v2 }
 0x275   : > { %v20999_v5 = vadd.f32 %v1559_v0, %v20882_v1  ;;  %v1561_v33 = vpop.f32.mrb[29].mxu0  ;;  %17332 = vmatprep.subr.bf16.mxu1 %v22844_v20 }
 0x276   : > { %v21003_v38 = vadd.f32 %v1561_v33, %v20885_v36  ;;  %v22970_v33 = vld [vmem:[#allocation38_spill] sm:$0xff] }
 0x277   : > { %22963 = vst [vmem:[#allocation32_spill] sm:$0xff] %v20999_v5 }
 0x278   : > { %22964 = vst [vmem:[#allocation4_spill] sm:$0xff] %v21003_v38  ;;  %17334 = vmatpush3.bf16.msra.mxu1 %v20546_v42  ;;  %v1566_v58 = vpop.f32.mrb[30].mxu0 }
 0x279   : > { %v21007_v62 = vadd.f32 %v1566_v58, %v20882_v1  ;;  %v1568_v50 = vpop.f32.mrb[31].mxu0  ;;  %17335 = vmatprep.subr.bf16.mxu1 %v22844_v20  ;;  %v22967_v1 = vand.u32 4294901760, %v20910_v21 }
 0x27a   : > { %v21011_v49 = vadd.f32 %v1568_v50, %v20885_v36  ;;  %v22968_v36 = vld [vmem:[#allocation36_spill] sm:$0xff]  ;;  %v22971_v50 = vld [vmem:[#allocation39_spill] sm:$0xff] }
 0x27b   : > { %22965 = vst [vmem:[#allocation8_spill] sm:$0xff] %v21007_v62 }
 0x27c   : > { %22966 = vst [vmem:[#allocation5_spill] sm:$0xff] %v21011_v49  ;;  %17337 = vmatpush3.bf16.msra.mxu1 %v20555_v34 }
 0x27d   : > { %17338 = vmatprep.subr.bf16.mxu1 %v22844_v20 }
 0x280   : > { %17340 = vmatpush3.bf16.msra.mxu1 %v20562_v3 }
 0x281   : > { %17341 = vmatprep.subr.bf16.mxu1 %v22844_v20 }
 0x284   : > { %17343 = vmatpush3.bf16.msra.mxu1 %v20570_v44 }
 0x285   : > { %17344 = vmatprep.subr.bf16.mxu1 %v22844_v20 }
 0x288   : > { %17346 = vmatpush3.bf16.msra.mxu1 %v20579_v9 }
 0x289   : > { %17347 = vmatprep.subr.bf16.mxu1 %v22844_v20 }
 0x28c   : > { %17349 = vmatpush3.bf16.msra.mxu1 %v20587_v43 }
 0x28d   : > { %17350 = vmatprep.subr.bf16.mxu1 %v22844_v20 }
 0x290   : > { %17352 = vmatpush3.bf16.msra.mxu1 %v20595_v61 }
 0x291   : > { %17353 = vmatprep.subr.bf16.mxu1 %v22844_v20 }
 0x293   : > { %14066 = vmatmul.mubr.f32.vlgmr.msra.gmra.mrb[2].mxu1 %v20910_v21  ;;  %v22969_v21 = vld [vmem:[#allocation37_spill] sm:$0xff] }
 0x294   : > { %17355 = vmatpush3.bf16.msra.mxu1 %v19953_v18  ;;  %14100 = vmatprep.mubr.msk.f32.mxu1 %vm19848_vm1, %v22845_v2 }
 0x295   : > { %17356 = vmatprep.subr.bf16.mxu1 %v22844_v20 }
 0x298   : > { %17358 = vmatpush3.bf16.msra.mxu1 %v19985_v30 }
 0x299   : > { %17359 = vmatprep.subr.bf16.mxu1 %v22844_v20 }
 0x29c   : > { %17361 = vmatpush3.bf16.msra.mxu1 %v20023_v45 }
 0x29d   : > { %17362 = vmatprep.subr.bf16.mxu1 %v22844_v20 }
 0x2a0   : > { %17364 = vmatpush3.bf16.msra.mxu1 %v20083_v31 }
 0x2a1   : > { %17365 = vmatprep.subr.bf16.mxu1 %v22844_v20 }
 0x2a4   : > { %17367 = vmatpush3.bf16.msra.mxu1 %v22903_v15 }
 0x2a5   : > { %17368 = vmatprep.subr.bf16.mxu1 %v22844_v20 }
 0x2a8   : > { %17370 = vmatpush3.bf16.msra.mxu1 %v22905_v13 }
 0x2a9   : > { %17371 = vmatprep.subr.bf16.mxu1 %v22844_v20 }
 0x2ac   : > { %17373 = vmatpush3.bf16.msra.mxu1 %v22907_v56 }
 0x2ad   : > { %17374 = vmatprep.subr.bf16.mxu1 %v22844_v20 }
 0x2b0   : > { %17376 = vmatpush3.bf16.msra.mxu1 %v22909_v10 }
 0x2b1   : > { %17377 = vmatprep.subr.bf16.mxu1 %v22844_v20 }
 0x2b3   : > { %14101 = vmatmul.mubr.f32.vlgmr.msra.gmra.mrb[2].mxu1 %v22967_v1 }
 0x2b4   : > { %17379 = vmatpush3.bf16.msra.mxu1 %v20480_v27  ;;  %14135 = vmatprep.mubr.msk.f32.mxu1 %vm19848_vm1, %v22845_v2 }
 0x2b5   : > { %17380 = vmatprep.subr.bf16.mxu1 %v22844_v20 }
 0x2b8   : > { %17382 = vmatpush3.bf16.msra.mxu1 %v20486_v40 }
 0x2b9   : > { %17383 = vmatprep.subr.bf16.mxu1 %v22844_v20 }
 0x2bc   : > { %17385 = vmatpush3.bf16.msra.mxu1 %v20492_v22 }
 0x2bd   : > { %17386 = vmatprep.subr.bf16.mxu1 %v22844_v20 }
 0x2c0   : > { %17388 = vmatpush3.bf16.msra.mxu1 %v20498_v52 }
 0x2c1   : > { %17389 = vmatprep.subr.bf16.mxu1 %v22844_v20 }
 0x2c4   : > { %17391 = vmatpush3.bf16.msra.mxu1 %v22968_v36 }
 0x2c5   : > { %17392 = vmatprep.subr.bf16.mxu1 %v22844_v20 }
 0x2c8   : > { %17394 = vmatpush3.bf16.msra.mxu1 %v22969_v21 }
 0x2c9   : > { %17395 = vmatprep.subr.bf16.mxu1 %v22844_v20 }
 0x2cc   : > { %17397 = vmatpush3.bf16.msra.mxu1 %v22970_v33 }
 0x2cd   : > { %17398 = vmatprep.subr.bf16.mxu1 %v22844_v20 }
 0x2d0   : > { %17400 = vmatpush3.bf16.msra.mxu1 %v22971_v50 }
 0x2d1   : > { %17401 = vmatprep.subr.bf16.mxu1 %v22844_v20 }
 0x2d3   : > { %14136 = vmatmul.mubr.f32.vlgmr.msra.gmra.mrb[2].mxu1 %v20901_v63 }
 0x2d4   : > { %17403 = vmatpush3.bf16.msra.mxu1 %v19953_v18  ;;  %14170 = vmatprep.mubr.msk.f32.mxu1 %vm19848_vm1, %v22845_v2 }
 0x2d5   : > { %17404 = vmatprep.subr.bf16.mxu1 %v22844_v20 }
 0x2d8   : > { %17406 = vmatpush3.bf16.msra.mxu1 %v19985_v30 }
 0x2d9   : > { %17407 = vmatprep.subr.bf16.mxu1 %v22844_v20 }
 0x2dc   : > { %17409 = vmatpush3.bf16.msra.mxu1 %v20023_v45 }
 0x2dd   : > { %17410 = vmatprep.subr.bf16.mxu1 %v22844_v20 }
 0x2e0   : > { %17412 = vmatpush3.bf16.msra.mxu1 %v20083_v31 }
 0x2e1   : > { %17413 = vmatprep.subr.bf16.mxu1 %v22844_v20 }
 0x2e4   : > { %17415 = vmatpush3.bf16.msra.mxu1 %v22903_v15 }
 0x2e5   : > { %17416 = vmatprep.subr.bf16.mxu1 %v22844_v20 }
 0x2e8   : > { %17418 = vmatpush3.bf16.msra.mxu1 %v22905_v13 }
 0x2e9   : > { %17419 = vmatprep.subr.bf16.mxu1 %v22844_v20 }
 0x2ec   : > { %17421 = vmatpush3.bf16.msra.mxu1 %v22907_v56 }
 0x2ed   : > { %17422 = vmatprep.subr.bf16.mxu1 %v22844_v20 }
 0x2f0   : > { %17424 = vmatpush3.bf16.msra.mxu1 %v22909_v10 }
 0x2f1   : > { %17569 = vmatprep.subr.bf16.mxu1 %v22844_v20 }
 0x2f3   : > { %14171 = vmatmul.mubr.f32.vlgmr.msra.gmra.mrb[2].mxu1 %v20901_v63 }
 0x2f4   : > { %17571 = vmatpush3.bf16.msra.mxu1 %v19953_v18  ;;  %14415 = vmatprep.mubr.msk.f32.mxu1 %vm19848_vm1, %v22845_v2 }
 0x2f5   : > { %17572 = vmatprep.subr.bf16.mxu1 %v22844_v20 }
 0x2f8   : > { %17574 = vmatpush3.bf16.msra.mxu1 %v19985_v30 }
 0x2f9   : > { %17575 = vmatprep.subr.bf16.mxu1 %v22844_v20 }
 0x2fc   : > { %17577 = vmatpush3.bf16.msra.mxu1 %v20023_v45 }
 0x2fd   : > { %17578 = vmatprep.subr.bf16.mxu1 %v22844_v20 }
 0x300   : > { %17580 = vmatpush3.bf16.msra.mxu1 %v20083_v31 }
 0x301   : > { %17581 = vmatprep.subr.bf16.mxu1 %v22844_v20 }
 0x304   : > { %17583 = vmatpush3.bf16.msra.mxu1 %v22903_v15 }
 0x305   : > { %17584 = vmatprep.subr.bf16.mxu1 %v22844_v20 }
 0x308   : > { %17586 = vmatpush3.bf16.msra.mxu1 %v22905_v13 }
 0x309   : > { %17587 = vmatprep.subr.bf16.mxu1 %v22844_v20 }
 0x30c   : > { %17589 = vmatpush3.bf16.msra.mxu1 %v22907_v56 }
 0x30d   : > { %17590 = vmatprep.subr.bf16.mxu1 %v22844_v20 }
 0x310   : > { %17592 = vmatpush3.bf16.msra.mxu1 %v22909_v10 }
 0x311   : > { %17593 = vmatprep.subr.bf16.mxu1 %v22844_v20 }
 0x3c6   : > { %v2919_v63 = vpop.f32.mrb[2].mxu1 }
 0x3c7   : > { %v2923_v0 = vadd.f32 %v20888_v32, %v2919_v63  ;;  %v14172_v58 = vpop.f32.mrb[3].mxu1 }
 0x3c9   : > { %v2924_v1 = vmax.f32 %v2923_v0, 0.0 }
 0x3cb   : > { %v2925_v49 = vadd.f32 %v20891_v41, %v2924_v1 }
 0x3cd   : > { %v2926_v62 = vmax.f32 %v2925_v49, 0.0 }
 0x3cf   : > { %12104 = vst [vmem:[%s19909_s29 + $0x8] sm:$0xff] %v2926_v62  ;;  %v21105_v38 = vand.u32 4294901760, %v2926_v62 }
 0x3d1   : > { %v3013_v5 = vsub.f32 %v2926_v62, %v21105_v38 }
 0x3d3   : > { %v3014_v54 = vand.u32 4294901760, %v3013_v5 }
 0x3d5   : > { %v3015_v6 = vsub.f32 %v3013_v5, %v3014_v54 }
 0x3d7   : > { %v3016_v48 = vand.u32 4294901760, %v3015_v6 }
 0x3d9   : > { %14206 = vmatmul.mubr.f32.vlgmr.msra.gmra.mrb[32].mxu0 %v3016_v48 }
 0x3da   : > { %17451 = vmatpush3.bf16.msra.mxu0 %v22950_v28  ;;  %14240 = vmatprep.mubr.msk.f32.mxu0 %vm19848_vm1, %v22845_v2 }
 0x3db   : > { %17452 = vmatprep.subr.bf16.mxu0 %v22844_v20 }
 0x3de   : > { %17454 = vmatpush3.bf16.msra.mxu0 %v22951_v7 }
 0x3df   : > { %17455 = vmatprep.subr.bf16.mxu0 %v22844_v20 }
 0x3e2   : > { %17457 = vmatpush3.bf16.msra.mxu0 %v22952_v53 }
 0x3e3   : > { %17458 = vmatprep.subr.bf16.mxu0 %v22844_v20 }
 0x3e6   : > { %17460 = vmatpush3.bf16.msra.mxu0 %v22953_v24 }
 0x3e7   : > { %17461 = vmatprep.subr.bf16.mxu0 %v22844_v20 }
 0x3ea   : > { %17463 = vmatpush3.bf16.msra.mxu0 %v22954_v14 }
 0x3eb   : > { %17464 = vmatprep.subr.bf16.mxu0 %v22844_v20 }
 0x3ee   : > { %17466 = vmatpush3.bf16.msra.mxu0 %v22956_v16 }
 0x3ef   : > { %17467 = vmatprep.subr.bf16.mxu0 %v22844_v20 }
 0x3f2   : > { %17469 = vmatpush3.bf16.msra.mxu0 %v20470_v60 }
 0x3f3   : > { %17470 = vmatprep.subr.bf16.mxu0 %v22844_v20 }
 0x3f6   : > { %17472 = vmatpush3.bf16.msra.mxu0 %v20524_v37 }
 0x3f7   : > { %17473 = vmatprep.subr.bf16.mxu0 %v22844_v20 }
 0x3f9   : > { %14241 = vmatmul.mubr.f32.vlgmr.msra.gmra.mrb[32].mxu0 %v21105_v38 }
 0x3fa   : > { %17475 = vmatpush3.bf16.msra.mxu0 %v20535_v17  ;;  %14275 = vmatprep.mubr.msk.f32.mxu0 %vm19848_vm1, %v22845_v2 }
 0x3fb   : > { %17476 = vmatprep.subr.bf16.mxu0 %v22844_v20 }
 0x3fe   : > { %17478 = vmatpush3.bf16.msra.mxu0 %v20546_v42 }
 0x3ff   : > { %17479 = vmatprep.subr.bf16.mxu0 %v22844_v20 }
 0x402   : > { %17481 = vmatpush3.bf16.msra.mxu0 %v20555_v34 }
 0x403   : > { %17482 = vmatprep.subr.bf16.mxu0 %v22844_v20 }
 0x406   : > { %17484 = vmatpush3.bf16.msra.mxu0 %v20562_v3 }
 0x407   : > { %17485 = vmatprep.subr.bf16.mxu0 %v22844_v20 }
 0x40a   : > { %17487 = vmatpush3.bf16.msra.mxu0 %v20570_v44 }
 0x40b   : > { %17488 = vmatprep.subr.bf16.mxu0 %v22844_v20 }
 0x40e   : > { %17490 = vmatpush3.bf16.msra.mxu0 %v20579_v9 }
 0x40f   : > { %17491 = vmatprep.subr.bf16.mxu0 %v22844_v20 }
 0x412   : > { %17493 = vmatpush3.bf16.msra.mxu0 %v20587_v43 }
 0x413   : > { %17494 = vmatprep.subr.bf16.mxu0 %v22844_v20 }
 0x416   : > { %17496 = vmatpush3.bf16.msra.mxu0 %v20595_v61 }
 0x417   : > { %17497 = vmatprep.subr.bf16.mxu0 %v22844_v20 }
 0x419   : > { %14276 = vmatmul.mubr.f32.vlgmr.msra.gmra.mrb[32].mxu0 %v3013_v5 }
 0x41a   : > { %17499 = vmatpush3.bf16.msra.mxu0 %v19953_v18  ;;  %14310 = vmatprep.mubr.msk.f32.mxu0 %vm19848_vm1, %v22845_v2 }
 0x41b   : > { %17500 = vmatprep.subr.bf16.mxu0 %v22844_v20 }
 0x41e   : > { %17502 = vmatpush3.bf16.msra.mxu0 %v19985_v30 }
 0x41f   : > { %17503 = vmatprep.subr.bf16.mxu0 %v22844_v20 }
 0x422   : > { %17505 = vmatpush3.bf16.msra.mxu0 %v20023_v45 }
 0x423   : > { %17506 = vmatprep.subr.bf16.mxu0 %v22844_v20 }
 0x426   : > { %17508 = vmatpush3.bf16.msra.mxu0 %v20083_v31 }
 0x427   : > { %17509 = vmatprep.subr.bf16.mxu0 %v22844_v20 }
 0x42a   : > { %17511 = vmatpush3.bf16.msra.mxu0 %v22903_v15 }
 0x42b   : > { %17512 = vmatprep.subr.bf16.mxu0 %v22844_v20 }
 0x42e   : > { %17514 = vmatpush3.bf16.msra.mxu0 %v22905_v13 }
 0x42f   : > { %17515 = vmatprep.subr.bf16.mxu0 %v22844_v20 }
 0x432   : > { %17517 = vmatpush3.bf16.msra.mxu0 %v22907_v56 }
 0x433   : > { %17518 = vmatprep.subr.bf16.mxu0 %v22844_v20 }
 0x436   : > { %17520 = vmatpush3.bf16.msra.mxu0 %v22909_v10 }
 0x437   : > { %17521 = vmatprep.subr.bf16.mxu0 %v22844_v20 }
 0x439   : > { %14311 = vmatmul.mubr.f32.vlgmr.msra.gmra.mrb[32].mxu0 %v3014_v54 }
 0x43a   : > { %17523 = vmatpush3.bf16.msra.mxu0 %v20480_v27  ;;  %14345 = vmatprep.mubr.msk.f32.mxu0 %vm19848_vm1, %v22845_v2 }
 0x43b   : > { %17524 = vmatprep.subr.bf16.mxu0 %v22844_v20 }
 0x43e   : > { %17526 = vmatpush3.bf16.msra.mxu0 %v20486_v40 }
 0x43f   : > { %17527 = vmatprep.subr.bf16.mxu0 %v22844_v20 }
 0x442   : > { %17529 = vmatpush3.bf16.msra.mxu0 %v20492_v22 }
 0x443   : > { %17530 = vmatprep.subr.bf16.mxu0 %v22844_v20 }
 0x446   : > { %17532 = vmatpush3.bf16.msra.mxu0 %v20498_v52 }
 0x447   : > { %17533 = vmatprep.subr.bf16.mxu0 %v22844_v20 }
 0x44a   : > { %17535 = vmatpush3.bf16.msra.mxu0 %v22968_v36 }
 0x44b   : > { %17536 = vmatprep.subr.bf16.mxu0 %v22844_v20 }
 0x44e   : > { %17538 = vmatpush3.bf16.msra.mxu0 %v22969_v21 }
 0x44f   : > { %17539 = vmatprep.subr.bf16.mxu0 %v22844_v20 }
 0x452   : > { %17541 = vmatpush3.bf16.msra.mxu0 %v22970_v33 }
 0x453   : > { %17542 = vmatprep.subr.bf16.mxu0 %v22844_v20 }
 0x456   : > { %17544 = vmatpush3.bf16.msra.mxu0 %v22971_v50 }
 0x457   : > { %17545 = vmatprep.subr.bf16.mxu0 %v22844_v20 }
 0x459   : > { %14346 = vmatmul.mubr.f32.vlgmr.msra.gmra.mrb[32].mxu0 %v21105_v38 }
 0x45a   : > { %17547 = vmatpush3.bf16.msra.mxu0 %v19953_v18  ;;  %14380 = vmatprep.mubr.msk.f32.mxu0 %vm19848_vm1, %v22845_v2 }
 0x45b   : > { %17548 = vmatprep.subr.bf16.mxu0 %v22844_v20 }
 0x45e   : > { %17550 = vmatpush3.bf16.msra.mxu0 %v19985_v30 }
 0x45f   : > { %17551 = vmatprep.subr.bf16.mxu0 %v22844_v20 }
 0x462   : > { %17553 = vmatpush3.bf16.msra.mxu0 %v20023_v45 }
 0x463   : > { %17554 = vmatprep.subr.bf16.mxu0 %v22844_v20 }
 0x466   : > { %17556 = vmatpush3.bf16.msra.mxu0 %v20083_v31 }
 0x467   : > { %17557 = vmatprep.subr.bf16.mxu0 %v22844_v20 }
 0x46a   : > { %17559 = vmatpush3.bf16.msra.mxu0 %v22903_v15 }
 0x46b   : > { %17560 = vmatprep.subr.bf16.mxu0 %v22844_v20 }
 0x46e   : > { %17562 = vmatpush3.bf16.msra.mxu0 %v22905_v13 }
 0x46f   : > { %17563 = vmatprep.subr.bf16.mxu0 %v22844_v20 }
 0x472   : > { %17565 = vmatpush3.bf16.msra.mxu0 %v22907_v56 }
 0x473   : > { %17566 = vmatprep.subr.bf16.mxu0 %v22844_v20 }
 0x476   : > { %17568 = vmatpush3.bf16.msra.mxu0 %v22909_v10 }
 0x477   : > { %17713 = vmatprep.subr.bf16.mxu0 %v22844_v20 }
 0x479   : > { %14381 = vmatmul.mubr.f32.vlgmr.msra.gmra.mrb[32].mxu0 %v21105_v38 }
 0x47a   : > { %17715 = vmatpush3.bf16.msra.mxu0 %v19953_v18  ;;  %14625 = vmatprep.mubr.msk.f32.mxu0 %vm19848_vm1, %v22845_v2 }
 0x47b   : > { %17716 = vmatprep.subr.bf16.mxu0 %v22844_v20 }
 0x47e   : > { %17718 = vmatpush3.bf16.msra.mxu0 %v19985_v30 }
 0x47f   : > { %17719 = vmatprep.subr.bf16.mxu0 %v22844_v20 }
 0x482   : > { %17721 = vmatpush3.bf16.msra.mxu0 %v20023_v45 }
 0x483   : > { %17722 = vmatprep.subr.bf16.mxu0 %v22844_v20 }
 0x486   : > { %17724 = vmatpush3.bf16.msra.mxu0 %v20083_v31 }
 0x487   : > { %17725 = vmatprep.subr.bf16.mxu0 %v22844_v20 }
 0x48a   : > { %17727 = vmatpush3.bf16.msra.mxu0 %v22903_v15 }
 0x48b   : > { %17728 = vmatprep.subr.bf16.mxu0 %v22844_v20 }
 0x48e   : > { %17730 = vmatpush3.bf16.msra.mxu0 %v22905_v13 }
 0x48f   : > { %17731 = vmatprep.subr.bf16.mxu0 %v22844_v20 }
 0x492   : > { %17733 = vmatpush3.bf16.msra.mxu0 %v22907_v56 }
 0x493   : > { %17734 = vmatprep.subr.bf16.mxu0 %v22844_v20 }
 0x496   : > { %17736 = vmatpush3.bf16.msra.mxu0 %v22909_v10 }
 0x497   : > { %17737 = vmatprep.subr.bf16.mxu0 %v22844_v20 }
 0x54c   : > { %v3568_v32 = vpop.f32.mrb[32].mxu0 }
 0x54d   : > { %v3572_v41 = vadd.f32 %v20895_v8, %v3568_v32  ;;  %v14382_v62 = vpop.f32.mrb[33].mxu0 }
 0x54f   : > { %v3573_v48 = vmax.f32 %v3572_v41, 0.0 }
 0x551   : > { %v3574_v6 = vadd.f32 %v20898_v25, %v3573_v48 }
 0x553   : > { %v3575_v54 = vmax.f32 %v3574_v6, 0.0 }
 0x555   : > { %12105 = vst [vmem:[%s19909_s29 + $0x10] sm:$0xff] %v3575_v54  ;;  %v21222_v49 = vand.u32 4294901760, %v3575_v54 }
 0x557   : > { %v3662_v5 = vsub.f32 %v3575_v54, %v21222_v49 }
 0x559   : > { %v3663_v38 = vand.u32 4294901760, %v3662_v5 }
 0x55b   : > { %v3664_v63 = vsub.f32 %v3662_v5, %v3663_v38 }
 0x55d   : > { %v3665_v0 = vand.u32 4294901760, %v3664_v63 }
 0x55f   : > { %14416 = vmatmul.mubr.f32.vlgmr.msra.gmra.mrb[4].mxu1 %v3665_v0 }
 0x560   : > { %17595 = vmatpush3.bf16.msra.mxu1 %v22950_v28  ;;  %14450 = vmatprep.mubr.msk.f32.mxu1 %vm19848_vm1, %v22845_v2 }
 0x561   : > { %17596 = vmatprep.subr.bf16.mxu1 %v22844_v20 }
 0x564   : > { %17598 = vmatpush3.bf16.msra.mxu1 %v22951_v7 }
 0x565   : > { %17599 = vmatprep.subr.bf16.mxu1 %v22844_v20 }
 0x568   : > { %17601 = vmatpush3.bf16.msra.mxu1 %v22952_v53 }
 0x569   : > { %17602 = vmatprep.subr.bf16.mxu1 %v22844_v20 }
 0x56c   : > { %17604 = vmatpush3.bf16.msra.mxu1 %v22953_v24 }
 0x56d   : > { %17605 = vmatprep.subr.bf16.mxu1 %v22844_v20 }
 0x570   : > { %17607 = vmatpush3.bf16.msra.mxu1 %v22954_v14 }
 0x571   : > { %17608 = vmatprep.subr.bf16.mxu1 %v22844_v20 }
 0x574   : > { %17610 = vmatpush3.bf16.msra.mxu1 %v22956_v16 }
 0x575   : > { %17611 = vmatprep.subr.bf16.mxu1 %v22844_v20 }
 0x578   : > { %17613 = vmatpush3.bf16.msra.mxu1 %v20470_v60 }
 0x579   : > { %17614 = vmatprep.subr.bf16.mxu1 %v22844_v20 }
 0x57c   : > { %17616 = vmatpush3.bf16.msra.mxu1 %v20524_v37 }
 0x57d   : > { %17617 = vmatprep.subr.bf16.mxu1 %v22844_v20 }
 0x57f   : > { %14451 = vmatmul.mubr.f32.vlgmr.msra.gmra.mrb[4].mxu1 %v21222_v49 }
 0x580   : > { %17619 = vmatpush3.bf16.msra.mxu1 %v20535_v17  ;;  %14485 = vmatprep.mubr.msk.f32.mxu1 %vm19848_vm1, %v22845_v2 }
 0x581   : > { %17620 = vmatprep.subr.bf16.mxu1 %v22844_v20 }
 0x584   : > { %17622 = vmatpush3.bf16.msra.mxu1 %v20546_v42 }
 0x585   : > { %17623 = vmatprep.subr.bf16.mxu1 %v22844_v20 }
 0x588   : > { %17625 = vmatpush3.bf16.msra.mxu1 %v20555_v34 }
 0x589   : > { %17626 = vmatprep.subr.bf16.mxu1 %v22844_v20 }
 0x58c   : > { %17628 = vmatpush3.bf16.msra.mxu1 %v20562_v3 }
 0x58d   : > { %17629 = vmatprep.subr.bf16.mxu1 %v22844_v20 }
 0x590   : > { %17631 = vmatpush3.bf16.msra.mxu1 %v20570_v44 }
 0x591   : > { %17632 = vmatprep.subr.bf16.mxu1 %v22844_v20 }
 0x594   : > { %17634 = vmatpush3.bf16.msra.mxu1 %v20579_v9 }
 0x595   : > { %17635 = vmatprep.subr.bf16.mxu1 %v22844_v20 }
 0x598   : > { %17637 = vmatpush3.bf16.msra.mxu1 %v20587_v43 }
 0x599   : > { %17638 = vmatprep.subr.bf16.mxu1 %v22844_v20 }
 0x59c   : > { %17640 = vmatpush3.bf16.msra.mxu1 %v20595_v61 }
 0x59d   : > { %17641 = vmatprep.subr.bf16.mxu1 %v22844_v20 }
 0x59f   : > { %14486 = vmatmul.mubr.f32.vlgmr.msra.gmra.mrb[4].mxu1 %v3662_v5 }
 0x5a0   : > { %17643 = vmatpush3.bf16.msra.mxu1 %v19953_v18  ;;  %14520 = vmatprep.mubr.msk.f32.mxu1 %vm19848_vm1, %v22845_v2 }
 0x5a1   : > { %17644 = vmatprep.subr.bf16.mxu1 %v22844_v20 }
 0x5a4   : > { %17646 = vmatpush3.bf16.msra.mxu1 %v19985_v30 }
 0x5a5   : > { %17647 = vmatprep.subr.bf16.mxu1 %v22844_v20 }
 0x5a8   : > { %17649 = vmatpush3.bf16.msra.mxu1 %v20023_v45 }
 0x5a9   : > { %17650 = vmatprep.subr.bf16.mxu1 %v22844_v20 }
 0x5ac   : > { %17652 = vmatpush3.bf16.msra.mxu1 %v20083_v31 }
 0x5ad   : > { %17653 = vmatprep.subr.bf16.mxu1 %v22844_v20 }
 0x5b0   : > { %17655 = vmatpush3.bf16.msra.mxu1 %v22903_v15 }
 0x5b1   : > { %17656 = vmatprep.subr.bf16.mxu1 %v22844_v20 }
 0x5b4   : > { %17658 = vmatpush3.bf16.msra.mxu1 %v22905_v13 }
 0x5b5   : > { %17659 = vmatprep.subr.bf16.mxu1 %v22844_v20 }
 0x5b8   : > { %17661 = vmatpush3.bf16.msra.mxu1 %v22907_v56 }
 0x5b9   : > { %17662 = vmatprep.subr.bf16.mxu1 %v22844_v20 }
 0x5bc   : > { %17664 = vmatpush3.bf16.msra.mxu1 %v22909_v10 }
 0x5bd   : > { %17665 = vmatprep.subr.bf16.mxu1 %v22844_v20 }
 0x5bf   : > { %14521 = vmatmul.mubr.f32.vlgmr.msra.gmra.mrb[4].mxu1 %v3663_v38 }
 0x5c0   : > { %17667 = vmatpush3.bf16.msra.mxu1 %v20480_v27  ;;  %14555 = vmatprep.mubr.msk.f32.mxu1 %vm19848_vm1, %v22845_v2 }
 0x5c1   : > { %17668 = vmatprep.subr.bf16.mxu1 %v22844_v20 }
 0x5c4   : > { %17670 = vmatpush3.bf16.msra.mxu1 %v20486_v40 }
 0x5c5   : > { %17671 = vmatprep.subr.bf16.mxu1 %v22844_v20 }
 0x5c8   : > { %17673 = vmatpush3.bf16.msra.mxu1 %v20492_v22 }
 0x5c9   : > { %17674 = vmatprep.subr.bf16.mxu1 %v22844_v20 }
 0x5cc   : > { %17676 = vmatpush3.bf16.msra.mxu1 %v20498_v52 }
 0x5cd   : > { %17677 = vmatprep.subr.bf16.mxu1 %v22844_v20 }
 0x5d0   : > { %17679 = vmatpush3.bf16.msra.mxu1 %v22968_v36 }
 0x5d1   : > { %17680 = vmatprep.subr.bf16.mxu1 %v22844_v20 }
 0x5d4   : > { %17682 = vmatpush3.bf16.msra.mxu1 %v22969_v21 }
 0x5d5   : > { %17683 = vmatprep.subr.bf16.mxu1 %v22844_v20 }
 0x5d8   : > { %17685 = vmatpush3.bf16.msra.mxu1 %v22970_v33 }
 0x5d9   : > { %17686 = vmatprep.subr.bf16.mxu1 %v22844_v20 }
 0x5dc   : > { %17688 = vmatpush3.bf16.msra.mxu1 %v22971_v50 }
 0x5dd   : > { %17689 = vmatprep.subr.bf16.mxu1 %v22844_v20 }
 0x5df   : > { %14556 = vmatmul.mubr.f32.vlgmr.msra.gmra.mrb[4].mxu1 %v21222_v49 }
 0x5e0   : > { %17691 = vmatpush3.bf16.msra.mxu1 %v19953_v18  ;;  %14590 = vmatprep.mubr.msk.f32.mxu1 %vm19848_vm1, %v22845_v2 }
 0x5e1   : > { %17692 = vmatprep.subr.bf16.mxu1 %v22844_v20 }
 0x5e4   : > { %17694 = vmatpush3.bf16.msra.mxu1 %v19985_v30 }
 0x5e5   : > { %17695 = vmatprep.subr.bf16.mxu1 %v22844_v20 }
 0x5e8   : > { %17697 = vmatpush3.bf16.msra.mxu1 %v20023_v45 }
 0x5e9   : > { %17698 = vmatprep.subr.bf16.mxu1 %v22844_v20 }
 0x5ec   : > { %17700 = vmatpush3.bf16.msra.mxu1 %v20083_v31 }
 0x5ed   : > { %17701 = vmatprep.subr.bf16.mxu1 %v22844_v20 }
 0x5f0   : > { %17703 = vmatpush3.bf16.msra.mxu1 %v22903_v15 }
 0x5f1   : > { %17704 = vmatprep.subr.bf16.mxu1 %v22844_v20 }
 0x5f4   : > { %17706 = vmatpush3.bf16.msra.mxu1 %v22905_v13 }
 0x5f5   : > { %17707 = vmatprep.subr.bf16.mxu1 %v22844_v20 }
 0x5f8   : > { %17709 = vmatpush3.bf16.msra.mxu1 %v22907_v56 }
 0x5f9   : > { %17710 = vmatprep.subr.bf16.mxu1 %v22844_v20 }
 0x5fc   : > { %17712 = vmatpush3.bf16.msra.mxu1 %v22909_v10 }
 0x5fd   : > { %17857 = vmatprep.subr.bf16.mxu1 %v22844_v20 }
 0x5ff   : > { %14591 = vmatmul.mubr.f32.vlgmr.msra.gmra.mrb[4].mxu1 %v21222_v49 }
 0x600   : > { %17859 = vmatpush3.bf16.msra.mxu1 %v19953_v18  ;;  %14835 = vmatprep.mubr.msk.f32.mxu1 %vm19848_vm1, %v22845_v2 }
 0x601   : > { %17860 = vmatprep.subr.bf16.mxu1 %v22844_v20 }
 0x604   : > { %17862 = vmatpush3.bf16.msra.mxu1 %v19985_v30 }
 0x605   : > { %17863 = vmatprep.subr.bf16.mxu1 %v22844_v20 }
 0x608   : > { %17865 = vmatpush3.bf16.msra.mxu1 %v20023_v45 }
 0x609   : > { %17866 = vmatprep.subr.bf16.mxu1 %v22844_v20 }
 0x60c   : > { %17868 = vmatpush3.bf16.msra.mxu1 %v20083_v31 }
 0x60d   : > { %17869 = vmatprep.subr.bf16.mxu1 %v22844_v20 }
 0x610   : > { %17871 = vmatpush3.bf16.msra.mxu1 %v22903_v15 }
 0x611   : > { %17872 = vmatprep.subr.bf16.mxu1 %v22844_v20 }
 0x614   : > { %17874 = vmatpush3.bf16.msra.mxu1 %v22905_v13 }
 0x615   : > { %17875 = vmatprep.subr.bf16.mxu1 %v22844_v20 }
 0x618   : > { %17877 = vmatpush3.bf16.msra.mxu1 %v22907_v56 }
 0x619   : > { %17878 = vmatprep.subr.bf16.mxu1 %v22844_v20 }
 0x61c   : > { %17880 = vmatpush3.bf16.msra.mxu1 %v22909_v10 }
 0x61d   : > { %17881 = vmatprep.subr.bf16.mxu1 %v22844_v20 }
 0x6d2   : > { %v4217_v8 = vpop.f32.mrb[4].mxu1 }
 0x6d3   : > { %v4221_v25 = vadd.f32 %v20904_v39, %v4217_v8  ;;  %v14592_v58 = vpop.f32.mrb[5].mxu1 }
 0x6d5   : > { %v4222_v1 = vmax.f32 %v4221_v25, 0.0 }
 0x6d7   : > { %v4223_v32 = vadd.f32 %v20907_v19, %v4222_v1 }
 0x6d9   : > { %v4224_v41 = vmax.f32 %v4223_v32, 0.0 }
 0x6db   : > { %12106 = vst [vmem:[%s19909_s29 + $0x18] sm:$0xff] %v4224_v41  ;;  %v21339_v62 = vand.u32 4294901760, %v4224_v41 }
 0x6dd   : > { %v4311_v48 = vsub.f32 %v4224_v41, %v21339_v62 }
 0x6df   : > { %v4312_v6 = vand.u32 4294901760, %v4311_v48 }
 0x6e1   : > { %v4313_v54 = vsub.f32 %v4311_v48, %v4312_v6 }
 0x6e3   : > { %v4314_v49 = vand.u32 4294901760, %v4313_v54 }
 0x6e5   : > { %14626 = vmatmul.mubr.f32.vlgmr.msra.gmra.mrb[34].mxu0 %v4314_v49 }
 0x6e6   : > { %17739 = vmatpush3.bf16.msra.mxu0 %v22950_v28  ;;  %14660 = vmatprep.mubr.msk.f32.mxu0 %vm19848_vm1, %v22845_v2 }
 0x6e7   : > { %17740 = vmatprep.subr.bf16.mxu0 %v22844_v20 }
 0x6ea   : > { %17742 = vmatpush3.bf16.msra.mxu0 %v22951_v7 }
 0x6eb   : > { %17743 = vmatprep.subr.bf16.mxu0 %v22844_v20 }
 0x6ee   : > { %17745 = vmatpush3.bf16.msra.mxu0 %v22952_v53 }
 0x6ef   : > { %17746 = vmatprep.subr.bf16.mxu0 %v22844_v20 }
 0x6f2   : > { %17748 = vmatpush3.bf16.msra.mxu0 %v22953_v24 }
 0x6f3   : > { %17749 = vmatprep.subr.bf16.mxu0 %v22844_v20 }
 0x6f6   : > { %17751 = vmatpush3.bf16.msra.mxu0 %v22954_v14 }
 0x6f7   : > { %17752 = vmatprep.subr.bf16.mxu0 %v22844_v20 }
 0x6fa   : > { %17754 = vmatpush3.bf16.msra.mxu0 %v22956_v16 }
 0x6fb   : > { %17755 = vmatprep.subr.bf16.mxu0 %v22844_v20 }
 0x6fe   : > { %17757 = vmatpush3.bf16.msra.mxu0 %v20470_v60 }
 0x6ff   : > { %17758 = vmatprep.subr.bf16.mxu0 %v22844_v20 }
 0x702   : > { %17760 = vmatpush3.bf16.msra.mxu0 %v20524_v37 }
 0x703   : > { %17761 = vmatprep.subr.bf16.mxu0 %v22844_v20 }
 0x705   : > { %14661 = vmatmul.mubr.f32.vlgmr.msra.gmra.mrb[34].mxu0 %v21339_v62 }
 0x706   : > { %17763 = vmatpush3.bf16.msra.mxu0 %v20535_v17  ;;  %14695 = vmatprep.mubr.msk.f32.mxu0 %vm19848_vm1, %v22845_v2 }
 0x707   : > { %17764 = vmatprep.subr.bf16.mxu0 %v22844_v20 }
 0x70a   : > { %17766 = vmatpush3.bf16.msra.mxu0 %v20546_v42 }
 0x70b   : > { %17767 = vmatprep.subr.bf16.mxu0 %v22844_v20 }
 0x70e   : > { %17769 = vmatpush3.bf16.msra.mxu0 %v20555_v34 }
 0x70f   : > { %17770 = vmatprep.subr.bf16.mxu0 %v22844_v20 }
 0x712   : > { %17772 = vmatpush3.bf16.msra.mxu0 %v20562_v3 }
 0x713   : > { %17773 = vmatprep.subr.bf16.mxu0 %v22844_v20 }
 0x716   : > { %17775 = vmatpush3.bf16.msra.mxu0 %v20570_v44 }
 0x717   : > { %17776 = vmatprep.subr.bf16.mxu0 %v22844_v20 }
 0x71a   : > { %17778 = vmatpush3.bf16.msra.mxu0 %v20579_v9 }
 0x71b   : > { %17779 = vmatprep.subr.bf16.mxu0 %v22844_v20 }
 0x71e   : > { %17781 = vmatpush3.bf16.msra.mxu0 %v20587_v43 }
 0x71f   : > { %17782 = vmatprep.subr.bf16.mxu0 %v22844_v20 }
 0x722   : > { %17784 = vmatpush3.bf16.msra.mxu0 %v20595_v61 }
 0x723   : > { %17785 = vmatprep.subr.bf16.mxu0 %v22844_v20 }
 0x725   : > { %14696 = vmatmul.mubr.f32.vlgmr.msra.gmra.mrb[34].mxu0 %v4311_v48 }
 0x726   : > { %17787 = vmatpush3.bf16.msra.mxu0 %v19953_v18  ;;  %14730 = vmatprep.mubr.msk.f32.mxu0 %vm19848_vm1, %v22845_v2 }
 0x727   : > { %17788 = vmatprep.subr.bf16.mxu0 %v22844_v20 }
 0x72a   : > { %17790 = vmatpush3.bf16.msra.mxu0 %v19985_v30 }
 0x72b   : > { %17791 = vmatprep.subr.bf16.mxu0 %v22844_v20 }
 0x72e   : > { %17793 = vmatpush3.bf16.msra.mxu0 %v20023_v45 }
 0x72f   : > { %17794 = vmatprep.subr.bf16.mxu0 %v22844_v20 }
 0x732   : > { %17796 = vmatpush3.bf16.msra.mxu0 %v20083_v31 }
 0x733   : > { %17797 = vmatprep.subr.bf16.mxu0 %v22844_v20 }
 0x736   : > { %17799 = vmatpush3.bf16.msra.mxu0 %v22903_v15 }
 0x737   : > { %17800 = vmatprep.subr.bf16.mxu0 %v22844_v20 }
 0x73a   : > { %17802 = vmatpush3.bf16.msra.mxu0 %v22905_v13 }
 0x73b   : > { %17803 = vmatprep.subr.bf16.mxu0 %v22844_v20 }
 0x73e   : > { %17805 = vmatpush3.bf16.msra.mxu0 %v22907_v56 }
 0x73f   : > { %17806 = vmatprep.subr.bf16.mxu0 %v22844_v20 }
 0x742   : > { %17808 = vmatpush3.bf16.msra.mxu0 %v22909_v10 }
 0x743   : > { %17809 = vmatprep.subr.bf16.mxu0 %v22844_v20 }
 0x745   : > { %14731 = vmatmul.mubr.f32.vlgmr.msra.gmra.mrb[34].mxu0 %v4312_v6 }
 0x746   : > { %17811 = vmatpush3.bf16.msra.mxu0 %v20480_v27  ;;  %14765 = vmatprep.mubr.msk.f32.mxu0 %vm19848_vm1, %v22845_v2 }
 0x747   : > { %17812 = vmatprep.subr.bf16.mxu0 %v22844_v20 }
 0x74a   : > { %17814 = vmatpush3.bf16.msra.mxu0 %v20486_v40 }
 0x74b   : > { %17815 = vmatprep.subr.bf16.mxu0 %v22844_v20 }
 0x74e   : > { %17817 = vmatpush3.bf16.msra.mxu0 %v20492_v22 }
 0x74f   : > { %17818 = vmatprep.subr.bf16.mxu0 %v22844_v20 }
 0x752   : > { %17820 = vmatpush3.bf16.msra.mxu0 %v20498_v52 }
 0x753   : > { %17821 = vmatprep.subr.bf16.mxu0 %v22844_v20 }
 0x756   : > { %17823 = vmatpush3.bf16.msra.mxu0 %v22968_v36 }
 0x757   : > { %17824 = vmatprep.subr.bf16.mxu0 %v22844_v20 }
 0x75a   : > { %17826 = vmatpush3.bf16.msra.mxu0 %v22969_v21 }
 0x75b   : > { %17827 = vmatprep.subr.bf16.mxu0 %v22844_v20 }
 0x75e   : > { %17829 = vmatpush3.bf16.msra.mxu0 %v22970_v33 }
 0x75f   : > { %17830 = vmatprep.subr.bf16.mxu0 %v22844_v20 }
 0x762   : > { %17832 = vmatpush3.bf16.msra.mxu0 %v22971_v50 }
 0x763   : > { %17833 = vmatprep.subr.bf16.mxu0 %v22844_v20 }
 0x765   : > { %14766 = vmatmul.mubr.f32.vlgmr.msra.gmra.mrb[34].mxu0 %v21339_v62 }
 0x766   : > { %17835 = vmatpush3.bf16.msra.mxu0 %v19953_v18  ;;  %14800 = vmatprep.mubr.msk.f32.mxu0 %vm19848_vm1, %v22845_v2 }
 0x767   : > { %17836 = vmatprep.subr.bf16.mxu0 %v22844_v20 }
 0x76a   : > { %17838 = vmatpush3.bf16.msra.mxu0 %v19985_v30 }
 0x76b   : > { %17839 = vmatprep.subr.bf16.mxu0 %v22844_v20 }
 0x76e   : > { %17841 = vmatpush3.bf16.msra.mxu0 %v20023_v45 }
 0x76f   : > { %17842 = vmatprep.subr.bf16.mxu0 %v22844_v20 }
 0x772   : > { %17844 = vmatpush3.bf16.msra.mxu0 %v20083_v31 }
 0x773   : > { %17845 = vmatprep.subr.bf16.mxu0 %v22844_v20 }
 0x776   : > { %17847 = vmatpush3.bf16.msra.mxu0 %v22903_v15 }
 0x777   : > { %17848 = vmatprep.subr.bf16.mxu0 %v22844_v20 }
 0x77a   : > { %17850 = vmatpush3.bf16.msra.mxu0 %v22905_v13 }
 0x77b   : > { %17851 = vmatprep.subr.bf16.mxu0 %v22844_v20 }
 0x77e   : > { %17853 = vmatpush3.bf16.msra.mxu0 %v22907_v56 }
 0x77f   : > { %17854 = vmatprep.subr.bf16.mxu0 %v22844_v20 }
 0x782   : > { %17856 = vmatpush3.bf16.msra.mxu0 %v22909_v10 }
 0x783   : > { %18001 = vmatprep.subr.bf16.mxu0 %v22844_v20 }
 0x785   : > { %14801 = vmatmul.mubr.f32.vlgmr.msra.gmra.mrb[34].mxu0 %v21339_v62 }
 0x786   : > { %18003 = vmatpush3.bf16.msra.mxu0 %v19953_v18  ;;  %15045 = vmatprep.mubr.msk.f32.mxu0 %vm19848_vm1, %v22845_v2 }
 0x787   : > { %18004 = vmatprep.subr.bf16.mxu0 %v22844_v20 }
 0x78a   : > { %18006 = vmatpush3.bf16.msra.mxu0 %v19985_v30 }
 0x78b   : > { %18007 = vmatprep.subr.bf16.mxu0 %v22844_v20 }
 0x78e   : > { %18009 = vmatpush3.bf16.msra.mxu0 %v20023_v45 }
 0x78f   : > { %18010 = vmatprep.subr.bf16.mxu0 %v22844_v20 }
 0x792   : > { %18012 = vmatpush3.bf16.msra.mxu0 %v20083_v31 }
 0x793   : > { %18013 = vmatprep.subr.bf16.mxu0 %v22844_v20 }
 0x796   : > { %18015 = vmatpush3.bf16.msra.mxu0 %v22903_v15 }
 0x797   : > { %18016 = vmatprep.subr.bf16.mxu0 %v22844_v20 }
 0x79a   : > { %18018 = vmatpush3.bf16.msra.mxu0 %v22905_v13 }
 0x79b   : > { %18019 = vmatprep.subr.bf16.mxu0 %v22844_v20 }
 0x79e   : > { %18021 = vmatpush3.bf16.msra.mxu0 %v22907_v56 }
 0x79f   : > { %18022 = vmatprep.subr.bf16.mxu0 %v22844_v20 }
 0x7a2   : > { %18024 = vmatpush3.bf16.msra.mxu0 %v22909_v10 }
 0x7a3   : > { %18025 = vmatprep.subr.bf16.mxu0 %v22844_v20 }
 0x858   : > { %v4866_v39 = vpop.f32.mrb[34].mxu0 }
 0x859   : > { %v4870_v19 = vadd.f32 %v20913_v29, %v4866_v39  ;;  %v14802_v5 = vpop.f32.mrb[35].mxu0 }
 0x85b   : > { %v4871_v38 = vmax.f32 %v4870_v19, 0.0 }
 0x85d   : > { %v4872_v63 = vadd.f32 %v20917_v4, %v4871_v38 }
 0x85f   : > { %v4873_v0 = vmax.f32 %v4872_v63, 0.0 }
 0x861   : > { %12107 = vst [vmem:[%s19909_s29 + $0x20] sm:$0xff] %v4873_v0  ;;  %v21456_v8 = vand.u32 4294901760, %v4873_v0 }
 0x863   : > { %v4960_v25 = vsub.f32 %v4873_v0, %v21456_v8 }
 0x865   : > { %v4961_v58 = vand.u32 4294901760, %v4960_v25 }
 0x867   : > { %v4962_v1 = vsub.f32 %v4960_v25, %v4961_v58 }
 0x869   : > { %v4963_v32 = vand.u32 4294901760, %v4962_v1 }
 0x86b   : > { %14836 = vmatmul.mubr.f32.vlgmr.msra.gmra.mrb[6].mxu1 %v4963_v32 }
 0x86c   : > { %17883 = vmatpush3.bf16.msra.mxu1 %v22950_v28  ;;  %14870 = vmatprep.mubr.msk.f32.mxu1 %vm19848_vm1, %v22845_v2 }
 0x86d   : > { %17884 = vmatprep.subr.bf16.mxu1 %v22844_v20 }
 0x870   : > { %17886 = vmatpush3.bf16.msra.mxu1 %v22951_v7 }
 0x871   : > { %17887 = vmatprep.subr.bf16.mxu1 %v22844_v20 }
 0x874   : > { %17889 = vmatpush3.bf16.msra.mxu1 %v22952_v53 }
 0x875   : > { %17890 = vmatprep.subr.bf16.mxu1 %v22844_v20 }
 0x878   : > { %17892 = vmatpush3.bf16.msra.mxu1 %v22953_v24 }
 0x879   : > { %17893 = vmatprep.subr.bf16.mxu1 %v22844_v20 }
 0x87c   : > { %17895 = vmatpush3.bf16.msra.mxu1 %v22954_v14 }
 0x87d   : > { %17896 = vmatprep.subr.bf16.mxu1 %v22844_v20 }
 0x880   : > { %17898 = vmatpush3.bf16.msra.mxu1 %v22956_v16 }
 0x881   : > { %17899 = vmatprep.subr.bf16.mxu1 %v22844_v20 }
 0x884   : > { %17901 = vmatpush3.bf16.msra.mxu1 %v20470_v60 }
 0x885   : > { %17902 = vmatprep.subr.bf16.mxu1 %v22844_v20 }
 0x888   : > { %17904 = vmatpush3.bf16.msra.mxu1 %v20524_v37 }
 0x889   : > { %17905 = vmatprep.subr.bf16.mxu1 %v22844_v20 }
 0x88b   : > { %14871 = vmatmul.mubr.f32.vlgmr.msra.gmra.mrb[6].mxu1 %v21456_v8 }
 0x88c   : > { %17907 = vmatpush3.bf16.msra.mxu1 %v20535_v17  ;;  %14905 = vmatprep.mubr.msk.f32.mxu1 %vm19848_vm1, %v22845_v2 }
 0x88d   : > { %17908 = vmatprep.subr.bf16.mxu1 %v22844_v20 }
 0x890   : > { %17910 = vmatpush3.bf16.msra.mxu1 %v20546_v42 }
 0x891   : > { %17911 = vmatprep.subr.bf16.mxu1 %v22844_v20 }
 0x894   : > { %17913 = vmatpush3.bf16.msra.mxu1 %v20555_v34 }
 0x895   : > { %17914 = vmatprep.subr.bf16.mxu1 %v22844_v20 }
 0x898   : > { %17916 = vmatpush3.bf16.msra.mxu1 %v20562_v3 }
 0x899   : > { %17917 = vmatprep.subr.bf16.mxu1 %v22844_v20 }
 0x89c   : > { %17919 = vmatpush3.bf16.msra.mxu1 %v20570_v44 }
 0x89d   : > { %17920 = vmatprep.subr.bf16.mxu1 %v22844_v20 }
 0x8a0   : > { %17922 = vmatpush3.bf16.msra.mxu1 %v20579_v9 }
 0x8a1   : > { %17923 = vmatprep.subr.bf16.mxu1 %v22844_v20 }
 0x8a4   : > { %17925 = vmatpush3.bf16.msra.mxu1 %v20587_v43 }
 0x8a5   : > { %17926 = vmatprep.subr.bf16.mxu1 %v22844_v20 }
 0x8a8   : > { %17928 = vmatpush3.bf16.msra.mxu1 %v20595_v61 }
 0x8a9   : > { %17929 = vmatprep.subr.bf16.mxu1 %v22844_v20 }
 0x8ab   : > { %14906 = vmatmul.mubr.f32.vlgmr.msra.gmra.mrb[6].mxu1 %v4960_v25 }
 0x8ac   : > { %17931 = vmatpush3.bf16.msra.mxu1 %v19953_v18  ;;  %14940 = vmatprep.mubr.msk.f32.mxu1 %vm19848_vm1, %v22845_v2 }
 0x8ad   : > { %17932 = vmatprep.subr.bf16.mxu1 %v22844_v20 }
 0x8b0   : > { %17934 = vmatpush3.bf16.msra.mxu1 %v19985_v30 }
 0x8b1   : > { %17935 = vmatprep.subr.bf16.mxu1 %v22844_v20 }
 0x8b4   : > { %17937 = vmatpush3.bf16.msra.mxu1 %v20023_v45 }
 0x8b5   : > { %17938 = vmatprep.subr.bf16.mxu1 %v22844_v20 }
 0x8b8   : > { %17940 = vmatpush3.bf16.msra.mxu1 %v20083_v31 }
 0x8b9   : > { %17941 = vmatprep.subr.bf16.mxu1 %v22844_v20 }
 0x8bc   : > { %17943 = vmatpush3.bf16.msra.mxu1 %v22903_v15 }
 0x8bd   : > { %17944 = vmatprep.subr.bf16.mxu1 %v22844_v20 }
 0x8c0   : > { %17946 = vmatpush3.bf16.msra.mxu1 %v22905_v13 }
 0x8c1   : > { %17947 = vmatprep.subr.bf16.mxu1 %v22844_v20 }
 0x8c4   : > { %17949 = vmatpush3.bf16.msra.mxu1 %v22907_v56 }
 0x8c5   : > { %17950 = vmatprep.subr.bf16.mxu1 %v22844_v20 }
 0x8c8   : > { %17952 = vmatpush3.bf16.msra.mxu1 %v22909_v10 }
 0x8c9   : > { %17953 = vmatprep.subr.bf16.mxu1 %v22844_v20 }
 0x8cb   : > { %14941 = vmatmul.mubr.f32.vlgmr.msra.gmra.mrb[6].mxu1 %v4961_v58 }
 0x8cc   : > { %17955 = vmatpush3.bf16.msra.mxu1 %v20480_v27  ;;  %14975 = vmatprep.mubr.msk.f32.mxu1 %vm19848_vm1, %v22845_v2 }
 0x8cd   : > { %17956 = vmatprep.subr.bf16.mxu1 %v22844_v20 }
 0x8d0   : > { %17958 = vmatpush3.bf16.msra.mxu1 %v20486_v40 }
 0x8d1   : > { %17959 = vmatprep.subr.bf16.mxu1 %v22844_v20 }
 0x8d4   : > { %17961 = vmatpush3.bf16.msra.mxu1 %v20492_v22 }
 0x8d5   : > { %17962 = vmatprep.subr.bf16.mxu1 %v22844_v20 }
 0x8d8   : > { %17964 = vmatpush3.bf16.msra.mxu1 %v20498_v52 }
 0x8d9   : > { %17965 = vmatprep.subr.bf16.mxu1 %v22844_v20 }
 0x8dc   : > { %17967 = vmatpush3.bf16.msra.mxu1 %v22968_v36 }
 0x8dd   : > { %17968 = vmatprep.subr.bf16.mxu1 %v22844_v20 }
 0x8e0   : > { %17970 = vmatpush3.bf16.msra.mxu1 %v22969_v21 }
 0x8e1   : > { %17971 = vmatprep.subr.bf16.mxu1 %v22844_v20 }
 0x8e4   : > { %17973 = vmatpush3.bf16.msra.mxu1 %v22970_v33 }
 0x8e5   : > { %17974 = vmatprep.subr.bf16.mxu1 %v22844_v20 }
 0x8e8   : > { %17976 = vmatpush3.bf16.msra.mxu1 %v22971_v50 }
 0x8e9   : > { %17977 = vmatprep.subr.bf16.mxu1 %v22844_v20 }
 0x8eb   : > { %14976 = vmatmul.mubr.f32.vlgmr.msra.gmra.mrb[6].mxu1 %v21456_v8 }
 0x8ec   : > { %17979 = vmatpush3.bf16.msra.mxu1 %v19953_v18  ;;  %15010 = vmatprep.mubr.msk.f32.mxu1 %vm19848_vm1, %v22845_v2 }
 0x8ed   : > { %17980 = vmatprep.subr.bf16.mxu1 %v22844_v20 }
 0x8f0   : > { %17982 = vmatpush3.bf16.msra.mxu1 %v19985_v30 }
 0x8f1   : > { %17983 = vmatprep.subr.bf16.mxu1 %v22844_v20 }
 0x8f4   : > { %17985 = vmatpush3.bf16.msra.mxu1 %v20023_v45 }
 0x8f5   : > { %17986 = vmatprep.subr.bf16.mxu1 %v22844_v20 }
 0x8f8   : > { %17988 = vmatpush3.bf16.msra.mxu1 %v20083_v31 }
 0x8f9   : > { %17989 = vmatprep.subr.bf16.mxu1 %v22844_v20 }
 0x8fc   : > { %17991 = vmatpush3.bf16.msra.mxu1 %v22903_v15 }
 0x8fd   : > { %17992 = vmatprep.subr.bf16.mxu1 %v22844_v20 }
 0x900   : > { %17994 = vmatpush3.bf16.msra.mxu1 %v22905_v13 }
 0x901   : > { %17995 = vmatprep.subr.bf16.mxu1 %v22844_v20 }
 0x904   : > { %17997 = vmatpush3.bf16.msra.mxu1 %v22907_v56 }
 0x905   : > { %17998 = vmatprep.subr.bf16.mxu1 %v22844_v20 }
 0x908   : > { %18000 = vmatpush3.bf16.msra.mxu1 %v22909_v10 }
 0x909   : > { %18145 = vmatprep.subr.bf16.mxu1 %v22844_v20 }
 0x90b   : > { %15011 = vmatmul.mubr.f32.vlgmr.msra.gmra.mrb[6].mxu1 %v21456_v8 }
 0x90c   : > { %18147 = vmatpush3.bf16.msra.mxu1 %v19953_v18  ;;  %15255 = vmatprep.mubr.msk.f32.mxu1 %vm19848_vm1, %v22845_v2 }
 0x90d   : > { %18148 = vmatprep.subr.bf16.mxu1 %v22844_v20 }
 0x910   : > { %18150 = vmatpush3.bf16.msra.mxu1 %v19985_v30 }
 0x911   : > { %18151 = vmatprep.subr.bf16.mxu1 %v22844_v20 }
 0x914   : > { %18153 = vmatpush3.bf16.msra.mxu1 %v20023_v45 }
 0x915   : > { %18154 = vmatprep.subr.bf16.mxu1 %v22844_v20 }
 0x918   : > { %18156 = vmatpush3.bf16.msra.mxu1 %v20083_v31 }
 0x919   : > { %18157 = vmatprep.subr.bf16.mxu1 %v22844_v20 }
 0x91c   : > { %18159 = vmatpush3.bf16.msra.mxu1 %v22903_v15 }
 0x91d   : > { %18160 = vmatprep.subr.bf16.mxu1 %v22844_v20 }
 0x920   : > { %18162 = vmatpush3.bf16.msra.mxu1 %v22905_v13 }
 0x921   : > { %18163 = vmatprep.subr.bf16.mxu1 %v22844_v20 }
 0x924   : > { %18165 = vmatpush3.bf16.msra.mxu1 %v22907_v56 }
 0x925   : > { %18166 = vmatprep.subr.bf16.mxu1 %v22844_v20 }
 0x928   : > { %18168 = vmatpush3.bf16.msra.mxu1 %v22909_v10 }
 0x929   : > { %18169 = vmatprep.subr.bf16.mxu1 %v22844_v20 }
 0x9de   : > { %v5515_v29 = vpop.f32.mrb[6].mxu1 }
 0x9df   : > { %v5519_v4 = vadd.f32 %v20923_v12, %v5515_v29  ;;  %v15012_v41 = vpop.f32.mrb[7].mxu1 }
 0x9e1   : > { %v5520_v62 = vmax.f32 %v5519_v4, 0.0 }
 0x9e3   : > { %v5521_v48 = vadd.f32 %v20926_v59, %v5520_v62 }
 0x9e5   : > { %v5522_v6 = vmax.f32 %v5521_v48, 0.0 }
 0x9e7   : > { %12108 = vst [vmem:[%s19909_s29 + $0x28] sm:$0xff] %v5522_v6  ;;  %v21573_v54 = vand.u32 4294901760, %v5522_v6 }
 0x9e9   : > { %v5609_v49 = vsub.f32 %v5522_v6, %v21573_v54 }
 0x9eb   : > { %v5610_v39 = vand.u32 4294901760, %v5609_v49 }
 0x9ed   : > { %v5611_v19 = vsub.f32 %v5609_v49, %v5610_v39 }
 0x9ef   : > { %v5612_v5 = vand.u32 4294901760, %v5611_v19 }
 0x9f1   : > { %15046 = vmatmul.mubr.f32.vlgmr.msra.gmra.mrb[36].mxu0 %v5612_v5 }
 0x9f2   : > { %18027 = vmatpush3.bf16.msra.mxu0 %v22950_v28  ;;  %15080 = vmatprep.mubr.msk.f32.mxu0 %vm19848_vm1, %v22845_v2 }
 0x9f3   : > { %18028 = vmatprep.subr.bf16.mxu0 %v22844_v20 }
 0x9f6   : > { %18030 = vmatpush3.bf16.msra.mxu0 %v22951_v7 }
 0x9f7   : > { %18031 = vmatprep.subr.bf16.mxu0 %v22844_v20 }
 0x9fa   : > { %18033 = vmatpush3.bf16.msra.mxu0 %v22952_v53 }
 0x9fb   : > { %18034 = vmatprep.subr.bf16.mxu0 %v22844_v20 }
 0x9fe   : > { %18036 = vmatpush3.bf16.msra.mxu0 %v22953_v24 }
 0x9ff   : > { %18037 = vmatprep.subr.bf16.mxu0 %v22844_v20 }
 0xa02   : > { %18039 = vmatpush3.bf16.msra.mxu0 %v22954_v14 }
 0xa03   : > { %18040 = vmatprep.subr.bf16.mxu0 %v22844_v20 }
 0xa06   : > { %18042 = vmatpush3.bf16.msra.mxu0 %v22956_v16 }
 0xa07   : > { %18043 = vmatprep.subr.bf16.mxu0 %v22844_v20 }
 0xa0a   : > { %18045 = vmatpush3.bf16.msra.mxu0 %v20470_v60 }
 0xa0b   : > { %18046 = vmatprep.subr.bf16.mxu0 %v22844_v20 }
 0xa0e   : > { %18048 = vmatpush3.bf16.msra.mxu0 %v20524_v37 }
 0xa0f   : > { %18049 = vmatprep.subr.bf16.mxu0 %v22844_v20 }
 0xa11   : > { %15081 = vmatmul.mubr.f32.vlgmr.msra.gmra.mrb[36].mxu0 %v21573_v54 }
 0xa12   : > { %18051 = vmatpush3.bf16.msra.mxu0 %v20535_v17  ;;  %15115 = vmatprep.mubr.msk.f32.mxu0 %vm19848_vm1, %v22845_v2 }
 0xa13   : > { %18052 = vmatprep.subr.bf16.mxu0 %v22844_v20 }
 0xa16   : > { %18054 = vmatpush3.bf16.msra.mxu0 %v20546_v42 }
 0xa17   : > { %18055 = vmatprep.subr.bf16.mxu0 %v22844_v20 }
 0xa1a   : > { %18057 = vmatpush3.bf16.msra.mxu0 %v20555_v34 }
 0xa1b   : > { %18058 = vmatprep.subr.bf16.mxu0 %v22844_v20 }
 0xa1e   : > { %18060 = vmatpush3.bf16.msra.mxu0 %v20562_v3 }
 0xa1f   : > { %18061 = vmatprep.subr.bf16.mxu0 %v22844_v20 }
 0xa22   : > { %18063 = vmatpush3.bf16.msra.mxu0 %v20570_v44 }
 0xa23   : > { %18064 = vmatprep.subr.bf16.mxu0 %v22844_v20 }
 0xa26   : > { %18066 = vmatpush3.bf16.msra.mxu0 %v20579_v9 }
 0xa27   : > { %18067 = vmatprep.subr.bf16.mxu0 %v22844_v20 }
 0xa2a   : > { %18069 = vmatpush3.bf16.msra.mxu0 %v20587_v43 }
 0xa2b   : > { %18070 = vmatprep.subr.bf16.mxu0 %v22844_v20 }
 0xa2e   : > { %18072 = vmatpush3.bf16.msra.mxu0 %v20595_v61 }
 0xa2f   : > { %18073 = vmatprep.subr.bf16.mxu0 %v22844_v20 }
 0xa31   : > { %15116 = vmatmul.mubr.f32.vlgmr.msra.gmra.mrb[36].mxu0 %v5609_v49 }
 0xa32   : > { %18075 = vmatpush3.bf16.msra.mxu0 %v19953_v18  ;;  %15150 = vmatprep.mubr.msk.f32.mxu0 %vm19848_vm1, %v22845_v2 }
 0xa33   : > { %18076 = vmatprep.subr.bf16.mxu0 %v22844_v20 }
 0xa36   : > { %18078 = vmatpush3.bf16.msra.mxu0 %v19985_v30 }
 0xa37   : > { %18079 = vmatprep.subr.bf16.mxu0 %v22844_v20 }
 0xa3a   : > { %18081 = vmatpush3.bf16.msra.mxu0 %v20023_v45 }
 0xa3b   : > { %18082 = vmatprep.subr.bf16.mxu0 %v22844_v20 }
 0xa3e   : > { %18084 = vmatpush3.bf16.msra.mxu0 %v20083_v31 }
 0xa3f   : > { %18085 = vmatprep.subr.bf16.mxu0 %v22844_v20 }
 0xa42   : > { %18087 = vmatpush3.bf16.msra.mxu0 %v22903_v15 }
 0xa43   : > { %18088 = vmatprep.subr.bf16.mxu0 %v22844_v20 }
 0xa46   : > { %18090 = vmatpush3.bf16.msra.mxu0 %v22905_v13 }
 0xa47   : > { %18091 = vmatprep.subr.bf16.mxu0 %v22844_v20 }
 0xa4a   : > { %18093 = vmatpush3.bf16.msra.mxu0 %v22907_v56 }
 0xa4b   : > { %18094 = vmatprep.subr.bf16.mxu0 %v22844_v20 }
 0xa4e   : > { %18096 = vmatpush3.bf16.msra.mxu0 %v22909_v10 }
 0xa4f   : > { %18097 = vmatprep.subr.bf16.mxu0 %v22844_v20 }
 0xa51   : > { %15151 = vmatmul.mubr.f32.vlgmr.msra.gmra.mrb[36].mxu0 %v5610_v39 }
 0xa52   : > { %18099 = vmatpush3.bf16.msra.mxu0 %v20480_v27  ;;  %15185 = vmatprep.mubr.msk.f32.mxu0 %vm19848_vm1, %v22845_v2 }
 0xa53   : > { %18100 = vmatprep.subr.bf16.mxu0 %v22844_v20 }
 0xa56   : > { %18102 = vmatpush3.bf16.msra.mxu0 %v20486_v40 }
 0xa57   : > { %18103 = vmatprep.subr.bf16.mxu0 %v22844_v20 }
 0xa5a   : > { %18105 = vmatpush3.bf16.msra.mxu0 %v20492_v22 }
 0xa5b   : > { %18106 = vmatprep.subr.bf16.mxu0 %v22844_v20 }
 0xa5e   : > { %18108 = vmatpush3.bf16.msra.mxu0 %v20498_v52 }
 0xa5f   : > { %18109 = vmatprep.subr.bf16.mxu0 %v22844_v20 }
 0xa62   : > { %18111 = vmatpush3.bf16.msra.mxu0 %v22968_v36 }
 0xa63   : > { %18112 = vmatprep.subr.bf16.mxu0 %v22844_v20 }
 0xa66   : > { %18114 = vmatpush3.bf16.msra.mxu0 %v22969_v21 }
 0xa67   : > { %18115 = vmatprep.subr.bf16.mxu0 %v22844_v20 }
 0xa6a   : > { %18117 = vmatpush3.bf16.msra.mxu0 %v22970_v33 }
 0xa6b   : > { %18118 = vmatprep.subr.bf16.mxu0 %v22844_v20 }
 0xa6e   : > { %18120 = vmatpush3.bf16.msra.mxu0 %v22971_v50 }
 0xa6f   : > { %18121 = vmatprep.subr.bf16.mxu0 %v22844_v20 }
 0xa71   : > { %15186 = vmatmul.mubr.f32.vlgmr.msra.gmra.mrb[36].mxu0 %v21573_v54 }
 0xa72   : > { %18123 = vmatpush3.bf16.msra.mxu0 %v19953_v18  ;;  %15220 = vmatprep.mubr.msk.f32.mxu0 %vm19848_vm1, %v22845_v2 }
 0xa73   : > { %18124 = vmatprep.subr.bf16.mxu0 %v22844_v20 }
 0xa76   : > { %18126 = vmatpush3.bf16.msra.mxu0 %v19985_v30 }
 0xa77   : > { %18127 = vmatprep.subr.bf16.mxu0 %v22844_v20 }
 0xa7a   : > { %18129 = vmatpush3.bf16.msra.mxu0 %v20023_v45 }
 0xa7b   : > { %18130 = vmatprep.subr.bf16.mxu0 %v22844_v20 }
 0xa7e   : > { %18132 = vmatpush3.bf16.msra.mxu0 %v20083_v31 }
 0xa7f   : > { %18133 = vmatprep.subr.bf16.mxu0 %v22844_v20 }
 0xa82   : > { %18135 = vmatpush3.bf16.msra.mxu0 %v22903_v15 }
 0xa83   : > { %18136 = vmatprep.subr.bf16.mxu0 %v22844_v20 }
 0xa86   : > { %18138 = vmatpush3.bf16.msra.mxu0 %v22905_v13 }
 0xa87   : > { %18139 = vmatprep.subr.bf16.mxu0 %v22844_v20 }
 0xa8a   : > { %18141 = vmatpush3.bf16.msra.mxu0 %v22907_v56 }
 0xa8b   : > { %18142 = vmatprep.subr.bf16.mxu0 %v22844_v20 }
 0xa8e   : > { %18144 = vmatpush3.bf16.msra.mxu0 %v22909_v10 }
 0xa8f   : > { %18289 = vmatprep.subr.bf16.mxu0 %v22844_v20 }
 0xa91   : > { %15221 = vmatmul.mubr.f32.vlgmr.msra.gmra.mrb[36].mxu0 %v21573_v54 }
 0xa92   : > { %18291 = vmatpush3.bf16.msra.mxu0 %v19953_v18  ;;  %15465 = vmatprep.mubr.msk.f32.mxu0 %vm19848_vm1, %v22845_v2 }
 0xa93   : > { %18292 = vmatprep.subr.bf16.mxu0 %v22844_v20 }
 0xa96   : > { %18294 = vmatpush3.bf16.msra.mxu0 %v19985_v30 }
 0xa97   : > { %18295 = vmatprep.subr.bf16.mxu0 %v22844_v20 }
 0xa9a   : > { %18297 = vmatpush3.bf16.msra.mxu0 %v20023_v45 }
 0xa9b   : > { %18298 = vmatprep.subr.bf16.mxu0 %v22844_v20 }
 0xa9e   : > { %18300 = vmatpush3.bf16.msra.mxu0 %v20083_v31 }
 0xa9f   : > { %18301 = vmatprep.subr.bf16.mxu0 %v22844_v20 }
 0xaa2   : > { %18303 = vmatpush3.bf16.msra.mxu0 %v22903_v15 }
 0xaa3   : > { %18304 = vmatprep.subr.bf16.mxu0 %v22844_v20 }
 0xaa6   : > { %18306 = vmatpush3.bf16.msra.mxu0 %v22905_v13 }
 0xaa7   : > { %18307 = vmatprep.subr.bf16.mxu0 %v22844_v20 }
 0xaaa   : > { %18309 = vmatpush3.bf16.msra.mxu0 %v22907_v56 }
 0xaab   : > { %18310 = vmatprep.subr.bf16.mxu0 %v22844_v20 }
 0xaae   : > { %18312 = vmatpush3.bf16.msra.mxu0 %v22909_v10 }
 0xaaf   : > { %18313 = vmatprep.subr.bf16.mxu0 %v22844_v20 }
 0xb64   : > { %v6164_v12 = vpop.f32.mrb[36].mxu0 }
 0xb65   : > { %v6168_v59 = vadd.f32 %v20932_v11, %v6164_v12  ;;  %v15222_v38 = vpop.f32.mrb[37].mxu0 }
 0xb67   : > { %v6169_v63 = vmax.f32 %v6168_v59, 0.0 }
 0xb69   : > { %v6170_v0 = vadd.f32 %v20936_v57, %v6169_v63 }
 0xb6b   : > { %v6171_v8 = vmax.f32 %v6170_v0, 0.0 }
 0xb6d   : > { %12109 = vst [vmem:[%s19909_s29 + $0x30] sm:$0xff] %v6171_v8  ;;  %v21690_v25 = vand.u32 4294901760, %v6171_v8 }
 0xb6f   : > { %v6258_v58 = vsub.f32 %v6171_v8, %v21690_v25 }
 0xb71   : > { %v6259_v1 = vand.u32 4294901760, %v6258_v58 }
 0xb73   : > { %v6260_v32 = vsub.f32 %v6258_v58, %v6259_v1 }
 0xb75   : > { %v6261_v29 = vand.u32 4294901760, %v6260_v32 }
 0xb77   : > { %15256 = vmatmul.mubr.f32.vlgmr.msra.gmra.mrb[8].mxu1 %v6261_v29 }
 0xb78   : > { %18171 = vmatpush3.bf16.msra.mxu1 %v22950_v28  ;;  %15290 = vmatprep.mubr.msk.f32.mxu1 %vm19848_vm1, %v22845_v2 }
 0xb79   : > { %18172 = vmatprep.subr.bf16.mxu1 %v22844_v20 }
 0xb7c   : > { %18174 = vmatpush3.bf16.msra.mxu1 %v22951_v7 }
 0xb7d   : > { %18175 = vmatprep.subr.bf16.mxu1 %v22844_v20 }
 0xb80   : > { %18177 = vmatpush3.bf16.msra.mxu1 %v22952_v53 }
 0xb81   : > { %18178 = vmatprep.subr.bf16.mxu1 %v22844_v20 }
 0xb84   : > { %18180 = vmatpush3.bf16.msra.mxu1 %v22953_v24 }
 0xb85   : > { %18181 = vmatprep.subr.bf16.mxu1 %v22844_v20 }
 0xb88   : > { %18183 = vmatpush3.bf16.msra.mxu1 %v22954_v14 }
 0xb89   : > { %18184 = vmatprep.subr.bf16.mxu1 %v22844_v20 }
 0xb8c   : > { %18186 = vmatpush3.bf16.msra.mxu1 %v22956_v16 }
 0xb8d   : > { %18187 = vmatprep.subr.bf16.mxu1 %v22844_v20 }
 0xb90   : > { %18189 = vmatpush3.bf16.msra.mxu1 %v20470_v60 }
 0xb91   : > { %18190 = vmatprep.subr.bf16.mxu1 %v22844_v20 }
 0xb94   : > { %18192 = vmatpush3.bf16.msra.mxu1 %v20524_v37 }
 0xb95   : > { %18193 = vmatprep.subr.bf16.mxu1 %v22844_v20 }
 0xb97   : > { %15291 = vmatmul.mubr.f32.vlgmr.msra.gmra.mrb[8].mxu1 %v21690_v25 }
 0xb98   : > { %18195 = vmatpush3.bf16.msra.mxu1 %v20535_v17  ;;  %15325 = vmatprep.mubr.msk.f32.mxu1 %vm19848_vm1, %v22845_v2 }
 0xb99   : > { %18196 = vmatprep.subr.bf16.mxu1 %v22844_v20 }
 0xb9c   : > { %18198 = vmatpush3.bf16.msra.mxu1 %v20546_v42 }
 0xb9d   : > { %18199 = vmatprep.subr.bf16.mxu1 %v22844_v20 }
 0xba0   : > { %18201 = vmatpush3.bf16.msra.mxu1 %v20555_v34 }
 0xba1   : > { %18202 = vmatprep.subr.bf16.mxu1 %v22844_v20 }
 0xba4   : > { %18204 = vmatpush3.bf16.msra.mxu1 %v20562_v3 }
 0xba5   : > { %18205 = vmatprep.subr.bf16.mxu1 %v22844_v20 }
 0xba8   : > { %18207 = vmatpush3.bf16.msra.mxu1 %v20570_v44 }
 0xba9   : > { %18208 = vmatprep.subr.bf16.mxu1 %v22844_v20 }
 0xbac   : > { %18210 = vmatpush3.bf16.msra.mxu1 %v20579_v9 }
 0xbad   : > { %18211 = vmatprep.subr.bf16.mxu1 %v22844_v20 }
 0xbb0   : > { %18213 = vmatpush3.bf16.msra.mxu1 %v20587_v43 }
 0xbb1   : > { %18214 = vmatprep.subr.bf16.mxu1 %v22844_v20 }
 0xbb4   : > { %18216 = vmatpush3.bf16.msra.mxu1 %v20595_v61 }
 0xbb5   : > { %18217 = vmatprep.subr.bf16.mxu1 %v22844_v20 }
 0xbb7   : > { %15326 = vmatmul.mubr.f32.vlgmr.msra.gmra.mrb[8].mxu1 %v6258_v58 }
 0xbb8   : > { %18219 = vmatpush3.bf16.msra.mxu1 %v19953_v18  ;;  %15360 = vmatprep.mubr.msk.f32.mxu1 %vm19848_vm1, %v22845_v2 }
 0xbb9   : > { %18220 = vmatprep.subr.bf16.mxu1 %v22844_v20 }
 0xbbc   : > { %18222 = vmatpush3.bf16.msra.mxu1 %v19985_v30 }
 0xbbd   : > { %18223 = vmatprep.subr.bf16.mxu1 %v22844_v20 }
 0xbc0   : > { %18225 = vmatpush3.bf16.msra.mxu1 %v20023_v45 }
 0xbc1   : > { %18226 = vmatprep.subr.bf16.mxu1 %v22844_v20 }
 0xbc4   : > { %18228 = vmatpush3.bf16.msra.mxu1 %v20083_v31 }
 0xbc5   : > { %18229 = vmatprep.subr.bf16.mxu1 %v22844_v20 }
 0xbc8   : > { %18231 = vmatpush3.bf16.msra.mxu1 %v22903_v15 }
 0xbc9   : > { %18232 = vmatprep.subr.bf16.mxu1 %v22844_v20 }
 0xbcc   : > { %18234 = vmatpush3.bf16.msra.mxu1 %v22905_v13 }
 0xbcd   : > { %18235 = vmatprep.subr.bf16.mxu1 %v22844_v20 }
 0xbd0   : > { %18237 = vmatpush3.bf16.msra.mxu1 %v22907_v56 }
 0xbd1   : > { %18238 = vmatprep.subr.bf16.mxu1 %v22844_v20 }
 0xbd4   : > { %18240 = vmatpush3.bf16.msra.mxu1 %v22909_v10 }
 0xbd5   : > { %18241 = vmatprep.subr.bf16.mxu1 %v22844_v20 }
 0xbd7   : > { %15361 = vmatmul.mubr.f32.vlgmr.msra.gmra.mrb[8].mxu1 %v6259_v1 }
 0xbd8   : > { %18243 = vmatpush3.bf16.msra.mxu1 %v20480_v27  ;;  %15395 = vmatprep.mubr.msk.f32.mxu1 %vm19848_vm1, %v22845_v2 }
 0xbd9   : > { %18244 = vmatprep.subr.bf16.mxu1 %v22844_v20 }
 0xbdc   : > { %18246 = vmatpush3.bf16.msra.mxu1 %v20486_v40 }
 0xbdd   : > { %18247 = vmatprep.subr.bf16.mxu1 %v22844_v20 }
 0xbe0   : > { %18249 = vmatpush3.bf16.msra.mxu1 %v20492_v22 }
 0xbe1   : > { %18250 = vmatprep.subr.bf16.mxu1 %v22844_v20 }
 0xbe4   : > { %18252 = vmatpush3.bf16.msra.mxu1 %v20498_v52 }
 0xbe5   : > { %18253 = vmatprep.subr.bf16.mxu1 %v22844_v20 }
 0xbe8   : > { %18255 = vmatpush3.bf16.msra.mxu1 %v22968_v36 }
 0xbe9   : > { %18256 = vmatprep.subr.bf16.mxu1 %v22844_v20 }
 0xbec   : > { %18258 = vmatpush3.bf16.msra.mxu1 %v22969_v21 }
 0xbed   : > { %18259 = vmatprep.subr.bf16.mxu1 %v22844_v20 }
 0xbf0   : > { %18261 = vmatpush3.bf16.msra.mxu1 %v22970_v33 }
 0xbf1   : > { %18262 = vmatprep.subr.bf16.mxu1 %v22844_v20 }
 0xbf4   : > { %18264 = vmatpush3.bf16.msra.mxu1 %v22971_v50 }
 0xbf5   : > { %18265 = vmatprep.subr.bf16.mxu1 %v22844_v20 }
 0xbf7   : > { %15396 = vmatmul.mubr.f32.vlgmr.msra.gmra.mrb[8].mxu1 %v21690_v25 }
 0xbf8   : > { %18267 = vmatpush3.bf16.msra.mxu1 %v19953_v18  ;;  %15430 = vmatprep.mubr.msk.f32.mxu1 %vm19848_vm1, %v22845_v2 }
 0xbf9   : > { %18268 = vmatprep.subr.bf16.mxu1 %v22844_v20 }
 0xbfc   : > { %18270 = vmatpush3.bf16.msra.mxu1 %v19985_v30 }
 0xbfd   : > { %18271 = vmatprep.subr.bf16.mxu1 %v22844_v20 }
 0xc00   : > { %18273 = vmatpush3.bf16.msra.mxu1 %v20023_v45 }
 0xc01   : > { %18274 = vmatprep.subr.bf16.mxu1 %v22844_v20 }
 0xc04   : > { %18276 = vmatpush3.bf16.msra.mxu1 %v20083_v31 }
 0xc05   : > { %18277 = vmatprep.subr.bf16.mxu1 %v22844_v20 }
 0xc08   : > { %18279 = vmatpush3.bf16.msra.mxu1 %v22903_v15 }
 0xc09   : > { %18280 = vmatprep.subr.bf16.mxu1 %v22844_v20 }
 0xc0c   : > { %18282 = vmatpush3.bf16.msra.mxu1 %v22905_v13 }
 0xc0d   : > { %18283 = vmatprep.subr.bf16.mxu1 %v22844_v20 }
 0xc10   : > { %18285 = vmatpush3.bf16.msra.mxu1 %v22907_v56 }
 0xc11   : > { %18286 = vmatprep.subr.bf16.mxu1 %v22844_v20 }
 0xc14   : > { %18288 = vmatpush3.bf16.msra.mxu1 %v22909_v10 }
 0xc15   : > { %18433 = vmatprep.subr.bf16.mxu1 %v22844_v20 }
 0xc17   : > { %15431 = vmatmul.mubr.f32.vlgmr.msra.gmra.mrb[8].mxu1 %v21690_v25 }
 0xc18   : > { %18435 = vmatpush3.bf16.msra.mxu1 %v19953_v18  ;;  %15675 = vmatprep.mubr.msk.f32.mxu1 %vm19848_vm1, %v22845_v2 }
 0xc19   : > { %18436 = vmatprep.subr.bf16.mxu1 %v22844_v20 }
 0xc1c   : > { %18438 = vmatpush3.bf16.msra.mxu1 %v19985_v30 }
 0xc1d   : > { %18439 = vmatprep.subr.bf16.mxu1 %v22844_v20 }
 0xc20   : > { %18441 = vmatpush3.bf16.msra.mxu1 %v20023_v45 }
 0xc21   : > { %18442 = vmatprep.subr.bf16.mxu1 %v22844_v20 }
 0xc24   : > { %18444 = vmatpush3.bf16.msra.mxu1 %v20083_v31 }
 0xc25   : > { %18445 = vmatprep.subr.bf16.mxu1 %v22844_v20 }
 0xc28   : > { %18447 = vmatpush3.bf16.msra.mxu1 %v22903_v15 }
 0xc29   : > { %18448 = vmatprep.subr.bf16.mxu1 %v22844_v20 }
 0xc2c   : > { %18450 = vmatpush3.bf16.msra.mxu1 %v22905_v13 }
 0xc2d   : > { %18451 = vmatprep.subr.bf16.mxu1 %v22844_v20 }
 0xc30   : > { %18453 = vmatpush3.bf16.msra.mxu1 %v22907_v56 }
 0xc31   : > { %18454 = vmatprep.subr.bf16.mxu1 %v22844_v20 }
 0xc34   : > { %18456 = vmatpush3.bf16.msra.mxu1 %v22909_v10 }
 0xc35   : > { %18457 = vmatprep.subr.bf16.mxu1 %v22844_v20 }
 0xcea   : > { %v6813_v11 = vpop.f32.mrb[8].mxu1 }
 0xceb   : > { %v6817_v57 = vadd.f32 %v20940_v47, %v6813_v11  ;;  %v15432_v4 = vpop.f32.mrb[9].mxu1 }
 0xced   : > { %v6818_v41 = vmax.f32 %v6817_v57, 0.0 }
 0xcef   : > { %v6819_v62 = vadd.f32 %v20944_v35, %v6818_v41 }
 0xcf1   : > { %v6820_v48 = vmax.f32 %v6819_v62, 0.0 }
 0xcf3   : > { %12110 = vst [vmem:[%s19909_s29 + $0x38] sm:$0xff] %v6820_v48  ;;  %v21807_v6 = vand.u32 4294901760, %v6820_v48 }
 0xcf5   : > { %v6907_v54 = vsub.f32 %v6820_v48, %v21807_v6 }
 0xcf7   : > { %v6908_v49 = vand.u32 4294901760, %v6907_v54 }
 0xcf9   : > { %v6909_v39 = vsub.f32 %v6907_v54, %v6908_v49 }
 0xcfb   : > { %v6910_v19 = vand.u32 4294901760, %v6909_v39 }
 0xcfd   : > { %15466 = vmatmul.mubr.f32.vlgmr.msra.gmra.mrb[38].mxu0 %v6910_v19 }
 0xcfe   : > { %18315 = vmatpush3.bf16.msra.mxu0 %v22950_v28  ;;  %15500 = vmatprep.mubr.msk.f32.mxu0 %vm19848_vm1, %v22845_v2 }
 0xcff   : > { %18316 = vmatprep.subr.bf16.mxu0 %v22844_v20 }
 0xd02   : > { %18318 = vmatpush3.bf16.msra.mxu0 %v22951_v7 }
 0xd03   : > { %18319 = vmatprep.subr.bf16.mxu0 %v22844_v20 }
 0xd06   : > { %18321 = vmatpush3.bf16.msra.mxu0 %v22952_v53 }
 0xd07   : > { %18322 = vmatprep.subr.bf16.mxu0 %v22844_v20 }
 0xd0a   : > { %18324 = vmatpush3.bf16.msra.mxu0 %v22953_v24 }
 0xd0b   : > { %18325 = vmatprep.subr.bf16.mxu0 %v22844_v20 }
 0xd0e   : > { %18327 = vmatpush3.bf16.msra.mxu0 %v22954_v14 }
 0xd0f   : > { %18328 = vmatprep.subr.bf16.mxu0 %v22844_v20 }
 0xd12   : > { %18330 = vmatpush3.bf16.msra.mxu0 %v22956_v16 }
 0xd13   : > { %18331 = vmatprep.subr.bf16.mxu0 %v22844_v20 }
 0xd16   : > { %18333 = vmatpush3.bf16.msra.mxu0 %v20470_v60 }
 0xd17   : > { %18334 = vmatprep.subr.bf16.mxu0 %v22844_v20 }
 0xd1a   : > { %18336 = vmatpush3.bf16.msra.mxu0 %v20524_v37 }
 0xd1b   : > { %18337 = vmatprep.subr.bf16.mxu0 %v22844_v20 }
 0xd1d   : > { %15501 = vmatmul.mubr.f32.vlgmr.msra.gmra.mrb[38].mxu0 %v21807_v6 }
 0xd1e   : > { %18339 = vmatpush3.bf16.msra.mxu0 %v20535_v17  ;;  %15535 = vmatprep.mubr.msk.f32.mxu0 %vm19848_vm1, %v22845_v2 }
 0xd1f   : > { %18340 = vmatprep.subr.bf16.mxu0 %v22844_v20 }
 0xd22   : > { %18342 = vmatpush3.bf16.msra.mxu0 %v20546_v42 }
 0xd23   : > { %18343 = vmatprep.subr.bf16.mxu0 %v22844_v20 }
 0xd26   : > { %18345 = vmatpush3.bf16.msra.mxu0 %v20555_v34 }
 0xd27   : > { %18346 = vmatprep.subr.bf16.mxu0 %v22844_v20 }
 0xd2a   : > { %18348 = vmatpush3.bf16.msra.mxu0 %v20562_v3 }
 0xd2b   : > { %18349 = vmatprep.subr.bf16.mxu0 %v22844_v20 }
 0xd2e   : > { %18351 = vmatpush3.bf16.msra.mxu0 %v20570_v44 }
 0xd2f   : > { %18352 = vmatprep.subr.bf16.mxu0 %v22844_v20 }
 0xd32   : > { %18354 = vmatpush3.bf16.msra.mxu0 %v20579_v9 }
 0xd33   : > { %18355 = vmatprep.subr.bf16.mxu0 %v22844_v20 }
 0xd36   : > { %18357 = vmatpush3.bf16.msra.mxu0 %v20587_v43 }
 0xd37   : > { %18358 = vmatprep.subr.bf16.mxu0 %v22844_v20 }
 0xd3a   : > { %18360 = vmatpush3.bf16.msra.mxu0 %v20595_v61 }
 0xd3b   : > { %18361 = vmatprep.subr.bf16.mxu0 %v22844_v20 }
 0xd3d   : > { %15536 = vmatmul.mubr.f32.vlgmr.msra.gmra.mrb[38].mxu0 %v6907_v54 }
 0xd3e   : > { %18363 = vmatpush3.bf16.msra.mxu0 %v19953_v18  ;;  %15570 = vmatprep.mubr.msk.f32.mxu0 %vm19848_vm1, %v22845_v2 }
 0xd3f   : > { %18364 = vmatprep.subr.bf16.mxu0 %v22844_v20 }
 0xd42   : > { %18366 = vmatpush3.bf16.msra.mxu0 %v19985_v30 }
 0xd43   : > { %18367 = vmatprep.subr.bf16.mxu0 %v22844_v20 }
 0xd46   : > { %18369 = vmatpush3.bf16.msra.mxu0 %v20023_v45 }
 0xd47   : > { %18370 = vmatprep.subr.bf16.mxu0 %v22844_v20 }
 0xd4a   : > { %18372 = vmatpush3.bf16.msra.mxu0 %v20083_v31 }
 0xd4b   : > { %18373 = vmatprep.subr.bf16.mxu0 %v22844_v20 }
 0xd4e   : > { %18375 = vmatpush3.bf16.msra.mxu0 %v22903_v15 }
 0xd4f   : > { %18376 = vmatprep.subr.bf16.mxu0 %v22844_v20 }
 0xd52   : > { %18378 = vmatpush3.bf16.msra.mxu0 %v22905_v13 }
 0xd53   : > { %18379 = vmatprep.subr.bf16.mxu0 %v22844_v20 }
 0xd56   : > { %18381 = vmatpush3.bf16.msra.mxu0 %v22907_v56 }
 0xd57   : > { %18382 = vmatprep.subr.bf16.mxu0 %v22844_v20 }
 0xd5a   : > { %18384 = vmatpush3.bf16.msra.mxu0 %v22909_v10 }
 0xd5b   : > { %18385 = vmatprep.subr.bf16.mxu0 %v22844_v20 }
 0xd5d   : > { %15571 = vmatmul.mubr.f32.vlgmr.msra.gmra.mrb[38].mxu0 %v6908_v49  ;;  %v22972_v49 = vld [vmem:[#allocation12_spill] sm:$0xff] }
 0xd5e   : > { %18387 = vmatpush3.bf16.msra.mxu0 %v20480_v27  ;;  %15605 = vmatprep.mubr.msk.f32.mxu0 %vm19848_vm1, %v22845_v2 }
 0xd5f   : > { %18388 = vmatprep.subr.bf16.mxu0 %v22844_v20 }
 0xd62   : > { %18390 = vmatpush3.bf16.msra.mxu0 %v20486_v40 }
 0xd63   : > { %18391 = vmatprep.subr.bf16.mxu0 %v22844_v20 }
 0xd66   : > { %18393 = vmatpush3.bf16.msra.mxu0 %v20492_v22 }
 0xd67   : > { %18394 = vmatprep.subr.bf16.mxu0 %v22844_v20 }
 0xd6a   : > { %18396 = vmatpush3.bf16.msra.mxu0 %v20498_v52 }
 0xd6b   : > { %18397 = vmatprep.subr.bf16.mxu0 %v22844_v20 }
 0xd6e   : > { %18399 = vmatpush3.bf16.msra.mxu0 %v22968_v36 }
 0xd6f   : > { %18400 = vmatprep.subr.bf16.mxu0 %v22844_v20 }
 0xd72   : > { %18402 = vmatpush3.bf16.msra.mxu0 %v22969_v21 }
 0xd73   : > { %18403 = vmatprep.subr.bf16.mxu0 %v22844_v20 }
 0xd76   : > { %18405 = vmatpush3.bf16.msra.mxu0 %v22970_v33 }
 0xd77   : > { %18406 = vmatprep.subr.bf16.mxu0 %v22844_v20 }
 0xd7a   : > { %18408 = vmatpush3.bf16.msra.mxu0 %v22971_v50 }
 0xd7b   : > { %18409 = vmatprep.subr.bf16.mxu0 %v22844_v20 }
 0xd7d   : > { %15606 = vmatmul.mubr.f32.vlgmr.msra.gmra.mrb[38].mxu0 %v21807_v6 }
 0xd7e   : > { %18411 = vmatpush3.bf16.msra.mxu0 %v19953_v18  ;;  %15640 = vmatprep.mubr.msk.f32.mxu0 %vm19848_vm1, %v22845_v2 }
 0xd7f   : > { %18412 = vmatprep.subr.bf16.mxu0 %v22844_v20 }
 0xd82   : > { %18414 = vmatpush3.bf16.msra.mxu0 %v19985_v30 }
 0xd83   : > { %18415 = vmatprep.subr.bf16.mxu0 %v22844_v20 }
 0xd86   : > { %18417 = vmatpush3.bf16.msra.mxu0 %v20023_v45 }
 0xd87   : > { %18418 = vmatprep.subr.bf16.mxu0 %v22844_v20 }
 0xd8a   : > { %18420 = vmatpush3.bf16.msra.mxu0 %v20083_v31 }
 0xd8b   : > { %18421 = vmatprep.subr.bf16.mxu0 %v22844_v20 }
 0xd8e   : > { %18423 = vmatpush3.bf16.msra.mxu0 %v22903_v15 }
 0xd8f   : > { %18424 = vmatprep.subr.bf16.mxu0 %v22844_v20 }
 0xd92   : > { %18426 = vmatpush3.bf16.msra.mxu0 %v22905_v13 }
 0xd93   : > { %18427 = vmatprep.subr.bf16.mxu0 %v22844_v20 }
 0xd96   : > { %18429 = vmatpush3.bf16.msra.mxu0 %v22907_v56 }
 0xd97   : > { %18430 = vmatprep.subr.bf16.mxu0 %v22844_v20 }
 0xd9a   : > { %18432 = vmatpush3.bf16.msra.mxu0 %v22909_v10 }
 0xd9b   : > { %18577 = vmatprep.subr.bf16.mxu0 %v22844_v20 }
 0xd9d   : > { %15641 = vmatmul.mubr.f32.vlgmr.msra.gmra.mrb[38].mxu0 %v21807_v6 }
 0xd9e   : > { %18579 = vmatpush3.bf16.msra.mxu0 %v19953_v18  ;;  %15885 = vmatprep.mubr.msk.f32.mxu0 %vm19848_vm1, %v22845_v2 }
 0xd9f   : > { %18580 = vmatprep.subr.bf16.mxu0 %v22844_v20 }
 0xda2   : > { %18582 = vmatpush3.bf16.msra.mxu0 %v19985_v30 }
 0xda3   : > { %18583 = vmatprep.subr.bf16.mxu0 %v22844_v20 }
 0xda6   : > { %18585 = vmatpush3.bf16.msra.mxu0 %v20023_v45 }
 0xda7   : > { %18586 = vmatprep.subr.bf16.mxu0 %v22844_v20 }
 0xdaa   : > { %18588 = vmatpush3.bf16.msra.mxu0 %v20083_v31 }
 0xdab   : > { %18589 = vmatprep.subr.bf16.mxu0 %v22844_v20 }
 0xdae   : > { %18591 = vmatpush3.bf16.msra.mxu0 %v22903_v15 }
 0xdaf   : > { %18592 = vmatprep.subr.bf16.mxu0 %v22844_v20 }
 0xdb2   : > { %18594 = vmatpush3.bf16.msra.mxu0 %v22905_v13 }
 0xdb3   : > { %18595 = vmatprep.subr.bf16.mxu0 %v22844_v20 }
 0xdb6   : > { %18597 = vmatpush3.bf16.msra.mxu0 %v22907_v56 }
 0xdb7   : > { %18598 = vmatprep.subr.bf16.mxu0 %v22844_v20 }
 0xdba   : > { %18600 = vmatpush3.bf16.msra.mxu0 %v22909_v10 }
 0xdbb   : > { %18601 = vmatprep.subr.bf16.mxu0 %v22844_v20 }
 0xe70   : > { %v7462_v47 = vpop.f32.mrb[38].mxu0 }
 0xe71   : > { %v7466_v35 = vadd.f32 %v20948_v55, %v7462_v47  ;;  %v15642_v5 = vpop.f32.mrb[39].mxu0 }
 0xe73   : > { %v7467_v12 = vmax.f32 %v7466_v35, 0.0 }
 0xe75   : > { %v7468_v59 = vadd.f32 %v20952_v51, %v7467_v12 }
 0xe77   : > { %v7469_v38 = vmax.f32 %v7468_v59, 0.0 }
 0xe79   : > { %12111 = vst [vmem:[%s19909_s29 + $0x40] sm:$0xff] %v7469_v38  ;;  %v21924_v63 = vand.u32 4294901760, %v7469_v38 }
 0xe7b   : > { %v7556_v0 = vsub.f32 %v7469_v38, %v21924_v63  ;;  %v22973_v38 = vld [vmem:[#allocation24_spill] sm:$0xff] }
 0xe7d   : > { %v7557_v8 = vand.u32 4294901760, %v7556_v0 }
 0xe7f   : > { %v7558_v25 = vsub.f32 %v7556_v0, %v7557_v8 }
 0xe81   : > { %v7559_v58 = vand.u32 4294901760, %v7558_v25  ;;  %v22974_v25 = vld [vmem:[#allocation14_spill] sm:$0xff] }
 0xe83   : > { %15676 = vmatmul.mubr.f32.vlgmr.msra.gmra.mrb[10].mxu1 %v7559_v58 }
 0xe84   : > { %18459 = vmatpush3.bf16.msra.mxu1 %v22950_v28  ;;  %15710 = vmatprep.mubr.msk.f32.mxu1 %vm19848_vm1, %v22845_v2 }
 0xe85   : > { %18460 = vmatprep.subr.bf16.mxu1 %v22844_v20 }
 0xe88   : > { %18462 = vmatpush3.bf16.msra.mxu1 %v22951_v7 }
 0xe89   : > { %18463 = vmatprep.subr.bf16.mxu1 %v22844_v20 }
 0xe8c   : > { %18465 = vmatpush3.bf16.msra.mxu1 %v22952_v53 }
 0xe8d   : > { %18466 = vmatprep.subr.bf16.mxu1 %v22844_v20 }
 0xe90   : > { %18468 = vmatpush3.bf16.msra.mxu1 %v22953_v24 }
 0xe91   : > { %18469 = vmatprep.subr.bf16.mxu1 %v22844_v20 }
 0xe94   : > { %18471 = vmatpush3.bf16.msra.mxu1 %v22954_v14 }
 0xe95   : > { %18472 = vmatprep.subr.bf16.mxu1 %v22844_v20 }
 0xe98   : > { %18474 = vmatpush3.bf16.msra.mxu1 %v22956_v16 }
 0xe99   : > { %18475 = vmatprep.subr.bf16.mxu1 %v22844_v20 }
 0xe9c   : > { %18477 = vmatpush3.bf16.msra.mxu1 %v20470_v60 }
 0xe9d   : > { %18478 = vmatprep.subr.bf16.mxu1 %v22844_v20 }
 0xea0   : > { %18480 = vmatpush3.bf16.msra.mxu1 %v20524_v37 }
 0xea1   : > { %18481 = vmatprep.subr.bf16.mxu1 %v22844_v20 }
 0xea3   : > { %15711 = vmatmul.mubr.f32.vlgmr.msra.gmra.mrb[10].mxu1 %v21924_v63 }
 0xea4   : > { %18483 = vmatpush3.bf16.msra.mxu1 %v20535_v17  ;;  %15745 = vmatprep.mubr.msk.f32.mxu1 %vm19848_vm1, %v22845_v2 }
 0xea5   : > { %18484 = vmatprep.subr.bf16.mxu1 %v22844_v20 }
 0xea8   : > { %18486 = vmatpush3.bf16.msra.mxu1 %v20546_v42 }
 0xea9   : > { %18487 = vmatprep.subr.bf16.mxu1 %v22844_v20 }
 0xeac   : > { %18489 = vmatpush3.bf16.msra.mxu1 %v20555_v34 }
 0xead   : > { %18490 = vmatprep.subr.bf16.mxu1 %v22844_v20 }
 0xeb0   : > { %18492 = vmatpush3.bf16.msra.mxu1 %v20562_v3 }
 0xeb1   : > { %18493 = vmatprep.subr.bf16.mxu1 %v22844_v20 }
 0xeb4   : > { %18495 = vmatpush3.bf16.msra.mxu1 %v20570_v44 }
 0xeb5   : > { %18496 = vmatprep.subr.bf16.mxu1 %v22844_v20 }
 0xeb8   : > { %18498 = vmatpush3.bf16.msra.mxu1 %v20579_v9 }
 0xeb9   : > { %18499 = vmatprep.subr.bf16.mxu1 %v22844_v20 }
 0xebc   : > { %18501 = vmatpush3.bf16.msra.mxu1 %v20587_v43 }
 0xebd   : > { %18502 = vmatprep.subr.bf16.mxu1 %v22844_v20 }
 0xec0   : > { %18504 = vmatpush3.bf16.msra.mxu1 %v20595_v61 }
 0xec1   : > { %18505 = vmatprep.subr.bf16.mxu1 %v22844_v20 }
 0xec3   : > { %15746 = vmatmul.mubr.f32.vlgmr.msra.gmra.mrb[10].mxu1 %v7556_v0 }
 0xec4   : > { %18507 = vmatpush3.bf16.msra.mxu1 %v19953_v18  ;;  %15780 = vmatprep.mubr.msk.f32.mxu1 %vm19848_vm1, %v22845_v2 }
 0xec5   : > { %18508 = vmatprep.subr.bf16.mxu1 %v22844_v20 }
 0xec8   : > { %18510 = vmatpush3.bf16.msra.mxu1 %v19985_v30 }
 0xec9   : > { %18511 = vmatprep.subr.bf16.mxu1 %v22844_v20 }
 0xecc   : > { %18513 = vmatpush3.bf16.msra.mxu1 %v20023_v45 }
 0xecd   : > { %18514 = vmatprep.subr.bf16.mxu1 %v22844_v20 }
 0xed0   : > { %18516 = vmatpush3.bf16.msra.mxu1 %v20083_v31 }
 0xed1   : > { %18517 = vmatprep.subr.bf16.mxu1 %v22844_v20 }
 0xed4   : > { %18519 = vmatpush3.bf16.msra.mxu1 %v22903_v15 }
 0xed5   : > { %18520 = vmatprep.subr.bf16.mxu1 %v22844_v20 }
 0xed8   : > { %18522 = vmatpush3.bf16.msra.mxu1 %v22905_v13 }
 0xed9   : > { %18523 = vmatprep.subr.bf16.mxu1 %v22844_v20 }
 0xedc   : > { %18525 = vmatpush3.bf16.msra.mxu1 %v22907_v56 }
 0xedd   : > { %18526 = vmatprep.subr.bf16.mxu1 %v22844_v20 }
 0xee0   : > { %18528 = vmatpush3.bf16.msra.mxu1 %v22909_v10 }
 0xee1   : > { %18529 = vmatprep.subr.bf16.mxu1 %v22844_v20 }
 0xee3   : > { %15781 = vmatmul.mubr.f32.vlgmr.msra.gmra.mrb[10].mxu1 %v7557_v8 }
 0xee4   : > { %18531 = vmatpush3.bf16.msra.mxu1 %v20480_v27  ;;  %15815 = vmatprep.mubr.msk.f32.mxu1 %vm19848_vm1, %v22845_v2 }
 0xee5   : > { %18532 = vmatprep.subr.bf16.mxu1 %v22844_v20 }
 0xee8   : > { %18534 = vmatpush3.bf16.msra.mxu1 %v20486_v40 }
 0xee9   : > { %18535 = vmatprep.subr.bf16.mxu1 %v22844_v20 }
 0xeec   : > { %18537 = vmatpush3.bf16.msra.mxu1 %v20492_v22 }
 0xeed   : > { %18538 = vmatprep.subr.bf16.mxu1 %v22844_v20 }
 0xef0   : > { %18540 = vmatpush3.bf16.msra.mxu1 %v20498_v52 }
 0xef1   : > { %18541 = vmatprep.subr.bf16.mxu1 %v22844_v20 }
 0xef4   : > { %18543 = vmatpush3.bf16.msra.mxu1 %v22968_v36 }
 0xef5   : > { %18544 = vmatprep.subr.bf16.mxu1 %v22844_v20 }
 0xef8   : > { %18546 = vmatpush3.bf16.msra.mxu1 %v22969_v21 }
 0xef9   : > { %18547 = vmatprep.subr.bf16.mxu1 %v22844_v20 }
 0xefc   : > { %18549 = vmatpush3.bf16.msra.mxu1 %v22970_v33 }
 0xefd   : > { %18550 = vmatprep.subr.bf16.mxu1 %v22844_v20 }
 0xf00   : > { %18552 = vmatpush3.bf16.msra.mxu1 %v22971_v50 }
 0xf01   : > { %18553 = vmatprep.subr.bf16.mxu1 %v22844_v20 }
 0xf03   : > { %15816 = vmatmul.mubr.f32.vlgmr.msra.gmra.mrb[10].mxu1 %v21924_v63 }
 0xf04   : > { %18555 = vmatpush3.bf16.msra.mxu1 %v19953_v18  ;;  %15850 = vmatprep.mubr.msk.f32.mxu1 %vm19848_vm1, %v22845_v2 }
 0xf05   : > { %18556 = vmatprep.subr.bf16.mxu1 %v22844_v20 }
 0xf08   : > { %18558 = vmatpush3.bf16.msra.mxu1 %v19985_v30 }
 0xf09   : > { %18559 = vmatprep.subr.bf16.mxu1 %v22844_v20 }
 0xf0c   : > { %18561 = vmatpush3.bf16.msra.mxu1 %v20023_v45 }
 0xf0d   : > { %18562 = vmatprep.subr.bf16.mxu1 %v22844_v20 }
 0xf10   : > { %18564 = vmatpush3.bf16.msra.mxu1 %v20083_v31 }
 0xf11   : > { %18565 = vmatprep.subr.bf16.mxu1 %v22844_v20 }
 0xf14   : > { %18567 = vmatpush3.bf16.msra.mxu1 %v22903_v15 }
 0xf15   : > { %18568 = vmatprep.subr.bf16.mxu1 %v22844_v20 }
 0xf18   : > { %18570 = vmatpush3.bf16.msra.mxu1 %v22905_v13 }
 0xf19   : > { %18571 = vmatprep.subr.bf16.mxu1 %v22844_v20 }
 0xf1c   : > { %18573 = vmatpush3.bf16.msra.mxu1 %v22907_v56 }
 0xf1d   : > { %18574 = vmatprep.subr.bf16.mxu1 %v22844_v20 }
 0xf20   : > { %18576 = vmatpush3.bf16.msra.mxu1 %v22909_v10 }
 0xf21   : > { %18721 = vmatprep.subr.bf16.mxu1 %v22844_v20 }
 0xf23   : > { %15851 = vmatmul.mubr.f32.vlgmr.msra.gmra.mrb[10].mxu1 %v21924_v63 }
 0xf24   : > { %18723 = vmatpush3.bf16.msra.mxu1 %v19953_v18  ;;  %16095 = vmatprep.mubr.msk.f32.mxu1 %vm19848_vm1, %v22845_v2 }
 0xf25   : > { %18724 = vmatprep.subr.bf16.mxu1 %v22844_v20 }
 0xf28   : > { %18726 = vmatpush3.bf16.msra.mxu1 %v19985_v30 }
 0xf29   : > { %18727 = vmatprep.subr.bf16.mxu1 %v22844_v20 }
 0xf2c   : > { %18729 = vmatpush3.bf16.msra.mxu1 %v20023_v45 }
 0xf2d   : > { %18730 = vmatprep.subr.bf16.mxu1 %v22844_v20 }
 0xf30   : > { %18732 = vmatpush3.bf16.msra.mxu1 %v20083_v31 }
 0xf31   : > { %18733 = vmatprep.subr.bf16.mxu1 %v22844_v20 }
 0xf34   : > { %18735 = vmatpush3.bf16.msra.mxu1 %v22903_v15 }
 0xf35   : > { %18736 = vmatprep.subr.bf16.mxu1 %v22844_v20 }
 0xf38   : > { %18738 = vmatpush3.bf16.msra.mxu1 %v22905_v13 }
 0xf39   : > { %18739 = vmatprep.subr.bf16.mxu1 %v22844_v20 }
 0xf3c   : > { %18741 = vmatpush3.bf16.msra.mxu1 %v22907_v56 }
 0xf3d   : > { %18742 = vmatprep.subr.bf16.mxu1 %v22844_v20 }
 0xf40   : > { %18744 = vmatpush3.bf16.msra.mxu1 %v22909_v10 }
 0xf41   : > { %18745 = vmatprep.subr.bf16.mxu1 %v22844_v20 }
 0xff6   : > { %v8111_v55 = vpop.f32.mrb[10].mxu1 }
 0xff7   : > { %v8115_v51 = vadd.f32 %v20956_v26, %v8111_v55  ;;  %v15852_v1 = vpop.f32.mrb[11].mxu1 }
 0xff9   : > { %v8116_v32 = vmax.f32 %v8115_v51, 0.0 }
 0xffb   : > { %v8117_v29 = vadd.f32 %v20960_v23, %v8116_v32 }
 0xffd   : > { %v8118_v11 = vmax.f32 %v8117_v29, 0.0 }
 0xfff   : > { %12112 = vst [vmem:[%s19909_s29 + $0x48] sm:$0xff] %v8118_v11  ;;  %v22041_v57 = vand.u32 4294901760, %v8118_v11 }
0x1001   : > { %v8205_v4 = vsub.f32 %v8118_v11, %v22041_v57 }
0x1003   : > { %v8206_v41 = vand.u32 4294901760, %v8205_v4 }
0x1005   : > { %v8207_v62 = vsub.f32 %v8205_v4, %v8206_v41 }
0x1007   : > { %v8208_v48 = vand.u32 4294901760, %v8207_v62 }
0x1009   : > { %15886 = vmatmul.mubr.f32.vlgmr.msra.gmra.mrb[40].mxu0 %v8208_v48 }
0x100a   : > { %18603 = vmatpush3.bf16.msra.mxu0 %v22950_v28  ;;  %15920 = vmatprep.mubr.msk.f32.mxu0 %vm19848_vm1, %v22845_v2 }
0x100b   : > { %18604 = vmatprep.subr.bf16.mxu0 %v22844_v20 }
0x100e   : > { %18606 = vmatpush3.bf16.msra.mxu0 %v22951_v7 }
0x100f   : > { %18607 = vmatprep.subr.bf16.mxu0 %v22844_v20 }
0x1012   : > { %18609 = vmatpush3.bf16.msra.mxu0 %v22952_v53 }
0x1013   : > { %18610 = vmatprep.subr.bf16.mxu0 %v22844_v20 }
0x1016   : > { %18612 = vmatpush3.bf16.msra.mxu0 %v22953_v24 }
0x1017   : > { %18613 = vmatprep.subr.bf16.mxu0 %v22844_v20 }
0x101a   : > { %18615 = vmatpush3.bf16.msra.mxu0 %v22954_v14 }
0x101b   : > { %18616 = vmatprep.subr.bf16.mxu0 %v22844_v20 }
0x101e   : > { %18618 = vmatpush3.bf16.msra.mxu0 %v22956_v16 }
0x101f   : > { %18619 = vmatprep.subr.bf16.mxu0 %v22844_v20 }
0x1022   : > { %18621 = vmatpush3.bf16.msra.mxu0 %v20470_v60 }
0x1023   : > { %18622 = vmatprep.subr.bf16.mxu0 %v22844_v20 }
0x1026   : > { %18624 = vmatpush3.bf16.msra.mxu0 %v20524_v37 }
0x1027   : > { %18625 = vmatprep.subr.bf16.mxu0 %v22844_v20 }
0x1029   : > { %15921 = vmatmul.mubr.f32.vlgmr.msra.gmra.mrb[40].mxu0 %v22041_v57 }
0x102a   : > { %18627 = vmatpush3.bf16.msra.mxu0 %v20535_v17  ;;  %15955 = vmatprep.mubr.msk.f32.mxu0 %vm19848_vm1, %v22845_v2 }
0x102b   : > { %18628 = vmatprep.subr.bf16.mxu0 %v22844_v20 }
0x102e   : > { %18630 = vmatpush3.bf16.msra.mxu0 %v20546_v42 }
0x102f   : > { %18631 = vmatprep.subr.bf16.mxu0 %v22844_v20 }
0x1032   : > { %18633 = vmatpush3.bf16.msra.mxu0 %v20555_v34 }
0x1033   : > { %18634 = vmatprep.subr.bf16.mxu0 %v22844_v20 }
0x1036   : > { %18636 = vmatpush3.bf16.msra.mxu0 %v20562_v3 }
0x1037   : > { %18637 = vmatprep.subr.bf16.mxu0 %v22844_v20 }
0x103a   : > { %18639 = vmatpush3.bf16.msra.mxu0 %v20570_v44 }
0x103b   : > { %18640 = vmatprep.subr.bf16.mxu0 %v22844_v20 }
0x103e   : > { %18642 = vmatpush3.bf16.msra.mxu0 %v20579_v9 }
0x103f   : > { %18643 = vmatprep.subr.bf16.mxu0 %v22844_v20 }
0x1042   : > { %18645 = vmatpush3.bf16.msra.mxu0 %v20587_v43 }
0x1043   : > { %18646 = vmatprep.subr.bf16.mxu0 %v22844_v20 }
0x1046   : > { %18648 = vmatpush3.bf16.msra.mxu0 %v20595_v61 }
0x1047   : > { %18649 = vmatprep.subr.bf16.mxu0 %v22844_v20 }
0x1049   : > { %15956 = vmatmul.mubr.f32.vlgmr.msra.gmra.mrb[40].mxu0 %v8205_v4  ;;  %v22975_v4 = vld [vmem:[#allocation26_spill] sm:$0xff] }
0x104a   : > { %18651 = vmatpush3.bf16.msra.mxu0 %v19953_v18  ;;  %15990 = vmatprep.mubr.msk.f32.mxu0 %vm19848_vm1, %v22845_v2 }
0x104b   : > { %18652 = vmatprep.subr.bf16.mxu0 %v22844_v20 }
0x104e   : > { %18654 = vmatpush3.bf16.msra.mxu0 %v19985_v30 }
0x104f   : > { %18655 = vmatprep.subr.bf16.mxu0 %v22844_v20 }
0x1052   : > { %18657 = vmatpush3.bf16.msra.mxu0 %v20023_v45 }
0x1053   : > { %18658 = vmatprep.subr.bf16.mxu0 %v22844_v20 }
0x1056   : > { %18660 = vmatpush3.bf16.msra.mxu0 %v20083_v31 }
0x1057   : > { %18661 = vmatprep.subr.bf16.mxu0 %v22844_v20 }
0x105a   : > { %18663 = vmatpush3.bf16.msra.mxu0 %v22903_v15 }
0x105b   : > { %18664 = vmatprep.subr.bf16.mxu0 %v22844_v20 }
0x105e   : > { %18666 = vmatpush3.bf16.msra.mxu0 %v22905_v13 }
0x105f   : > { %18667 = vmatprep.subr.bf16.mxu0 %v22844_v20 }
0x1062   : > { %18669 = vmatpush3.bf16.msra.mxu0 %v22907_v56 }
0x1063   : > { %18670 = vmatprep.subr.bf16.mxu0 %v22844_v20 }
0x1066   : > { %18672 = vmatpush3.bf16.msra.mxu0 %v22909_v10 }
0x1067   : > { %18673 = vmatprep.subr.bf16.mxu0 %v22844_v20 }
0x1069   : > { %15991 = vmatmul.mubr.f32.vlgmr.msra.gmra.mrb[40].mxu0 %v8206_v41 }
0x106a   : > { %18675 = vmatpush3.bf16.msra.mxu0 %v20480_v27  ;;  %16025 = vmatprep.mubr.msk.f32.mxu0 %vm19848_vm1, %v22845_v2 }
0x106b   : > { %18676 = vmatprep.subr.bf16.mxu0 %v22844_v20 }
0x106e   : > { %18678 = vmatpush3.bf16.msra.mxu0 %v20486_v40 }
0x106f   : > { %18679 = vmatprep.subr.bf16.mxu0 %v22844_v20 }
0x1072   : > { %18681 = vmatpush3.bf16.msra.mxu0 %v20492_v22 }
0x1073   : > { %18682 = vmatprep.subr.bf16.mxu0 %v22844_v20 }
0x1076   : > { %18684 = vmatpush3.bf16.msra.mxu0 %v20498_v52 }
0x1077   : > { %18685 = vmatprep.subr.bf16.mxu0 %v22844_v20 }
0x107a   : > { %18687 = vmatpush3.bf16.msra.mxu0 %v22968_v36 }
0x107b   : > { %18688 = vmatprep.subr.bf16.mxu0 %v22844_v20 }
0x107e   : > { %18690 = vmatpush3.bf16.msra.mxu0 %v22969_v21 }
0x107f   : > { %18691 = vmatprep.subr.bf16.mxu0 %v22844_v20 }
0x1082   : > { %18693 = vmatpush3.bf16.msra.mxu0 %v22970_v33 }
0x1083   : > { %18694 = vmatprep.subr.bf16.mxu0 %v22844_v20 }
0x1086   : > { %18696 = vmatpush3.bf16.msra.mxu0 %v22971_v50 }
0x1087   : > { %18697 = vmatprep.subr.bf16.mxu0 %v22844_v20 }
0x1089   : > { %16026 = vmatmul.mubr.f32.vlgmr.msra.gmra.mrb[40].mxu0 %v22041_v57 }
0x108a   : > { %18699 = vmatpush3.bf16.msra.mxu0 %v19953_v18  ;;  %16060 = vmatprep.mubr.msk.f32.mxu0 %vm19848_vm1, %v22845_v2 }
0x108b   : > { %18700 = vmatprep.subr.bf16.mxu0 %v22844_v20 }
0x108e   : > { %18702 = vmatpush3.bf16.msra.mxu0 %v19985_v30 }
0x108f   : > { %18703 = vmatprep.subr.bf16.mxu0 %v22844_v20 }
0x1092   : > { %18705 = vmatpush3.bf16.msra.mxu0 %v20023_v45 }
0x1093   : > { %18706 = vmatprep.subr.bf16.mxu0 %v22844_v20 }
0x1096   : > { %18708 = vmatpush3.bf16.msra.mxu0 %v20083_v31 }
0x1097   : > { %18709 = vmatprep.subr.bf16.mxu0 %v22844_v20 }
0x109a   : > { %18711 = vmatpush3.bf16.msra.mxu0 %v22903_v15 }
0x109b   : > { %18712 = vmatprep.subr.bf16.mxu0 %v22844_v20 }
0x109e   : > { %18714 = vmatpush3.bf16.msra.mxu0 %v22905_v13 }
0x109f   : > { %18715 = vmatprep.subr.bf16.mxu0 %v22844_v20 }
0x10a2   : > { %18717 = vmatpush3.bf16.msra.mxu0 %v22907_v56 }
0x10a3   : > { %18718 = vmatprep.subr.bf16.mxu0 %v22844_v20 }
0x10a6   : > { %18720 = vmatpush3.bf16.msra.mxu0 %v22909_v10 }
0x10a7   : > { %18865 = vmatprep.subr.bf16.mxu0 %v22844_v20 }
0x10a9   : > { %16061 = vmatmul.mubr.f32.vlgmr.msra.gmra.mrb[40].mxu0 %v22041_v57 }
0x10aa   : > { %18867 = vmatpush3.bf16.msra.mxu0 %v19953_v18  ;;  %16305 = vmatprep.mubr.msk.f32.mxu0 %vm19848_vm1, %v22845_v2 }
0x10ab   : > { %18868 = vmatprep.subr.bf16.mxu0 %v22844_v20 }
0x10ae   : > { %18870 = vmatpush3.bf16.msra.mxu0 %v19985_v30 }
0x10af   : > { %18871 = vmatprep.subr.bf16.mxu0 %v22844_v20 }
0x10b2   : > { %18873 = vmatpush3.bf16.msra.mxu0 %v20023_v45 }
0x10b3   : > { %18874 = vmatprep.subr.bf16.mxu0 %v22844_v20 }
0x10b6   : > { %18876 = vmatpush3.bf16.msra.mxu0 %v20083_v31 }
0x10b7   : > { %18877 = vmatprep.subr.bf16.mxu0 %v22844_v20 }
0x10ba   : > { %18879 = vmatpush3.bf16.msra.mxu0 %v22903_v15 }
0x10bb   : > { %18880 = vmatprep.subr.bf16.mxu0 %v22844_v20 }
0x10be   : > { %18882 = vmatpush3.bf16.msra.mxu0 %v22905_v13 }
0x10bf   : > { %18883 = vmatprep.subr.bf16.mxu0 %v22844_v20 }
0x10c2   : > { %18885 = vmatpush3.bf16.msra.mxu0 %v22907_v56 }
0x10c3   : > { %18886 = vmatprep.subr.bf16.mxu0 %v22844_v20 }
0x10c6   : > { %18888 = vmatpush3.bf16.msra.mxu0 %v22909_v10 }
0x10c7   : > { %18889 = vmatprep.subr.bf16.mxu0 %v22844_v20 }
0x117c   : > { %v8760_v26 = vpop.f32.mrb[40].mxu0 }
0x117d   : > { %v8764_v23 = vadd.f32 %v20964_v46, %v8760_v26  ;;  %v16062_v6 = vpop.f32.mrb[41].mxu0  ;;  %v22976_v26 = vld [vmem:[#allocation17_spill] sm:$0xff] }
0x117f   : > { %v8765_v54 = vmax.f32 %v8764_v23, 0.0 }
0x1181   : > { %v8766_v39 = vadd.f32 %v22972_v49, %v8765_v54 }
0x1183   : > { %v8767_v19 = vmax.f32 %v8766_v39, 0.0 }
0x1185   : > { %12113 = vst [vmem:[%s19909_s29 + $0x50] sm:$0xff] %v8767_v19  ;;  %v22158_v47 = vand.u32 4294901760, %v8767_v19 }
0x1187   : > { %v8854_v35 = vsub.f32 %v8767_v19, %v22158_v47 }
0x1189   : > { %v8855_v5 = vand.u32 4294901760, %v8854_v35 }
0x118b   : > { %v8856_v12 = vsub.f32 %v8854_v35, %v8855_v5 }
0x118d   : > { %v8857_v59 = vand.u32 4294901760, %v8856_v12 }
0x118f   : > { %16096 = vmatmul.mubr.f32.vlgmr.msra.gmra.mrb[12].mxu1 %v8857_v59 }
0x1190   : > { %18747 = vmatpush3.bf16.msra.mxu1 %v22950_v28  ;;  %16130 = vmatprep.mubr.msk.f32.mxu1 %vm19848_vm1, %v22845_v2 }
0x1191   : > { %18748 = vmatprep.subr.bf16.mxu1 %v22844_v20 }
0x1194   : > { %18750 = vmatpush3.bf16.msra.mxu1 %v22951_v7 }
0x1195   : > { %18751 = vmatprep.subr.bf16.mxu1 %v22844_v20 }
0x1198   : > { %18753 = vmatpush3.bf16.msra.mxu1 %v22952_v53 }
0x1199   : > { %18754 = vmatprep.subr.bf16.mxu1 %v22844_v20 }
0x119c   : > { %18756 = vmatpush3.bf16.msra.mxu1 %v22953_v24 }
0x119d   : > { %18757 = vmatprep.subr.bf16.mxu1 %v22844_v20 }
0x11a0   : > { %18759 = vmatpush3.bf16.msra.mxu1 %v22954_v14 }
0x11a1   : > { %18760 = vmatprep.subr.bf16.mxu1 %v22844_v20 }
0x11a4   : > { %18762 = vmatpush3.bf16.msra.mxu1 %v22956_v16 }
0x11a5   : > { %18763 = vmatprep.subr.bf16.mxu1 %v22844_v20 }
0x11a8   : > { %18765 = vmatpush3.bf16.msra.mxu1 %v20470_v60 }
0x11a9   : > { %18766 = vmatprep.subr.bf16.mxu1 %v22844_v20 }
0x11ac   : > { %18768 = vmatpush3.bf16.msra.mxu1 %v20524_v37 }
0x11ad   : > { %18769 = vmatprep.subr.bf16.mxu1 %v22844_v20 }
0x11af   : > { %16131 = vmatmul.mubr.f32.vlgmr.msra.gmra.mrb[12].mxu1 %v22158_v47 }
0x11b0   : > { %18771 = vmatpush3.bf16.msra.mxu1 %v20535_v17  ;;  %16165 = vmatprep.mubr.msk.f32.mxu1 %vm19848_vm1, %v22845_v2 }
0x11b1   : > { %18772 = vmatprep.subr.bf16.mxu1 %v22844_v20 }
0x11b4   : > { %18774 = vmatpush3.bf16.msra.mxu1 %v20546_v42 }
0x11b5   : > { %18775 = vmatprep.subr.bf16.mxu1 %v22844_v20 }
0x11b8   : > { %18777 = vmatpush3.bf16.msra.mxu1 %v20555_v34 }
0x11b9   : > { %18778 = vmatprep.subr.bf16.mxu1 %v22844_v20 }
0x11bc   : > { %18780 = vmatpush3.bf16.msra.mxu1 %v20562_v3 }
0x11bd   : > { %18781 = vmatprep.subr.bf16.mxu1 %v22844_v20 }
0x11c0   : > { %18783 = vmatpush3.bf16.msra.mxu1 %v20570_v44 }
0x11c1   : > { %18784 = vmatprep.subr.bf16.mxu1 %v22844_v20 }
0x11c4   : > { %18786 = vmatpush3.bf16.msra.mxu1 %v20579_v9 }
0x11c5   : > { %18787 = vmatprep.subr.bf16.mxu1 %v22844_v20 }
0x11c8   : > { %18789 = vmatpush3.bf16.msra.mxu1 %v20587_v43 }
0x11c9   : > { %18790 = vmatprep.subr.bf16.mxu1 %v22844_v20 }
0x11cc   : > { %18792 = vmatpush3.bf16.msra.mxu1 %v20595_v61 }
0x11cd   : > { %18793 = vmatprep.subr.bf16.mxu1 %v22844_v20 }
0x11cf   : > { %16166 = vmatmul.mubr.f32.vlgmr.msra.gmra.mrb[12].mxu1 %v8854_v35 }
0x11d0   : > { %18795 = vmatpush3.bf16.msra.mxu1 %v19953_v18  ;;  %16200 = vmatprep.mubr.msk.f32.mxu1 %vm19848_vm1, %v22845_v2 }
0x11d1   : > { %18796 = vmatprep.subr.bf16.mxu1 %v22844_v20 }
0x11d4   : > { %18798 = vmatpush3.bf16.msra.mxu1 %v19985_v30 }
0x11d5   : > { %18799 = vmatprep.subr.bf16.mxu1 %v22844_v20 }
0x11d8   : > { %18801 = vmatpush3.bf16.msra.mxu1 %v20023_v45 }
0x11d9   : > { %18802 = vmatprep.subr.bf16.mxu1 %v22844_v20 }
0x11dc   : > { %18804 = vmatpush3.bf16.msra.mxu1 %v20083_v31 }
0x11dd   : > { %18805 = vmatprep.subr.bf16.mxu1 %v22844_v20 }
0x11e0   : > { %18807 = vmatpush3.bf16.msra.mxu1 %v22903_v15 }
0x11e1   : > { %18808 = vmatprep.subr.bf16.mxu1 %v22844_v20 }
0x11e4   : > { %18810 = vmatpush3.bf16.msra.mxu1 %v22905_v13 }
0x11e5   : > { %18811 = vmatprep.subr.bf16.mxu1 %v22844_v20 }
0x11e8   : > { %18813 = vmatpush3.bf16.msra.mxu1 %v22907_v56 }
0x11e9   : > { %18814 = vmatprep.subr.bf16.mxu1 %v22844_v20 }
0x11ec   : > { %18816 = vmatpush3.bf16.msra.mxu1 %v22909_v10 }
0x11ed   : > { %18817 = vmatprep.subr.bf16.mxu1 %v22844_v20 }
0x11ef   : > { %16201 = vmatmul.mubr.f32.vlgmr.msra.gmra.mrb[12].mxu1 %v8855_v5  ;;  %v22977_v5 = vld [vmem:[#allocation30_spill] sm:$0xff] }
0x11f0   : > { %18819 = vmatpush3.bf16.msra.mxu1 %v20480_v27  ;;  %16235 = vmatprep.mubr.msk.f32.mxu1 %vm19848_vm1, %v22845_v2 }
0x11f1   : > { %18820 = vmatprep.subr.bf16.mxu1 %v22844_v20 }
0x11f4   : > { %18822 = vmatpush3.bf16.msra.mxu1 %v20486_v40 }
0x11f5   : > { %18823 = vmatprep.subr.bf16.mxu1 %v22844_v20 }
0x11f8   : > { %18825 = vmatpush3.bf16.msra.mxu1 %v20492_v22 }
0x11f9   : > { %18826 = vmatprep.subr.bf16.mxu1 %v22844_v20 }
0x11fc   : > { %18828 = vmatpush3.bf16.msra.mxu1 %v20498_v52 }
0x11fd   : > { %18829 = vmatprep.subr.bf16.mxu1 %v22844_v20 }
0x1200   : > { %18831 = vmatpush3.bf16.msra.mxu1 %v22968_v36 }
0x1201   : > { %18832 = vmatprep.subr.bf16.mxu1 %v22844_v20 }
0x1204   : > { %18834 = vmatpush3.bf16.msra.mxu1 %v22969_v21 }
0x1205   : > { %18835 = vmatprep.subr.bf16.mxu1 %v22844_v20 }
0x1208   : > { %18837 = vmatpush3.bf16.msra.mxu1 %v22970_v33 }
0x1209   : > { %18838 = vmatprep.subr.bf16.mxu1 %v22844_v20 }
0x120c   : > { %18840 = vmatpush3.bf16.msra.mxu1 %v22971_v50 }
0x120d   : > { %18841 = vmatprep.subr.bf16.mxu1 %v22844_v20 }
0x120f   : > { %16236 = vmatmul.mubr.f32.vlgmr.msra.gmra.mrb[12].mxu1 %v22158_v47 }
0x1210   : > { %18843 = vmatpush3.bf16.msra.mxu1 %v19953_v18  ;;  %16270 = vmatprep.mubr.msk.f32.mxu1 %vm19848_vm1, %v22845_v2 }
0x1211   : > { %18844 = vmatprep.subr.bf16.mxu1 %v22844_v20 }
0x1214   : > { %18846 = vmatpush3.bf16.msra.mxu1 %v19985_v30 }
0x1215   : > { %18847 = vmatprep.subr.bf16.mxu1 %v22844_v20 }
0x1218   : > { %18849 = vmatpush3.bf16.msra.mxu1 %v20023_v45 }
0x1219   : > { %18850 = vmatprep.subr.bf16.mxu1 %v22844_v20 }
0x121c   : > { %18852 = vmatpush3.bf16.msra.mxu1 %v20083_v31 }
0x121d   : > { %18853 = vmatprep.subr.bf16.mxu1 %v22844_v20 }
0x1220   : > { %18855 = vmatpush3.bf16.msra.mxu1 %v22903_v15 }
0x1221   : > { %18856 = vmatprep.subr.bf16.mxu1 %v22844_v20 }
0x1224   : > { %18858 = vmatpush3.bf16.msra.mxu1 %v22905_v13 }
0x1225   : > { %18859 = vmatprep.subr.bf16.mxu1 %v22844_v20 }
0x1228   : > { %18861 = vmatpush3.bf16.msra.mxu1 %v22907_v56 }
0x1229   : > { %18862 = vmatprep.subr.bf16.mxu1 %v22844_v20 }
0x122c   : > { %18864 = vmatpush3.bf16.msra.mxu1 %v22909_v10 }
0x122d   : > { %19009 = vmatprep.subr.bf16.mxu1 %v22844_v20 }
0x122f   : > { %16271 = vmatmul.mubr.f32.vlgmr.msra.gmra.mrb[12].mxu1 %v22158_v47 }
0x1230   : > { %19011 = vmatpush3.bf16.msra.mxu1 %v19953_v18  ;;  %16515 = vmatprep.mubr.msk.f32.mxu1 %vm19848_vm1, %v22845_v2 }
0x1231   : > { %19012 = vmatprep.subr.bf16.mxu1 %v22844_v20 }
0x1234   : > { %19014 = vmatpush3.bf16.msra.mxu1 %v19985_v30 }
0x1235   : > { %19015 = vmatprep.subr.bf16.mxu1 %v22844_v20 }
0x1238   : > { %19017 = vmatpush3.bf16.msra.mxu1 %v20023_v45 }
0x1239   : > { %19018 = vmatprep.subr.bf16.mxu1 %v22844_v20 }
0x123c   : > { %19020 = vmatpush3.bf16.msra.mxu1 %v20083_v31 }
0x123d   : > { %19021 = vmatprep.subr.bf16.mxu1 %v22844_v20 }
0x1240   : > { %19023 = vmatpush3.bf16.msra.mxu1 %v22903_v15 }
0x1241   : > { %19024 = vmatprep.subr.bf16.mxu1 %v22844_v20 }
0x1244   : > { %19026 = vmatpush3.bf16.msra.mxu1 %v22905_v13 }
0x1245   : > { %19027 = vmatprep.subr.bf16.mxu1 %v22844_v20 }
0x1248   : > { %19029 = vmatpush3.bf16.msra.mxu1 %v22907_v56 }
0x1249   : > { %19030 = vmatprep.subr.bf16.mxu1 %v22844_v20 }
0x124c   : > { %19032 = vmatpush3.bf16.msra.mxu1 %v22909_v10 }
0x124d   : > { %19033 = vmatprep.subr.bf16.mxu1 %v22844_v20 }
0x1302   : > { %v9409_v46 = vpop.f32.mrb[12].mxu1 }
0x1303   : > { %v9413_v63 = vadd.f32 %v22973_v38, %v9409_v46  ;;  %v16272_v0 = vpop.f32.mrb[13].mxu1  ;;  %v22978_v38 = vld [vmem:[#allocation18_spill] sm:$0xff] }
0x1305   : > { %v9414_v8 = vmax.f32 %v9413_v63, 0.0 }
0x1307   : > { %v9415_v58 = vadd.f32 %v22974_v25, %v9414_v8 }
0x1309   : > { %v9416_v55 = vmax.f32 %v9415_v58, 0.0 }
0x130b   : > { %12114 = vst [vmem:[%s19909_s29 + $0x58] sm:$0xff] %v9416_v55  ;;  %v22275_v51 = vand.u32 4294901760, %v9416_v55 }
0x130d   : > { %v9503_v1 = vsub.f32 %v9416_v55, %v22275_v51 }
0x130f   : > { %v9504_v32 = vand.u32 4294901760, %v9503_v1 }
0x1311   : > { %v9505_v29 = vsub.f32 %v9503_v1, %v9504_v32 }
0x1313   : > { %v9506_v11 = vand.u32 4294901760, %v9505_v29 }
0x1315   : > { %16306 = vmatmul.mubr.f32.vlgmr.msra.gmra.mrb[42].mxu0 %v9506_v11 }
0x1316   : > { %18891 = vmatpush3.bf16.msra.mxu0 %v22950_v28  ;;  %16340 = vmatprep.mubr.msk.f32.mxu0 %vm19848_vm1, %v22845_v2 }
0x1317   : > { %18892 = vmatprep.subr.bf16.mxu0 %v22844_v20 }
0x131a   : > { %18894 = vmatpush3.bf16.msra.mxu0 %v22951_v7 }
0x131b   : > { %18895 = vmatprep.subr.bf16.mxu0 %v22844_v20 }
0x131e   : > { %18897 = vmatpush3.bf16.msra.mxu0 %v22952_v53 }
0x131f   : > { %18898 = vmatprep.subr.bf16.mxu0 %v22844_v20 }
0x1322   : > { %18900 = vmatpush3.bf16.msra.mxu0 %v22953_v24 }
0x1323   : > { %18901 = vmatprep.subr.bf16.mxu0 %v22844_v20 }
0x1326   : > { %18903 = vmatpush3.bf16.msra.mxu0 %v22954_v14 }
0x1327   : > { %18904 = vmatprep.subr.bf16.mxu0 %v22844_v20 }
0x132a   : > { %18906 = vmatpush3.bf16.msra.mxu0 %v22956_v16 }
0x132b   : > { %18907 = vmatprep.subr.bf16.mxu0 %v22844_v20 }
0x132e   : > { %18909 = vmatpush3.bf16.msra.mxu0 %v20470_v60 }
0x132f   : > { %18910 = vmatprep.subr.bf16.mxu0 %v22844_v20 }
0x1332   : > { %18912 = vmatpush3.bf16.msra.mxu0 %v20524_v37 }
0x1333   : > { %18913 = vmatprep.subr.bf16.mxu0 %v22844_v20 }
0x1335   : > { %16341 = vmatmul.mubr.f32.vlgmr.msra.gmra.mrb[42].mxu0 %v22275_v51 }
0x1336   : > { %18915 = vmatpush3.bf16.msra.mxu0 %v20535_v17  ;;  %16375 = vmatprep.mubr.msk.f32.mxu0 %vm19848_vm1, %v22845_v2 }
0x1337   : > { %18916 = vmatprep.subr.bf16.mxu0 %v22844_v20 }
0x133a   : > { %18918 = vmatpush3.bf16.msra.mxu0 %v20546_v42 }
0x133b   : > { %18919 = vmatprep.subr.bf16.mxu0 %v22844_v20 }
0x133e   : > { %18921 = vmatpush3.bf16.msra.mxu0 %v20555_v34 }
0x133f   : > { %18922 = vmatprep.subr.bf16.mxu0 %v22844_v20 }
0x1342   : > { %18924 = vmatpush3.bf16.msra.mxu0 %v20562_v3 }
0x1343   : > { %18925 = vmatprep.subr.bf16.mxu0 %v22844_v20 }
0x1346   : > { %18927 = vmatpush3.bf16.msra.mxu0 %v20570_v44 }
0x1347   : > { %18928 = vmatprep.subr.bf16.mxu0 %v22844_v20 }
0x134a   : > { %18930 = vmatpush3.bf16.msra.mxu0 %v20579_v9 }
0x134b   : > { %18931 = vmatprep.subr.bf16.mxu0 %v22844_v20 }
0x134e   : > { %18933 = vmatpush3.bf16.msra.mxu0 %v20587_v43 }
0x134f   : > { %18934 = vmatprep.subr.bf16.mxu0 %v22844_v20 }
0x1352   : > { %18936 = vmatpush3.bf16.msra.mxu0 %v20595_v61 }
0x1353   : > { %18937 = vmatprep.subr.bf16.mxu0 %v22844_v20 }
0x1355   : > { %16376 = vmatmul.mubr.f32.vlgmr.msra.gmra.mrb[42].mxu0 %v9503_v1 }
0x1356   : > { %18939 = vmatpush3.bf16.msra.mxu0 %v19953_v18  ;;  %16410 = vmatprep.mubr.msk.f32.mxu0 %vm19848_vm1, %v22845_v2 }
0x1357   : > { %18940 = vmatprep.subr.bf16.mxu0 %v22844_v20 }
0x135a   : > { %18942 = vmatpush3.bf16.msra.mxu0 %v19985_v30 }
0x135b   : > { %18943 = vmatprep.subr.bf16.mxu0 %v22844_v20 }
0x135e   : > { %18945 = vmatpush3.bf16.msra.mxu0 %v20023_v45 }
0x135f   : > { %18946 = vmatprep.subr.bf16.mxu0 %v22844_v20 }
0x1362   : > { %18948 = vmatpush3.bf16.msra.mxu0 %v20083_v31 }
0x1363   : > { %18949 = vmatprep.subr.bf16.mxu0 %v22844_v20 }
0x1366   : > { %18951 = vmatpush3.bf16.msra.mxu0 %v22903_v15 }
0x1367   : > { %18952 = vmatprep.subr.bf16.mxu0 %v22844_v20 }
0x136a   : > { %18954 = vmatpush3.bf16.msra.mxu0 %v22905_v13 }
0x136b   : > { %18955 = vmatprep.subr.bf16.mxu0 %v22844_v20 }
0x136e   : > { %18957 = vmatpush3.bf16.msra.mxu0 %v22907_v56 }
0x136f   : > { %18958 = vmatprep.subr.bf16.mxu0 %v22844_v20 }
0x1372   : > { %18960 = vmatpush3.bf16.msra.mxu0 %v22909_v10 }
0x1373   : > { %18961 = vmatprep.subr.bf16.mxu0 %v22844_v20 }
0x1375   : > { %16411 = vmatmul.mubr.f32.vlgmr.msra.gmra.mrb[42].mxu0 %v9504_v32  ;;  %v22979_v32 = vld [vmem:[#allocation32_spill] sm:$0xff] }
0x1376   : > { %18963 = vmatpush3.bf16.msra.mxu0 %v20480_v27  ;;  %16445 = vmatprep.mubr.msk.f32.mxu0 %vm19848_vm1, %v22845_v2 }
0x1377   : > { %18964 = vmatprep.subr.bf16.mxu0 %v22844_v20 }
0x137a   : > { %18966 = vmatpush3.bf16.msra.mxu0 %v20486_v40 }
0x137b   : > { %18967 = vmatprep.subr.bf16.mxu0 %v22844_v20 }
0x137e   : > { %18969 = vmatpush3.bf16.msra.mxu0 %v20492_v22 }
0x137f   : > { %18970 = vmatprep.subr.bf16.mxu0 %v22844_v20 }
0x1382   : > { %18972 = vmatpush3.bf16.msra.mxu0 %v20498_v52 }
0x1383   : > { %18973 = vmatprep.subr.bf16.mxu0 %v22844_v20 }
0x1386   : > { %18975 = vmatpush3.bf16.msra.mxu0 %v22968_v36 }
0x1387   : > { %18976 = vmatprep.subr.bf16.mxu0 %v22844_v20 }
0x138a   : > { %18978 = vmatpush3.bf16.msra.mxu0 %v22969_v21 }
0x138b   : > { %18979 = vmatprep.subr.bf16.mxu0 %v22844_v20 }
0x138e   : > { %18981 = vmatpush3.bf16.msra.mxu0 %v22970_v33 }
0x138f   : > { %18982 = vmatprep.subr.bf16.mxu0 %v22844_v20 }
0x1392   : > { %18984 = vmatpush3.bf16.msra.mxu0 %v22971_v50 }
0x1393   : > { %18985 = vmatprep.subr.bf16.mxu0 %v22844_v20 }
0x1395   : > { %16446 = vmatmul.mubr.f32.vlgmr.msra.gmra.mrb[42].mxu0 %v22275_v51 }
0x1396   : > { %18987 = vmatpush3.bf16.msra.mxu0 %v19953_v18  ;;  %16480 = vmatprep.mubr.msk.f32.mxu0 %vm19848_vm1, %v22845_v2 }
0x1397   : > { %18988 = vmatprep.subr.bf16.mxu0 %v22844_v20 }
0x139a   : > { %18990 = vmatpush3.bf16.msra.mxu0 %v19985_v30 }
0x139b   : > { %18991 = vmatprep.subr.bf16.mxu0 %v22844_v20 }
0x139e   : > { %18993 = vmatpush3.bf16.msra.mxu0 %v20023_v45 }
0x139f   : > { %18994 = vmatprep.subr.bf16.mxu0 %v22844_v20 }
0x13a2   : > { %18996 = vmatpush3.bf16.msra.mxu0 %v20083_v31 }
0x13a3   : > { %18997 = vmatprep.subr.bf16.mxu0 %v22844_v20 }
0x13a6   : > { %18999 = vmatpush3.bf16.msra.mxu0 %v22903_v15 }
0x13a7   : > { %19000 = vmatprep.subr.bf16.mxu0 %v22844_v20 }
0x13aa   : > { %19002 = vmatpush3.bf16.msra.mxu0 %v22905_v13 }
0x13ab   : > { %19003 = vmatprep.subr.bf16.mxu0 %v22844_v20 }
0x13ae   : > { %19005 = vmatpush3.bf16.msra.mxu0 %v22907_v56 }
0x13af   : > { %19006 = vmatprep.subr.bf16.mxu0 %v22844_v20 }
0x13b2   : > { %19008 = vmatpush3.bf16.msra.mxu0 %v22909_v10 }
0x13b3   : > { %19153 = vmatprep.subr.bf16.mxu0 %v22844_v20 }
0x13b5   : > { %16481 = vmatmul.mubr.f32.vlgmr.msra.gmra.mrb[42].mxu0 %v22275_v51 }
0x13b6   : > { %19155 = vmatpush3.bf16.msra.mxu0 %v19953_v18  ;;  %16725 = vmatprep.mubr.msk.f32.mxu0 %vm19848_vm1, %v22845_v2 }
0x13b7   : > { %19156 = vmatprep.subr.bf16.mxu0 %v22844_v20 }
0x13ba   : > { %19158 = vmatpush3.bf16.msra.mxu0 %v19985_v30 }
0x13bb   : > { %19159 = vmatprep.subr.bf16.mxu0 %v22844_v20 }
0x13be   : > { %19161 = vmatpush3.bf16.msra.mxu0 %v20023_v45 }
0x13bf   : > { %19162 = vmatprep.subr.bf16.mxu0 %v22844_v20 }
0x13c2   : > { %19164 = vmatpush3.bf16.msra.mxu0 %v20083_v31 }
0x13c3   : > { %19165 = vmatprep.subr.bf16.mxu0 %v22844_v20 }
0x13c6   : > { %19167 = vmatpush3.bf16.msra.mxu0 %v22903_v15 }
0x13c7   : > { %19168 = vmatprep.subr.bf16.mxu0 %v22844_v20 }
0x13ca   : > { %19170 = vmatpush3.bf16.msra.mxu0 %v22905_v13 }
0x13cb   : > { %19171 = vmatprep.subr.bf16.mxu0 %v22844_v20 }
0x13ce   : > { %19173 = vmatpush3.bf16.msra.mxu0 %v22907_v56 }
0x13cf   : > { %19174 = vmatprep.subr.bf16.mxu0 %v22844_v20 }
0x13d2   : > { %19176 = vmatpush3.bf16.msra.mxu0 %v22909_v10 }
0x13d3   : > { %19177 = vmatprep.subr.bf16.mxu0 %v22844_v20 }
0x1488   : > { %v10058_v57 = vpop.f32.mrb[42].mxu0 }
0x1489   : > { %v10062_v41 = vadd.f32 %v22975_v4, %v10058_v57  ;;  %v16482_v62 = vpop.f32.mrb[43].mxu0  ;;  %v22980_v4 = vld [vmem:[#allocation4_spill] sm:$0xff] }
0x148b   : > { %v10063_v48 = vmax.f32 %v10062_v41, 0.0 }
0x148d   : > { %v10064_v23 = vadd.f32 %v22976_v26, %v10063_v48 }
0x148f   : > { %v10065_v6 = vmax.f32 %v10064_v23, 0.0 }
0x1491   : > { %12115 = vst [vmem:[%s19909_s29 + $0x60] sm:$0xff] %v10065_v6  ;;  %v22392_v54 = vand.u32 4294901760, %v10065_v6 }
0x1493   : > { %v10152_v49 = vsub.f32 %v10065_v6, %v22392_v54 }
0x1495   : > { %v10153_v39 = vand.u32 4294901760, %v10152_v49 }
0x1497   : > { %v10154_v19 = vsub.f32 %v10152_v49, %v10153_v39 }
0x1499   : > { %v10155_v47 = vand.u32 4294901760, %v10154_v19 }
0x149b   : > { %16516 = vmatmul.mubr.f32.vlgmr.msra.gmra.mrb[14].mxu1 %v10155_v47 }
0x149c   : > { %19035 = vmatpush3.bf16.msra.mxu1 %v22950_v28  ;;  %16550 = vmatprep.mubr.msk.f32.mxu1 %vm19848_vm1, %v22845_v2 }
0x149d   : > { %19036 = vmatprep.subr.bf16.mxu1 %v22844_v20 }
0x14a0   : > { %19038 = vmatpush3.bf16.msra.mxu1 %v22951_v7 }
0x14a1   : > { %19039 = vmatprep.subr.bf16.mxu1 %v22844_v20 }
0x14a4   : > { %19041 = vmatpush3.bf16.msra.mxu1 %v22952_v53 }
0x14a5   : > { %19042 = vmatprep.subr.bf16.mxu1 %v22844_v20 }
0x14a8   : > { %19044 = vmatpush3.bf16.msra.mxu1 %v22953_v24 }
0x14a9   : > { %19045 = vmatprep.subr.bf16.mxu1 %v22844_v20 }
0x14ac   : > { %19047 = vmatpush3.bf16.msra.mxu1 %v22954_v14 }
0x14ad   : > { %19048 = vmatprep.subr.bf16.mxu1 %v22844_v20 }
0x14b0   : > { %19050 = vmatpush3.bf16.msra.mxu1 %v22956_v16 }
0x14b1   : > { %19051 = vmatprep.subr.bf16.mxu1 %v22844_v20 }
0x14b4   : > { %19053 = vmatpush3.bf16.msra.mxu1 %v20470_v60 }
0x14b5   : > { %19054 = vmatprep.subr.bf16.mxu1 %v22844_v20 }
0x14b8   : > { %19056 = vmatpush3.bf16.msra.mxu1 %v20524_v37 }
0x14b9   : > { %19057 = vmatprep.subr.bf16.mxu1 %v22844_v20 }
0x14bb   : > { %16551 = vmatmul.mubr.f32.vlgmr.msra.gmra.mrb[14].mxu1 %v22392_v54 }
0x14bc   : > { %19059 = vmatpush3.bf16.msra.mxu1 %v20535_v17  ;;  %16585 = vmatprep.mubr.msk.f32.mxu1 %vm19848_vm1, %v22845_v2 }
0x14bd   : > { %19060 = vmatprep.subr.bf16.mxu1 %v22844_v20 }
0x14c0   : > { %19062 = vmatpush3.bf16.msra.mxu1 %v20546_v42 }
0x14c1   : > { %19063 = vmatprep.subr.bf16.mxu1 %v22844_v20 }
0x14c4   : > { %19065 = vmatpush3.bf16.msra.mxu1 %v20555_v34 }
0x14c5   : > { %19066 = vmatprep.subr.bf16.mxu1 %v22844_v20 }
0x14c8   : > { %19068 = vmatpush3.bf16.msra.mxu1 %v20562_v3 }
0x14c9   : > { %19069 = vmatprep.subr.bf16.mxu1 %v22844_v20 }
0x14cc   : > { %19071 = vmatpush3.bf16.msra.mxu1 %v20570_v44 }
0x14cd   : > { %19072 = vmatprep.subr.bf16.mxu1 %v22844_v20 }
0x14d0   : > { %19074 = vmatpush3.bf16.msra.mxu1 %v20579_v9 }
0x14d1   : > { %19075 = vmatprep.subr.bf16.mxu1 %v22844_v20 }
0x14d4   : > { %19077 = vmatpush3.bf16.msra.mxu1 %v20587_v43 }
0x14d5   : > { %19078 = vmatprep.subr.bf16.mxu1 %v22844_v20 }
0x14d8   : > { %19080 = vmatpush3.bf16.msra.mxu1 %v20595_v61 }
0x14d9   : > { %19081 = vmatprep.subr.bf16.mxu1 %v22844_v20 }
0x14db   : > { %16586 = vmatmul.mubr.f32.vlgmr.msra.gmra.mrb[14].mxu1 %v10152_v49 }
0x14dc   : > { %19083 = vmatpush3.bf16.msra.mxu1 %v19953_v18  ;;  %16620 = vmatprep.mubr.msk.f32.mxu1 %vm19848_vm1, %v22845_v2 }
0x14dd   : > { %19084 = vmatprep.subr.bf16.mxu1 %v22844_v20 }
0x14e0   : > { %19086 = vmatpush3.bf16.msra.mxu1 %v19985_v30 }
0x14e1   : > { %19087 = vmatprep.subr.bf16.mxu1 %v22844_v20 }
0x14e4   : > { %19089 = vmatpush3.bf16.msra.mxu1 %v20023_v45 }
0x14e5   : > { %19090 = vmatprep.subr.bf16.mxu1 %v22844_v20 }
0x14e8   : > { %19092 = vmatpush3.bf16.msra.mxu1 %v20083_v31 }
0x14e9   : > { %19093 = vmatprep.subr.bf16.mxu1 %v22844_v20 }
0x14ec   : > { %19095 = vmatpush3.bf16.msra.mxu1 %v22903_v15 }
0x14ed   : > { %19096 = vmatprep.subr.bf16.mxu1 %v22844_v20 }
0x14f0   : > { %19098 = vmatpush3.bf16.msra.mxu1 %v22905_v13 }
0x14f1   : > { %19099 = vmatprep.subr.bf16.mxu1 %v22844_v20 }
0x14f4   : > { %19101 = vmatpush3.bf16.msra.mxu1 %v22907_v56 }
0x14f5   : > { %19102 = vmatprep.subr.bf16.mxu1 %v22844_v20 }
0x14f8   : > { %19104 = vmatpush3.bf16.msra.mxu1 %v22909_v10 }
0x14f9   : > { %19105 = vmatprep.subr.bf16.mxu1 %v22844_v20 }
0x14fb   : > { %16621 = vmatmul.mubr.f32.vlgmr.msra.gmra.mrb[14].mxu1 %v10153_v39 }
0x14fc   : > { %19107 = vmatpush3.bf16.msra.mxu1 %v20480_v27  ;;  %16655 = vmatprep.mubr.msk.f32.mxu1 %vm19848_vm1, %v22845_v2 }
0x14fd   : > { %19108 = vmatprep.subr.bf16.mxu1 %v22844_v20 }
0x1500   : > { %19110 = vmatpush3.bf16.msra.mxu1 %v20486_v40 }
0x1501   : > { %19111 = vmatprep.subr.bf16.mxu1 %v22844_v20 }
0x1504   : > { %19113 = vmatpush3.bf16.msra.mxu1 %v20492_v22 }
0x1505   : > { %19114 = vmatprep.subr.bf16.mxu1 %v22844_v20 }
0x1508   : > { %19116 = vmatpush3.bf16.msra.mxu1 %v20498_v52 }
0x1509   : > { %19117 = vmatprep.subr.bf16.mxu1 %v22844_v20 }
0x150c   : > { %19119 = vmatpush3.bf16.msra.mxu1 %v22968_v36 }
0x150d   : > { %19120 = vmatprep.subr.bf16.mxu1 %v22844_v20 }
0x1510   : > { %19122 = vmatpush3.bf16.msra.mxu1 %v22969_v21 }
0x1511   : > { %19123 = vmatprep.subr.bf16.mxu1 %v22844_v20 }
0x1514   : > { %19125 = vmatpush3.bf16.msra.mxu1 %v22970_v33 }
0x1515   : > { %19126 = vmatprep.subr.bf16.mxu1 %v22844_v20 }
0x1518   : > { %19128 = vmatpush3.bf16.msra.mxu1 %v22971_v50 }
0x1519   : > { %19129 = vmatprep.subr.bf16.mxu1 %v22844_v20 }
0x151b   : > { %16656 = vmatmul.mubr.f32.vlgmr.msra.gmra.mrb[14].mxu1 %v22392_v54 }
0x151c   : > { %19131 = vmatpush3.bf16.msra.mxu1 %v19953_v18  ;;  %16690 = vmatprep.mubr.msk.f32.mxu1 %vm19848_vm1, %v22845_v2 }
0x151d   : > { %19132 = vmatprep.subr.bf16.mxu1 %v22844_v20 }
0x1520   : > { %19134 = vmatpush3.bf16.msra.mxu1 %v19985_v30 }
0x1521   : > { %19135 = vmatprep.subr.bf16.mxu1 %v22844_v20 }
0x1524   : > { %19137 = vmatpush3.bf16.msra.mxu1 %v20023_v45 }
0x1525   : > { %19138 = vmatprep.subr.bf16.mxu1 %v22844_v20 }
0x1528   : > { %19140 = vmatpush3.bf16.msra.mxu1 %v20083_v31 }
0x1529   : > { %19141 = vmatprep.subr.bf16.mxu1 %v22844_v20 }
0x152c   : > { %19143 = vmatpush3.bf16.msra.mxu1 %v22903_v15 }
0x152d   : > { %19144 = vmatprep.subr.bf16.mxu1 %v22844_v20 }
0x1530   : > { %19146 = vmatpush3.bf16.msra.mxu1 %v22905_v13 }
0x1531   : > { %19147 = vmatprep.subr.bf16.mxu1 %v22844_v20 }
0x1534   : > { %19149 = vmatpush3.bf16.msra.mxu1 %v22907_v56 }
0x1535   : > { %19150 = vmatprep.subr.bf16.mxu1 %v22844_v20 }
0x1538   : > { %19152 = vmatpush3.bf16.msra.mxu1 %v22909_v10 }
0x1539   : > { %19297 = vmatprep.subr.bf16.mxu1 %v22844_v20 }
0x153b   : > { %16691 = vmatmul.mubr.f32.vlgmr.msra.gmra.mrb[14].mxu1 %v22392_v54 }
0x153c   : > { %19299 = vmatpush3.bf16.msra.mxu1 %v19953_v18  ;;  %16935 = vmatprep.mubr.msk.f32.mxu1 %vm19848_vm1, %v22845_v2 }
0x153d   : > { %19300 = vmatprep.subr.bf16.mxu1 %v22844_v20 }
0x1540   : > { %19302 = vmatpush3.bf16.msra.mxu1 %v19985_v30 }
0x1541   : > { %19303 = vmatprep.subr.bf16.mxu1 %v22844_v20 }
0x1544   : > { %19305 = vmatpush3.bf16.msra.mxu1 %v20023_v45 }
0x1545   : > { %19306 = vmatprep.subr.bf16.mxu1 %v22844_v20 }
0x1548   : > { %19308 = vmatpush3.bf16.msra.mxu1 %v20083_v31 }
0x1549   : > { %19309 = vmatprep.subr.bf16.mxu1 %v22844_v20 }
0x154c   : > { %19311 = vmatpush3.bf16.msra.mxu1 %v22903_v15 }
0x154d   : > { %19312 = vmatprep.subr.bf16.mxu1 %v22844_v20 }
0x1550   : > { %19314 = vmatpush3.bf16.msra.mxu1 %v22905_v13 }
0x1551   : > { %19315 = vmatprep.subr.bf16.mxu1 %v22844_v20 }
0x1554   : > { %19317 = vmatpush3.bf16.msra.mxu1 %v22907_v56 }
0x1555   : > { %19318 = vmatprep.subr.bf16.mxu1 %v22844_v20 }
0x1558   : > { %19320 = vmatpush3.bf16.msra.mxu1 %v22909_v10 }
0x1559   : > { %19321 = vmatprep.subr.bf16.mxu1 %v22844_v20 }
0x160e   : > { %v10707_v35 = vpop.f32.mrb[14].mxu1 }
0x160f   : > { %v10711_v12 = vadd.f32 %v22977_v5, %v10707_v35  ;;  %v16692_v59 = vpop.f32.mrb[15].mxu1 }
0x1611   : > { %v10712_v46 = vmax.f32 %v10711_v12, 0.0 }
0x1613   : > { %v10713_v63 = vadd.f32 %v22978_v38, %v10712_v46 }
0x1615   : > { %v10714_v0 = vmax.f32 %v10713_v63, 0.0 }
0x1617   : > { %12116 = vst [vmem:[%s19909_s29 + $0x68] sm:$0xff] %v10714_v0  ;;  %v22509_v8 = vand.u32 4294901760, %v10714_v0 }
0x1619   : > { %v10801_v25 = vsub.f32 %v10714_v0, %v22509_v8 }
0x161b   : > { %v10802_v58 = vand.u32 4294901760, %v10801_v25 }
0x161d   : > { %v10803_v55 = vsub.f32 %v10801_v25, %v10802_v58 }
0x161f   : > { %v10804_v51 = vand.u32 4294901760, %v10803_v55 }
0x1621   : > { %16726 = vmatmul.mubr.f32.vlgmr.msra.gmra.mrb[44].mxu0 %v10804_v51 }
0x1622   : > { %19179 = vmatpush3.bf16.msra.mxu0 %v22950_v28  ;;  %16760 = vmatprep.mubr.msk.f32.mxu0 %vm19848_vm1, %v22845_v2 }
0x1623   : > { %19180 = vmatprep.subr.bf16.mxu0 %v22844_v20 }
0x1626   : > { %19182 = vmatpush3.bf16.msra.mxu0 %v22951_v7 }
0x1627   : > { %19183 = vmatprep.subr.bf16.mxu0 %v22844_v20 }
0x162a   : > { %19185 = vmatpush3.bf16.msra.mxu0 %v22952_v53 }
0x162b   : > { %19186 = vmatprep.subr.bf16.mxu0 %v22844_v20 }
0x162e   : > { %19188 = vmatpush3.bf16.msra.mxu0 %v22953_v24 }
0x162f   : > { %19189 = vmatprep.subr.bf16.mxu0 %v22844_v20 }
0x1632   : > { %19191 = vmatpush3.bf16.msra.mxu0 %v22954_v14 }
0x1633   : > { %19192 = vmatprep.subr.bf16.mxu0 %v22844_v20 }
0x1636   : > { %19194 = vmatpush3.bf16.msra.mxu0 %v22956_v16 }
0x1637   : > { %19195 = vmatprep.subr.bf16.mxu0 %v22844_v20 }
0x163a   : > { %19197 = vmatpush3.bf16.msra.mxu0 %v20470_v60 }
0x163b   : > { %19198 = vmatprep.subr.bf16.mxu0 %v22844_v20 }
0x163e   : > { %19200 = vmatpush3.bf16.msra.mxu0 %v20524_v37 }
0x163f   : > { %19201 = vmatprep.subr.bf16.mxu0 %v22844_v20 }
0x1641   : > { %16761 = vmatmul.mubr.f32.vlgmr.msra.gmra.mrb[44].mxu0 %v22509_v8 }
0x1642   : > { %19203 = vmatpush3.bf16.msra.mxu0 %v20535_v17  ;;  %16795 = vmatprep.mubr.msk.f32.mxu0 %vm19848_vm1, %v22845_v2 }
0x1643   : > { %19204 = vmatprep.subr.bf16.mxu0 %v22844_v20 }
0x1646   : > { %19206 = vmatpush3.bf16.msra.mxu0 %v20546_v42 }
0x1647   : > { %19207 = vmatprep.subr.bf16.mxu0 %v22844_v20 }
0x164a   : > { %19209 = vmatpush3.bf16.msra.mxu0 %v20555_v34 }
0x164b   : > { %19210 = vmatprep.subr.bf16.mxu0 %v22844_v20 }
0x164e   : > { %19212 = vmatpush3.bf16.msra.mxu0 %v20562_v3 }
0x164f   : > { %19213 = vmatprep.subr.bf16.mxu0 %v22844_v20 }
0x1652   : > { %19215 = vmatpush3.bf16.msra.mxu0 %v20570_v44 }
0x1653   : > { %19216 = vmatprep.subr.bf16.mxu0 %v22844_v20 }
0x1656   : > { %19218 = vmatpush3.bf16.msra.mxu0 %v20579_v9 }
0x1657   : > { %19219 = vmatprep.subr.bf16.mxu0 %v22844_v20 }
0x165a   : > { %19221 = vmatpush3.bf16.msra.mxu0 %v20587_v43 }
0x165b   : > { %19222 = vmatprep.subr.bf16.mxu0 %v22844_v20 }
0x165e   : > { %19224 = vmatpush3.bf16.msra.mxu0 %v20595_v61 }
0x165f   : > { %19225 = vmatprep.subr.bf16.mxu0 %v22844_v20 }
0x1661   : > { %16796 = vmatmul.mubr.f32.vlgmr.msra.gmra.mrb[44].mxu0 %v10801_v25 }
0x1662   : > { %19227 = vmatpush3.bf16.msra.mxu0 %v19953_v18  ;;  %16830 = vmatprep.mubr.msk.f32.mxu0 %vm19848_vm1, %v22845_v2 }
0x1663   : > { %19228 = vmatprep.subr.bf16.mxu0 %v22844_v20 }
0x1666   : > { %19230 = vmatpush3.bf16.msra.mxu0 %v19985_v30 }
0x1667   : > { %19231 = vmatprep.subr.bf16.mxu0 %v22844_v20 }
0x166a   : > { %19233 = vmatpush3.bf16.msra.mxu0 %v20023_v45 }
0x166b   : > { %19234 = vmatprep.subr.bf16.mxu0 %v22844_v20 }
0x166e   : > { %19236 = vmatpush3.bf16.msra.mxu0 %v20083_v31 }
0x166f   : > { %19237 = vmatprep.subr.bf16.mxu0 %v22844_v20 }
0x1672   : > { %19239 = vmatpush3.bf16.msra.mxu0 %v22903_v15 }
0x1673   : > { %19240 = vmatprep.subr.bf16.mxu0 %v22844_v20 }
0x1676   : > { %19242 = vmatpush3.bf16.msra.mxu0 %v22905_v13 }
0x1677   : > { %19243 = vmatprep.subr.bf16.mxu0 %v22844_v20 }
0x167a   : > { %19245 = vmatpush3.bf16.msra.mxu0 %v22907_v56 }
0x167b   : > { %19246 = vmatprep.subr.bf16.mxu0 %v22844_v20 }
0x167e   : > { %19248 = vmatpush3.bf16.msra.mxu0 %v22909_v10 }
0x167f   : > { %19249 = vmatprep.subr.bf16.mxu0 %v22844_v20 }
0x1681   : > { %16831 = vmatmul.mubr.f32.vlgmr.msra.gmra.mrb[44].mxu0 %v10802_v58 }
0x1682   : > { %19251 = vmatpush3.bf16.msra.mxu0 %v20480_v27  ;;  %16865 = vmatprep.mubr.msk.f32.mxu0 %vm19848_vm1, %v22845_v2 }
0x1683   : > { %19252 = vmatprep.subr.bf16.mxu0 %v22844_v20 }
0x1686   : > { %19254 = vmatpush3.bf16.msra.mxu0 %v20486_v40 }
0x1687   : > { %19255 = vmatprep.subr.bf16.mxu0 %v22844_v20 }
0x168a   : > { %19257 = vmatpush3.bf16.msra.mxu0 %v20492_v22 }
0x168b   : > { %19258 = vmatprep.subr.bf16.mxu0 %v22844_v20 }
0x168e   : > { %19260 = vmatpush3.bf16.msra.mxu0 %v20498_v52 }
0x168f   : > { %19261 = vmatprep.subr.bf16.mxu0 %v22844_v20 }
0x1692   : > { %19263 = vmatpush3.bf16.msra.mxu0 %v22968_v36 }
0x1693   : > { %19264 = vmatprep.subr.bf16.mxu0 %v22844_v20 }
0x1696   : > { %19266 = vmatpush3.bf16.msra.mxu0 %v22969_v21 }
0x1697   : > { %19267 = vmatprep.subr.bf16.mxu0 %v22844_v20 }
0x169a   : > { %19269 = vmatpush3.bf16.msra.mxu0 %v22970_v33 }
0x169b   : > { %19270 = vmatprep.subr.bf16.mxu0 %v22844_v20 }
0x169e   : > { %19272 = vmatpush3.bf16.msra.mxu0 %v22971_v50 }
0x169f   : > { %19273 = vmatprep.subr.bf16.mxu0 %v22844_v20 }
0x16a1   : > { %16866 = vmatmul.mubr.f32.vlgmr.msra.gmra.mrb[44].mxu0 %v22509_v8 }
0x16a2   : > { %19275 = vmatpush3.bf16.msra.mxu0 %v19953_v18  ;;  %16900 = vmatprep.mubr.msk.f32.mxu0 %vm19848_vm1, %v22845_v2 }
0x16a3   : > { %19276 = vmatprep.subr.bf16.mxu0 %v22844_v20 }
0x16a6   : > { %19278 = vmatpush3.bf16.msra.mxu0 %v19985_v30 }
0x16a7   : > { %19279 = vmatprep.subr.bf16.mxu0 %v22844_v20 }
0x16aa   : > { %19281 = vmatpush3.bf16.msra.mxu0 %v20023_v45 }
0x16ab   : > { %19282 = vmatprep.subr.bf16.mxu0 %v22844_v20 }
0x16ae   : > { %19284 = vmatpush3.bf16.msra.mxu0 %v20083_v31 }
0x16af   : > { %19285 = vmatprep.subr.bf16.mxu0 %v22844_v20 }
0x16b2   : > { %19287 = vmatpush3.bf16.msra.mxu0 %v22903_v15 }
0x16b3   : > { %19288 = vmatprep.subr.bf16.mxu0 %v22844_v20 }
0x16b6   : > { %19290 = vmatpush3.bf16.msra.mxu0 %v22905_v13 }
0x16b7   : > { %19291 = vmatprep.subr.bf16.mxu0 %v22844_v20 }
0x16ba   : > { %19293 = vmatpush3.bf16.msra.mxu0 %v22907_v56 }
0x16bb   : > { %19294 = vmatprep.subr.bf16.mxu0 %v22844_v20 }
0x16be   : > { %19296 = vmatpush3.bf16.msra.mxu0 %v22909_v10 }
0x16c1   : > { %16901 = vmatmul.mubr.f32.vlgmr.msra.gmra.mrb[44].mxu0 %v22509_v8 }
0x1794   : > { %v11356_v1 = vpop.f32.mrb[44].mxu0 }
0x1795   : > { %v11360_v29 = vadd.f32 %v22979_v32, %v11356_v1  ;;  %v16902_v11 = vpop.f32.mrb[45].mxu0 }
0x1797   : > { %v11361_v57 = vmax.f32 %v11360_v29, 0.0 }
0x1799   : > { %v11362_v41 = vadd.f32 %v22980_v4, %v11361_v57 }
0x179b   : > { %v11363_v62 = vmax.f32 %v11362_v41, 0.0 }
0x179d   : > { %12117 = vst [vmem:[%s19909_s29 + $0x70] sm:$0xff] %v11363_v62  ;;  %v22607_v48 = vand.u32 4294901760, %v11363_v62 }
0x179f   : > { %v11450_v26 = vsub.f32 %v11363_v62, %v22607_v48 }
0x17a1   : > { %v11451_v23 = vand.u32 4294901760, %v11450_v26 }
0x17a3   : > { %v11452_v6 = vsub.f32 %v11450_v26, %v11451_v23 }
0x17a5   : > { %v11453_v54 = vand.u32 4294901760, %v11452_v6 }
0x17a7   : > { %16936 = vmatmul.mubr.f32.vlgmr.msra.gmra.mrb[16].mxu1 %v11453_v54 }
0x17a8   : > { %19323 = vmatpush3.bf16.msra.mxu1 %v22950_v28  ;;  %16970 = vmatprep.mubr.msk.f32.mxu1 %vm19848_vm1, %v22845_v2 }
0x17a9   : > { %19324 = vmatprep.subr.bf16.mxu1 %v22844_v20 }
0x17ac   : > { %19326 = vmatpush3.bf16.msra.mxu1 %v22951_v7 }
0x17ad   : > { %19327 = vmatprep.subr.bf16.mxu1 %v22844_v20 }
0x17b0   : > { %19329 = vmatpush3.bf16.msra.mxu1 %v22952_v53 }
0x17b1   : > { %19330 = vmatprep.subr.bf16.mxu1 %v22844_v20 }
0x17b4   : > { %19332 = vmatpush3.bf16.msra.mxu1 %v22953_v24 }
0x17b5   : > { %19333 = vmatprep.subr.bf16.mxu1 %v22844_v20 }
0x17b8   : > { %19335 = vmatpush3.bf16.msra.mxu1 %v22954_v14 }
0x17b9   : > { %19336 = vmatprep.subr.bf16.mxu1 %v22844_v20 }
0x17bc   : > { %19338 = vmatpush3.bf16.msra.mxu1 %v22956_v16 }
0x17bd   : > { %19339 = vmatprep.subr.bf16.mxu1 %v22844_v20 }
0x17c0   : > { %19341 = vmatpush3.bf16.msra.mxu1 %v20470_v60 }
0x17c1   : > { %19342 = vmatprep.subr.bf16.mxu1 %v22844_v20 }
0x17c4   : > { %19344 = vmatpush3.bf16.msra.mxu1 %v20524_v37 }
0x17c5   : > { %19345 = vmatprep.subr.bf16.mxu1 %v22844_v20 }
0x17c7   : > { %16971 = vmatmul.mubr.f32.vlgmr.msra.gmra.mrb[16].mxu1 %v22607_v48 }
0x17c8   : > { %19347 = vmatpush3.bf16.msra.mxu1 %v20535_v17  ;;  %17005 = vmatprep.mubr.msk.f32.mxu1 %vm19848_vm1, %v22845_v2 }
0x17c9   : > { %19348 = vmatprep.subr.bf16.mxu1 %v22844_v20 }
0x17cc   : > { %19350 = vmatpush3.bf16.msra.mxu1 %v20546_v42 }
0x17cd   : > { %19351 = vmatprep.subr.bf16.mxu1 %v22844_v20 }
0x17d0   : > { %19353 = vmatpush3.bf16.msra.mxu1 %v20555_v34 }
0x17d1   : > { %19354 = vmatprep.subr.bf16.mxu1 %v22844_v20 }
0x17d4   : > { %19356 = vmatpush3.bf16.msra.mxu1 %v20562_v3 }
0x17d5   : > { %19357 = vmatprep.subr.bf16.mxu1 %v22844_v20 }
0x17d8   : > { %19359 = vmatpush3.bf16.msra.mxu1 %v20570_v44 }
0x17d9   : > { %19360 = vmatprep.subr.bf16.mxu1 %v22844_v20 }
0x17dc   : > { %19362 = vmatpush3.bf16.msra.mxu1 %v20579_v9 }
0x17dd   : > { %19363 = vmatprep.subr.bf16.mxu1 %v22844_v20 }
0x17e0   : > { %19365 = vmatpush3.bf16.msra.mxu1 %v20587_v43 }
0x17e1   : > { %19366 = vmatprep.subr.bf16.mxu1 %v22844_v20 }
0x17e4   : > { %19368 = vmatpush3.bf16.msra.mxu1 %v20595_v61 }
0x17e5   : > { %19369 = vmatprep.subr.bf16.mxu1 %v22844_v20 }
0x17e7   : > { %17006 = vmatmul.mubr.f32.vlgmr.msra.gmra.mrb[16].mxu1 %v11450_v26 }
0x17e8   : > { %19371 = vmatpush3.bf16.msra.mxu1 %v19953_v18  ;;  %17040 = vmatprep.mubr.msk.f32.mxu1 %vm19848_vm1, %v22845_v2 }
0x17e9   : > { %19372 = vmatprep.subr.bf16.mxu1 %v22844_v20 }
0x17ec   : > { %19374 = vmatpush3.bf16.msra.mxu1 %v19985_v30 }
0x17ed   : > { %19375 = vmatprep.subr.bf16.mxu1 %v22844_v20 }
0x17f0   : > { %19377 = vmatpush3.bf16.msra.mxu1 %v20023_v45 }
0x17f1   : > { %19378 = vmatprep.subr.bf16.mxu1 %v22844_v20 }
0x17f4   : > { %19380 = vmatpush3.bf16.msra.mxu1 %v20083_v31 }
0x17f5   : > { %19381 = vmatprep.subr.bf16.mxu1 %v22844_v20 }
0x17f8   : > { %19383 = vmatpush3.bf16.msra.mxu1 %v22903_v15 }
0x17f9   : > { %19384 = vmatprep.subr.bf16.mxu1 %v22844_v20 }
0x17fc   : > { %19386 = vmatpush3.bf16.msra.mxu1 %v22905_v13 }
0x17fd   : > { %19387 = vmatprep.subr.bf16.mxu1 %v22844_v20 }
0x1800   : > { %19389 = vmatpush3.bf16.msra.mxu1 %v22907_v56 }
0x1801   : > { %19390 = vmatprep.subr.bf16.mxu1 %v22844_v20 }
0x1804   : > { %19392 = vmatpush3.bf16.msra.mxu1 %v22909_v10 }
0x1805   : > { %19393 = vmatprep.subr.bf16.mxu1 %v22844_v20 }
0x1807   : > { %17041 = vmatmul.mubr.f32.vlgmr.msra.gmra.mrb[16].mxu1 %v11451_v23 }
0x1808   : > { %19395 = vmatpush3.bf16.msra.mxu1 %v20480_v27  ;;  %17075 = vmatprep.mubr.msk.f32.mxu1 %vm19848_vm1, %v22845_v2  ;;  %v22981_v27 = vld [vmem:[#allocation8_spill] sm:$0xff] }
0x1809   : > { %19396 = vmatprep.subr.bf16.mxu1 %v22844_v20 }
0x180c   : > { %19398 = vmatpush3.bf16.msra.mxu1 %v20486_v40 }
0x180d   : > { %19399 = vmatprep.subr.bf16.mxu1 %v22844_v20 }
0x1810   : > { %19401 = vmatpush3.bf16.msra.mxu1 %v20492_v22 }
0x1811   : > { %19402 = vmatprep.subr.bf16.mxu1 %v22844_v20 }
0x1814   : > { %19404 = vmatpush3.bf16.msra.mxu1 %v20498_v52 }
0x1815   : > { %19405 = vmatprep.subr.bf16.mxu1 %v22844_v20 }
0x1818   : > { %19407 = vmatpush3.bf16.msra.mxu1 %v22968_v36 }
0x1819   : > { %19408 = vmatprep.subr.bf16.mxu1 %v22844_v20 }
0x181c   : > { %19410 = vmatpush3.bf16.msra.mxu1 %v22969_v21 }
0x181d   : > { %19411 = vmatprep.subr.bf16.mxu1 %v22844_v20 }
0x1820   : > { %19413 = vmatpush3.bf16.msra.mxu1 %v22970_v33 }
0x1821   : > { %19414 = vmatprep.subr.bf16.mxu1 %v22844_v20 }
0x1824   : > { %19416 = vmatpush3.bf16.msra.mxu1 %v22971_v50 }
0x1825   : > { %19417 = vmatprep.subr.bf16.mxu1 %v22844_v20 }
0x1827   : > { %17076 = vmatmul.mubr.f32.vlgmr.msra.gmra.mrb[16].mxu1 %v22607_v48 }
0x1828   : > { %19419 = vmatpush3.bf16.msra.mxu1 %v19953_v18  ;;  %17110 = vmatprep.mubr.msk.f32.mxu1 %vm19848_vm1, %v22845_v2  ;;  %v22982_v2 = vld [vmem:[#allocation5_spill] sm:$0xff] }
0x1829   : > { %19420 = vmatprep.subr.bf16.mxu1 %v22844_v20 }
0x182c   : > { %19422 = vmatpush3.bf16.msra.mxu1 %v19985_v30 }
0x182d   : > { %19423 = vmatprep.subr.bf16.mxu1 %v22844_v20 }
0x1830   : > { %19425 = vmatpush3.bf16.msra.mxu1 %v20023_v45 }
0x1831   : > { %19426 = vmatprep.subr.bf16.mxu1 %v22844_v20 }
0x1834   : > { %19428 = vmatpush3.bf16.msra.mxu1 %v20083_v31 }
0x1835   : > { %19429 = vmatprep.subr.bf16.mxu1 %v22844_v20 }
0x1838   : > { %19431 = vmatpush3.bf16.msra.mxu1 %v22903_v15 }
0x1839   : > { %19432 = vmatprep.subr.bf16.mxu1 %v22844_v20 }
0x183c   : > { %19434 = vmatpush3.bf16.msra.mxu1 %v22905_v13 }
0x183d   : > { %19435 = vmatprep.subr.bf16.mxu1 %v22844_v20 }
0x1840   : > { %19437 = vmatpush3.bf16.msra.mxu1 %v22907_v56 }
0x1841   : > { %19438 = vmatprep.subr.bf16.mxu1 %v22844_v20 }
0x1844   : > { %19440 = vmatpush3.bf16.msra.mxu1 %v22909_v10 }
0x1847   : > { %17111 = vmatmul.mubr.f32.vlgmr.msra.gmra.mrb[16].mxu1 %v22607_v48 }
0x191a   : > { %v12005_v18 = vpop.f32.mrb[16].mxu1 }
0x191b   : > { %v12009_v30 = vadd.f32 %v22981_v27, %v12005_v18  ;;  %v17112_v45 = vpop.f32.mrb[17].mxu1 }
0x191d   : > { %v12010_v31 = vmax.f32 %v12009_v30, 0.0 }
0x191f   : > { %v12011_v52 = vadd.f32 %v22982_v2, %v12010_v31 }
0x1921   : > { %v12012_v60 = vmax.f32 %v12011_v52, 0.0 }
0x1923   : > { %12118 = vst [vmem:[%s19909_s29 + $0x78] sm:$0xff] %v12012_v60  ;;  %12015 = vst [vmem:[#allocation2] sm:$0xff] %v12012_v60 }
0x1924 PF: > { %s15_s20 = sadd.s32 1, %s19843_s20   ;;  %s22983_s18 = smov %s19839_s19 }
0x1925   : > { %p12_p7 = scmp.ge.s32.totalorder %s15_s20, 4   ;;  %s22984_s19 = smov %s22986_s21 }
0x1927   :  { %14 = sbr.rel (!%p12_p7) target bundleno = 2 (0x2), region = 89 }

</bundles_post_ra>
